<compile_context>
chip_gen: v5e
topology: v5e:2x2
jax: 0.10.0
libtpu: 0.0.40
codegen_flags: <defaults>
</compile_context>

<pallas_src>
import math

import jax
import jax.numpy as jnp
from jax import lax
from jax.experimental import pallas as pl
from jax.experimental.pallas import tpu as pltpu


def _cdiv(a, b):
    return -(-a // b)


def _round_up(x, m):
    return ((x + m - 1) // m) * m


def _vmem_limit(nbytes):
    # generous but within every generation's physical VMEM (v7x: 64 MiB / TC)
    return int(min(64 * 2 ** 20, max(32 * 2 ** 20, 2 * nbytes)))


# ----------------------------- Pallas kernels -----------------------------

def _make_spatial_kernel(offs, Cmid, LT):
    """Spatial (1,kh,kw) conv over a tile of F_sp frame-padded frames.

    x_ref   : (Cin, LT)   bf16  flat padded frames (LT = F_sp * FRAME)
    w_ref   : (ntaps, Cmid, Cin) bf16 (resident)
    mask_ref: (1, LT)     f32   1.0 at genuine output lanes, 0.0 elsewhere
    y_ref   : (Cmid, LT)  bf16  masked conv output
    stats_ref: (1, 2, Cmid, 1) f32 per-tile [sum; sum of squares] over genuine lanes
    """
    def kernel(x_ref, w_ref, mask_ref, y_ref, stats_ref):
        x = x_ref[...]                                     # (Cin, LT) bf16
        acc = jnp.zeros((Cmid, LT), jnp.float32)
        for t, off in enumerate(offs):
            # rolled[p] = x[p + off]  (wraparound only touches non-genuine lanes)
            xs = x if off == 0 else jnp.roll(x, -off, axis=1)
            acc = acc + jnp.dot(w_ref[t], xs, preferred_element_type=jnp.float32)
        ym = acc * mask_ref[...]                           # zero garbage lanes
        y_ref[...] = ym.astype(y_ref.dtype)
        stats_ref[0, 0] = jnp.sum(ym, axis=1, keepdims=True)        # (Cmid, 1)
        stats_ref[0, 1] = jnp.sum(ym * ym, axis=1, keepdims=True)   # (Cmid, 1)
    return kernel


def _make_temporal_kernel(T, To, kt, st, pt, FRAME, Cmid, Cout):
    """Fused BatchNorm + ReLU + temporal (kt,1,1) conv for one whole sample.

    y_ref    : (Cmid, T*FRAME) bf16 spatial activations of sample n
    wt_ref   : (kt, Cout, Cmid) bf16 (resident)
    scale/shift: (Cmid, 1) f32
    o_ref    : (1, Cout, To*FRAME) f32
    act_ref  : VMEM scratch (Cmid, (T+2*pt)*FRAME) bf16 (temporally zero-padded acts)
    """
    def kernel(y_ref, wt_ref, scale_ref, shift_ref, o_ref, act_ref):
        if pt > 0:
            zpad = jnp.zeros((Cmid, pt * FRAME), jnp.bfloat16)
            act_ref[:, pl.ds(0, pt * FRAME)] = zpad
            act_ref[:, pl.ds((pt + T) * FRAME, pt * FRAME)] = zpad
        # BN + ReLU once per source frame (f32 arithmetic), bf16 for the MXU.
        yv = y_ref[...].astype(jnp.float32)
        act = jnp.maximum(yv * scale_ref[...] + shift_ref[...], 0.0)
        act_ref[:, pl.ds(pt * FRAME, T * FRAME)] = act.astype(jnp.bfloat16)

        if st == 1:
            acc = jnp.zeros((Cout, To * FRAME), jnp.float32)
            for k in range(kt):
                a = act_ref[:, pl.ds(k * FRAME, To * FRAME)]
                acc = acc + jnp.dot(wt_ref[k], a, preferred_element_type=jnp.float32)
            o_ref[0] = acc
        else:
            for to in range(To):
                acc = jnp.zeros((Cout, FRAME), jnp.float32)
                for k in range(kt):
                    a = act_ref[:, pl.ds((to * st + k) * FRAME, FRAME)]
                    acc = acc + jnp.dot(wt_ref[k], a,
                                        preferred_element_type=jnp.float32)
                o_ref[0, :, pl.ds(to * FRAME, FRAME)] = acc
    return kernel


# ----------------------------- pallas_call wrappers -----------------------------

def _spatial_conv_with_stats(xflat, w_taps, mask_tile, offs, F_sp, FRAME, G):
    Cin, Ltot = xflat.shape
    ntaps, Cmid, _ = w_taps.shape
    LT = F_sp * FRAME
    need = (2 * Cin * LT * 2 + 2 * Cmid * LT * 2 + 2 * LT * 4
            + Cmid * LT * 4 + ntaps * Cmid * Cin * 2)
    y, stats = pl.pallas_call(
        _make_spatial_kernel(offs, Cmid, LT),
        out_shape=(jax.ShapeDtypeStruct((Cmid, Ltot), jnp.bfloat16),
                   jax.ShapeDtypeStruct((G, 2, Cmid, 1), jnp.float32)),
        grid=(G,),
        in_specs=[pl.BlockSpec((Cin, LT), lambda i: (0, i)),
                  pl.BlockSpec((ntaps, Cmid, Cin), lambda i: (0, 0, 0)),
                  pl.BlockSpec((1, LT), lambda i: (0, 0))],
        out_specs=(pl.BlockSpec((Cmid, LT), lambda i: (0, i)),
                   pl.BlockSpec((1, 2, Cmid, 1), lambda i: (i, 0, 0, 0))),
        compiler_params=pltpu.CompilerParams(
            dimension_semantics=("parallel",),
            vmem_limit_bytes=_vmem_limit(need)),
    )(xflat, w_taps, mask_tile)
    return y, stats


def _fused_bn_relu_temporal_conv(y, w_t, scale, shift, N, T, To, kt, st, pt,
                                 FRAME, Cmid, Cout):
    need = (2 * Cmid * T * FRAME * 2 + Cmid * (T + 2 * pt) * FRAME * 2
            + 2 * Cout * To * FRAME * 4 + Cmid * T * FRAME * 4
            + Cout * To * FRAME * 4)
    # TODO(synk): for very large T*FRAME the whole-sample-resident slab may not fit
    # VMEM; a frame-blocked variant (F output frames + kt-1 halo per step) would
    # handle that case.
    out = pl.pallas_call(
        _make_temporal_kernel(T, To, kt, st, pt, FRAME, Cmid, Cout),
        out_shape=jax.ShapeDtypeStruct((N, Cout, To * FRAME), jnp.float32),
        grid=(N,),
        in_specs=[pl.BlockSpec((Cmid, T * FRAME), lambda n: (0, n)),
                  pl.BlockSpec((kt, Cout, Cmid), lambda n: (0, 0, 0)),
                  pl.BlockSpec((Cmid, 1), lambda n: (0, 0)),
                  pl.BlockSpec((Cmid, 1), lambda n: (0, 0))],
        out_specs=pl.BlockSpec((1, Cout, To * FRAME), lambda n: (n, 0, 0)),
        scratch_shapes=[pltpu.VMEM((Cmid, (T + 2 * pt) * FRAME), jnp.bfloat16)],
        compiler_params=pltpu.CompilerParams(
            dimension_semantics=("parallel",),
            vmem_limit_bytes=_vmem_limit(need)),
    )(y, w_t, scale, shift)
    return out


# ----------------------------- Module wrapper -----------------------------

class SpatioTemporalConvPallas:
    def __init__(self, in_channels, out_channels, kernel_size,
                 stride=1, padding=0, bias=False, key=None):
        def _triple(v):
            return (v, v, v) if isinstance(v, int) else tuple(v)
        kt, kh, kw = _triple(kernel_size)
        st, sh, sw = _triple(stride)
        pt, ph, pw = _triple(padding)
        assert not bias, "bias=False matches the reference module default"
        intermed = int(math.floor(
            kt * kh * kw * in_channels * out_channels /
            (kh * kw * in_channels + kt * out_channels)))

        self.cfg = dict(Cin=in_channels, Cmid=intermed, Cout=out_channels,
                        kt=kt, kh=kh, kw=kw, st=st, sh=sh, sw=sw,
                        pt=pt, ph=ph, pw=pw)

        key = key if key is not None else jax.random.PRNGKey(0)
        k1, k2 = jax.random.split(key)
        # Deterministic synthetic parameters (shapes match the nn.Conv3d weights).
        # spatial:  (Cmid, Cin, 1, kh, kw)   temporal: (Cout, Cmid, kt, 1, 1)
        self.w_spatial = 0.1 * jax.random.normal(
            k1, (intermed, in_channels, kh, kw), jnp.float32)
        self.w_temporal = 0.1 * jax.random.normal(
            k2, (out_channels, intermed, kt), jnp.float32)
        # BatchNorm3d defaults: gamma=1, beta=0, eps=1e-5, training-mode batch stats.
        self.gamma = jnp.ones((intermed,), jnp.float32)
        self.beta = jnp.zeros((intermed,), jnp.float32)
        self.eps = 1e-5

    def __call__(self, x):
        # x: (N, Cin, T, H, W)  -- PyTorch NCTHW layout, float32
        c = self.cfg
        N, Cin, T, H, W = x.shape
        kh, kw, sh, sw = c['kh'], c['kw'], c['sh'], c['sw']
        ph, pw = c['ph'], c['pw']
        kt, st, pt = c['kt'], c['st'], c['pt']
        Cmid, Cout = c['Cmid'], c['Cout']

        Hp, Wp = H + 2 * ph, W + 2 * pw
        Ho = (Hp - kh) // sh + 1
        Wo = (Wp - kw) // sw + 1
        To = (T + 2 * pt - kt) // st + 1
        FRAME = _round_up(Hp * Wp, 128)          # lane-padded flattened padded frame

        # ---- spatial tile geometry (VMEM budget, ~2K lanes, >=2 tiles for v7x) ----
        NT = N * T
        budget = 12 * (1 << 20)
        per_lane = 4 * Cin + 8 * Cmid + 8
        f_budget = max(1, budget // (per_lane * FRAME))
        F_sp = max(1, min(f_budget, max(1, 2048 // FRAME), NT))
        G = _cdiv(NT, F_sp)
        if G < 2 and NT >= 2:
            F_sp = _cdiv(NT, 2)
            G = _cdiv(NT, F_sp)
        Ftot = G * F_sp

        # ---- channel-major, frame-padded flat input (single cheap XLA pass) ----
        xt = jnp.transpose(x, (1, 0, 2, 3, 4))                       # (Cin,N,T,H,W)
        xt = jnp.pad(xt, ((0, 0), (0, 0), (0, 0), (ph, ph), (pw, pw)))
        xt = xt.reshape(Cin, NT, Hp * Wp)
        xt = jnp.pad(xt, ((0, 0), (0, Ftot - NT), (0, FRAME - Hp * Wp)))
        xflat = xt.reshape(Cin, Ftot * FRAME).astype(jnp.bfloat16)

        # genuine-output-lane mask (one frame, tiled across a tile's frames)
        fm = jnp.zeros((Hp, Wp), jnp.float32)
        fm = fm.at[0:(Ho - 1) * sh + 1:sh, 0:(Wo - 1) * sw + 1:sw].set(1.0)
        fmask = jnp.pad(fm.reshape(-1), (0, FRAME - Hp * Wp))
        mask_tile = jnp.tile(fmask, F_sp)[None, :]                   # (1, F_sp*FRAME)

        # per-tap spatial weights (tap order dy-major, matching offs below)
        w_taps = jnp.transpose(self.w_spatial, (2, 3, 0, 1)).reshape(
            kh * kw, Cmid, Cin).astype(jnp.bfloat16)
        offs = tuple(dy * Wp + dx for dy in range(kh) for dx in range(kw))

        y, stats = _spatial_conv_with_stats(
            xflat, w_taps, mask_tile, offs, F_sp, FRAME, G)

        # ---- BatchNorm3d statistics (training mode, biased variance) ----
        # Note: stats come from the f32 accumulator while BN is applied to the
        # bf16-rounded y in kernel 2 -- a tiny systematic mismatch, fine at 2e-2.
        count = jnp.float32(N * T * Ho * Wo)         # masked / zero lanes contribute 0
        sums = jnp.sum(stats, axis=0)                # (2, Cmid, 1)
        mean = sums[0] / count
        var = jnp.maximum(sums[1] / count - mean * mean, 0.0)   # clamp cancellation
        inv_std = lax.rsqrt(var + self.eps)
        scale = self.gamma[:, None] * inv_std        # (Cmid, 1) f32
        shift = self.beta[:, None] - mean * scale

        # ---- fused BN + ReLU + temporal (kt,1,1) conv, whole sample resident ----
        w_t = jnp.transpose(self.w_temporal, (2, 0, 1)).astype(jnp.bfloat16)
        out = _fused_bn_relu_temporal_conv(
            y, w_t, scale, shift, N, T, To, kt, st, pt, FRAME, Cmid, Cout)

        # output already in (N, Cout, ...) order: crop garbage lanes only, no transpose
        out = out.reshape(N, Cout, To, FRAME)[:, :, :, :Hp * Wp]
        out = out.reshape(N, Cout, To, Hp, Wp)
        out = out[:, :, :, 0:(Ho - 1) * sh + 1:sh, 0:(Wo - 1) * sw + 1:sw]
        return out


# ----------------------------- Pure-JAX reference -----------------------------

def _reference(x, mod: SpatioTemporalConvPallas):
    c = mod.cfg
    w_sp = mod.w_spatial[:, :, None, :, :]            # (Cmid,Cin,1,kh,kw)
    w_t = mod.w_temporal[:, :, :, None, None]         # (Cout,Cmid,kt,1,1)
    dn = ('NCDHW', 'OIDHW', 'NCDHW')
    y = lax.conv_general_dilated(
        x, w_sp, window_strides=(1, c['sh'], c['sw']),
        padding=[(0, 0), (c['ph'], c['ph']), (c['pw'], c['pw'])],
        dimension_numbers=dn, precision=lax.Precision.HIGHEST)
    mean = jnp.mean(y, axis=(0, 2, 3, 4), keepdims=True)
    var = jnp.mean((y - mean) ** 2, axis=(0, 2, 3, 4), keepdims=True)
    a = jnp.maximum((y - mean) / jnp.sqrt(var + mod.eps), 0.0)
    out = lax.conv_general_dilated(
        a, w_t, window_strides=(c['st'], 1, 1),
        padding=[(c['pt'], c['pt']), (0, 0), (0, 0)],
        dimension_numbers=dn, precision=lax.Precision.HIGHEST)
    return out


if __name__ == "__main__":
    key = jax.random.PRNGKey(0)
    kx, kw = jax.random.split(key)

    N, Cin, T, H, W = 2, 4, 8, 16, 16
    Cout = 8
    x = jax.random.normal(kx, (N, Cin, T, H, W), jnp.float32)

    mod = SpatioTemporalConvPallas(Cin, Cout, kernel_size=3,
                                   stride=1, padding=1, bias=False, key=kw)

    out = jax.block_until_ready(mod(x))
    ref = jax.block_until_ready(_reference(x, mod))

    assert out.shape == ref.shape, (out.shape, ref.shape)
    # bf16 MXU operands with f32 accumulation -> compare at bf16-appropriate tolerance.
    max_err = float(jnp.max(jnp.abs(out - ref)))
    assert jnp.allclose(out, ref, rtol=2e-2, atol=2e-2), max_err
    print("KERNEL_OK")
</pallas_src>

<mosaic_0001>
module attributes {stable_mosaic.version = 11 : i64} {
  func.func @kernel(%arg0: i32, %arg1: memref<4x1920xbf16, #tpu.memory_space<vmem>>, %arg2: memref<9x14x4xbf16, #tpu.memory_space<vmem>>, %arg3: memref<1x1920xf32, #tpu.memory_space<vmem>>, %arg4: memref<14x1920xbf16, #tpu.memory_space<vmem>>, %arg5: memref<1x2x14x1xf32, #tpu.memory_space<vmem>>) attributes {dimension_semantics = [#tpu.dimension_semantics<parallel>], iteration_bounds = array<i64: 4>, scalar_prefetch = 0 : i64, scratch_operands = 0 : i64, tpu.core_type = #tpu.core_type<tc>, window_params = [{transform_indices = @transform_0, window_bounds = array<i64: 4, 1920>}, {pipeline_mode = #tpu.pipeline_mode<synchronous>, transform_indices = @transform_1, window_bounds = array<i64: 9, 14, 4>}, {pipeline_mode = #tpu.pipeline_mode<synchronous>, transform_indices = @transform_2, window_bounds = array<i64: 1, 1920>}, {transform_indices = @transform_3, window_bounds = array<i64: 14, 1920>}, {transform_indices = @transform_4, window_bounds = array<i64: 1, 2, 14, 1>}]} {
    %c0 = arith.constant 0 : index
    %c0_0 = arith.constant 0 : index
    %0 = vector.load %arg1[%c0, %c0_0] : memref<4x1920xbf16, #tpu.memory_space<vmem>>, vector<4x1920xbf16>
    %cst = arith.constant 0.000000e+00 : f32
    %1 = vector.broadcast %cst : f32 to vector<14x1920xf32>
    %c0_1 = arith.constant 0 : index
    %c0_2 = arith.constant 0 : index
    %c0_3 = arith.constant 0 : index
    %2 = vector.load %arg2[%c0_1, %c0_2, %c0_3] : memref<9x14x4xbf16, #tpu.memory_space<vmem>>, vector<1x14x4xbf16>
    %3 = vector.shape_cast %2 : vector<1x14x4xbf16> to vector<14x4xbf16>
    %cst_4 = arith.constant dense<0.000000e+00> : vector<14x1920xf32>
    %4 = tpu.matmul %3, %0, %cst_4 {dimension_numbers = #tpu.dot_dimension_numbers<[1], [0], [0], [1], [0, 0, 1, 1], [], []>} : vector<14x4xbf16>, vector<4x1920xbf16>, vector<14x1920xf32> -> vector<14x1920xf32>
    %5 = arith.addf %1, %4 : vector<14x1920xf32>
    %6 = vector.extract_strided_slice %0 {offsets = [0, 1], sizes = [4, 1919], strides = [1, 1]} : vector<4x1920xbf16> to vector<4x1919xbf16>
    %7 = vector.extract_strided_slice %0 {offsets = [0, 0], sizes = [4, 1], strides = [1, 1]} : vector<4x1920xbf16> to vector<4x1xbf16>
    %8 = tpu.concatenate %6, %7 in 1 : vector<4x1919xbf16>, vector<4x1xbf16> -> vector<4x1920xbf16>
    %c1 = arith.constant 1 : index
    %c0_5 = arith.constant 0 : index
    %c0_6 = arith.constant 0 : index
    %9 = vector.load %arg2[%c1, %c0_5, %c0_6] : memref<9x14x4xbf16, #tpu.memory_space<vmem>>, vector<1x14x4xbf16>
    %10 = vector.shape_cast %9 : vector<1x14x4xbf16> to vector<14x4xbf16>
    %cst_7 = arith.constant dense<0.000000e+00> : vector<14x1920xf32>
    %11 = tpu.matmul %10, %8, %cst_7 {dimension_numbers = #tpu.dot_dimension_numbers<[1], [0], [0], [1], [0, 0, 1, 1], [], []>} : vector<14x4xbf16>, vector<4x1920xbf16>, vector<14x1920xf32> -> vector<14x1920xf32>
    %12 = arith.addf %5, %11 : vector<14x1920xf32>
    %13 = vector.extract_strided_slice %0 {offsets = [0, 2], sizes = [4, 1918], strides = [1, 1]} : vector<4x1920xbf16> to vector<4x1918xbf16>
    %14 = vector.extract_strided_slice %0 {offsets = [0, 0], sizes = [4, 2], strides = [1, 1]} : vector<4x1920xbf16> to vector<4x2xbf16>
    %15 = tpu.concatenate %13, %14 in 1 : vector<4x1918xbf16>, vector<4x2xbf16> -> vector<4x1920xbf16>
    %c2 = arith.constant 2 : index
    %c0_8 = arith.constant 0 : index
    %c0_9 = arith.constant 0 : index
    %16 = vector.load %arg2[%c2, %c0_8, %c0_9] : memref<9x14x4xbf16, #tpu.memory_space<vmem>>, vector<1x14x4xbf16>
    %17 = vector.shape_cast %16 : vector<1x14x4xbf16> to vector<14x4xbf16>
    %cst_10 = arith.constant dense<0.000000e+00> : vector<14x1920xf32>
    %18 = tpu.matmul %17, %15, %cst_10 {dimension_numbers = #tpu.dot_dimension_numbers<[1], [0], [0], [1], [0, 0, 1, 1], [], []>} : vector<14x4xbf16>, vector<4x1920xbf16>, vector<14x1920xf32> -> vector<14x1920xf32>
    %19 = arith.addf %12, %18 : vector<14x1920xf32>
    %20 = vector.extract_strided_slice %0 {offsets = [0, 18], sizes = [4, 1902], strides = [1, 1]} : vector<4x1920xbf16> to vector<4x1902xbf16>
    %21 = vector.extract_strided_slice %0 {offsets = [0, 0], sizes = [4, 18], strides = [1, 1]} : vector<4x1920xbf16> to vector<4x18xbf16>
    %22 = tpu.concatenate %20, %21 in 1 : vector<4x1902xbf16>, vector<4x18xbf16> -> vector<4x1920xbf16>
    %c3 = arith.constant 3 : index
    %c0_11 = arith.constant 0 : index
    %c0_12 = arith.constant 0 : index
    %23 = vector.load %arg2[%c3, %c0_11, %c0_12] : memref<9x14x4xbf16, #tpu.memory_space<vmem>>, vector<1x14x4xbf16>
    %24 = vector.shape_cast %23 : vector<1x14x4xbf16> to vector<14x4xbf16>
    %cst_13 = arith.constant dense<0.000000e+00> : vector<14x1920xf32>
    %25 = tpu.matmul %24, %22, %cst_13 {dimension_numbers = #tpu.dot_dimension_numbers<[1], [0], [0], [1], [0, 0, 1, 1], [], []>} : vector<14x4xbf16>, vector<4x1920xbf16>, vector<14x1920xf32> -> vector<14x1920xf32>
    %26 = arith.addf %19, %25 : vector<14x1920xf32>
    %27 = vector.extract_strided_slice %0 {offsets = [0, 19], sizes = [4, 1901], strides = [1, 1]} : vector<4x1920xbf16> to vector<4x1901xbf16>
    %28 = vector.extract_strided_slice %0 {offsets = [0, 0], sizes = [4, 19], strides = [1, 1]} : vector<4x1920xbf16> to vector<4x19xbf16>
    %29 = tpu.concatenate %27, %28 in 1 : vector<4x1901xbf16>, vector<4x19xbf16> -> vector<4x1920xbf16>
    %c4 = arith.constant 4 : index
    %c0_14 = arith.constant 0 : index
    %c0_15 = arith.constant 0 : index
    %30 = vector.load %arg2[%c4, %c0_14, %c0_15] : memref<9x14x4xbf16, #tpu.memory_space<vmem>>, vector<1x14x4xbf16>
    %31 = vector.shape_cast %30 : vector<1x14x4xbf16> to vector<14x4xbf16>
    %cst_16 = arith.constant dense<0.000000e+00> : vector<14x1920xf32>
    %32 = tpu.matmul %31, %29, %cst_16 {dimension_numbers = #tpu.dot_dimension_numbers<[1], [0], [0], [1], [0, 0, 1, 1], [], []>} : vector<14x4xbf16>, vector<4x1920xbf16>, vector<14x1920xf32> -> vector<14x1920xf32>
    %33 = arith.addf %26, %32 : vector<14x1920xf32>
    %34 = vector.extract_strided_slice %0 {offsets = [0, 20], sizes = [4, 1900], strides = [1, 1]} : vector<4x1920xbf16> to vector<4x1900xbf16>
    %35 = vector.extract_strided_slice %0 {offsets = [0, 0], sizes = [4, 20], strides = [1, 1]} : vector<4x1920xbf16> to vector<4x20xbf16>
    %36 = tpu.concatenate %34, %35 in 1 : vector<4x1900xbf16>, vector<4x20xbf16> -> vector<4x1920xbf16>
    %c5 = arith.constant 5 : index
    %c0_17 = arith.constant 0 : index
    %c0_18 = arith.constant 0 : index
    %37 = vector.load %arg2[%c5, %c0_17, %c0_18] : memref<9x14x4xbf16, #tpu.memory_space<vmem>>, vector<1x14x4xbf16>
    %38 = vector.shape_cast %37 : vector<1x14x4xbf16> to vector<14x4xbf16>
    %cst_19 = arith.constant dense<0.000000e+00> : vector<14x1920xf32>
    %39 = tpu.matmul %38, %36, %cst_19 {dimension_numbers = #tpu.dot_dimension_numbers<[1], [0], [0], [1], [0, 0, 1, 1], [], []>} : vector<14x4xbf16>, vector<4x1920xbf16>, vector<14x1920xf32> -> vector<14x1920xf32>
    %40 = arith.addf %33, %39 : vector<14x1920xf32>
    %41 = vector.extract_strided_slice %0 {offsets = [0, 36], sizes = [4, 1884], strides = [1, 1]} : vector<4x1920xbf16> to vector<4x1884xbf16>
    %42 = vector.extract_strided_slice %0 {offsets = [0, 0], sizes = [4, 36], strides = [1, 1]} : vector<4x1920xbf16> to vector<4x36xbf16>
    %43 = tpu.concatenate %41, %42 in 1 : vector<4x1884xbf16>, vector<4x36xbf16> -> vector<4x1920xbf16>
    %c6 = arith.constant 6 : index
    %c0_20 = arith.constant 0 : index
    %c0_21 = arith.constant 0 : index
    %44 = vector.load %arg2[%c6, %c0_20, %c0_21] : memref<9x14x4xbf16, #tpu.memory_space<vmem>>, vector<1x14x4xbf16>
    %45 = vector.shape_cast %44 : vector<1x14x4xbf16> to vector<14x4xbf16>
    %cst_22 = arith.constant dense<0.000000e+00> : vector<14x1920xf32>
    %46 = tpu.matmul %45, %43, %cst_22 {dimension_numbers = #tpu.dot_dimension_numbers<[1], [0], [0], [1], [0, 0, 1, 1], [], []>} : vector<14x4xbf16>, vector<4x1920xbf16>, vector<14x1920xf32> -> vector<14x1920xf32>
    %47 = arith.addf %40, %46 : vector<14x1920xf32>
    %48 = vector.extract_strided_slice %0 {offsets = [0, 37], sizes = [4, 1883], strides = [1, 1]} : vector<4x1920xbf16> to vector<4x1883xbf16>
    %49 = vector.extract_strided_slice %0 {offsets = [0, 0], sizes = [4, 37], strides = [1, 1]} : vector<4x1920xbf16> to vector<4x37xbf16>
    %50 = tpu.concatenate %48, %49 in 1 : vector<4x1883xbf16>, vector<4x37xbf16> -> vector<4x1920xbf16>
    %c7 = arith.constant 7 : index
    %c0_23 = arith.constant 0 : index
    %c0_24 = arith.constant 0 : index
    %51 = vector.load %arg2[%c7, %c0_23, %c0_24] : memref<9x14x4xbf16, #tpu.memory_space<vmem>>, vector<1x14x4xbf16>
    %52 = vector.shape_cast %51 : vector<1x14x4xbf16> to vector<14x4xbf16>
    %cst_25 = arith.constant dense<0.000000e+00> : vector<14x1920xf32>
    %53 = tpu.matmul %52, %50, %cst_25 {dimension_numbers = #tpu.dot_dimension_numbers<[1], [0], [0], [1], [0, 0, 1, 1], [], []>} : vector<14x4xbf16>, vector<4x1920xbf16>, vector<14x1920xf32> -> vector<14x1920xf32>
    %54 = arith.addf %47, %53 : vector<14x1920xf32>
    %55 = vector.extract_strided_slice %0 {offsets = [0, 38], sizes = [4, 1882], strides = [1, 1]} : vector<4x1920xbf16> to vector<4x1882xbf16>
    %56 = vector.extract_strided_slice %0 {offsets = [0, 0], sizes = [4, 38], strides = [1, 1]} : vector<4x1920xbf16> to vector<4x38xbf16>
    %57 = tpu.concatenate %55, %56 in 1 : vector<4x1882xbf16>, vector<4x38xbf16> -> vector<4x1920xbf16>
    %c8 = arith.constant 8 : index
    %c0_26 = arith.constant 0 : index
    %c0_27 = arith.constant 0 : index
    %58 = vector.load %arg2[%c8, %c0_26, %c0_27] : memref<9x14x4xbf16, #tpu.memory_space<vmem>>, vector<1x14x4xbf16>
    %59 = vector.shape_cast %58 : vector<1x14x4xbf16> to vector<14x4xbf16>
    %cst_28 = arith.constant dense<0.000000e+00> : vector<14x1920xf32>
    %60 = tpu.matmul %59, %57, %cst_28 {dimension_numbers = #tpu.dot_dimension_numbers<[1], [0], [0], [1], [0, 0, 1, 1], [], []>} : vector<14x4xbf16>, vector<4x1920xbf16>, vector<14x1920xf32> -> vector<14x1920xf32>
    %61 = arith.addf %54, %60 : vector<14x1920xf32>
    %c0_29 = arith.constant 0 : index
    %c0_30 = arith.constant 0 : index
    %62 = vector.load %arg3[%c0_29, %c0_30] : memref<1x1920xf32, #tpu.memory_space<vmem>>, vector<1x1920xf32>
    %63 = vector.broadcast %62 : vector<1x1920xf32> to vector<14x1920xf32>
    %64 = arith.mulf %61, %63 : vector<14x1920xf32>
    %65 = arith.truncf %64 : vector<14x1920xf32> to vector<14x1920xbf16>
    %c0_31 = arith.constant 0 : index
    %c0_32 = arith.constant 0 : index
    %66 = vector.load %arg4[%c0_31, %c0_32] : memref<14x1920xbf16, #tpu.memory_space<vmem>>, vector<14x1920xbf16>
    tpu.vector_store %arg4[%c0_31, %c0_32], %65 {strides = array<i32>} : memref<14x1920xbf16, #tpu.memory_space<vmem>>, vector<14x1920xbf16>,
    %cst_33 = arith.constant dense<0.000000e+00> : vector<14xf32>
    %67 = vector.multi_reduction <add>, %64, %cst_33 [1] : vector<14x1920xf32> to vector<14xf32>
    %68 = vector.shape_cast %67 : vector<14xf32> to vector<14x1xf32>
    %c0_34 = arith.constant 0 : index
    %c0_35 = arith.constant 0 : index
    %c0_36 = arith.constant 0 : index
    %c0_37 = arith.constant 0 : index
    %69 = vector.load %arg5[%c0_34, %c0_35, %c0_36, %c0_37] : memref<1x2x14x1xf32, #tpu.memory_space<vmem>>, vector<1x1x14x1xf32>
    %70 = vector.shape_cast %69 : vector<1x1x14x1xf32> to vector<14x1xf32>
    %71 = vector.shape_cast %68 : vector<14x1xf32> to vector<1x1x14x1xf32>
    tpu.vector_store %arg5[%c0_34, %c0_35, %c0_36, %c0_37], %71 {strides = array<i32>} : memref<1x2x14x1xf32, #tpu.memory_space<vmem>>, vector<1x1x14x1xf32>,
    %72 = arith.mulf %64, %64 : vector<14x1920xf32>
    %cst_38 = arith.constant dense<0.000000e+00> : vector<14xf32>
    %73 = vector.multi_reduction <add>, %72, %cst_38 [1] : vector<14x1920xf32> to vector<14xf32>
    %74 = vector.shape_cast %73 : vector<14xf32> to vector<14x1xf32>
    %c0_39 = arith.constant 0 : index
    %c1_40 = arith.constant 1 : index
    %c0_41 = arith.constant 0 : index
    %c0_42 = arith.constant 0 : index
    %75 = vector.load %arg5[%c0_39, %c1_40, %c0_41, %c0_42] : memref<1x2x14x1xf32, #tpu.memory_space<vmem>>, vector<1x1x14x1xf32>
    %76 = vector.shape_cast %75 : vector<1x1x14x1xf32> to vector<14x1xf32>
    %77 = vector.shape_cast %74 : vector<14x1xf32> to vector<1x1x14x1xf32>
    tpu.vector_store %arg5[%c0_39, %c1_40, %c0_41, %c0_42], %77 {strides = array<i32>} : memref<1x2x14x1xf32, #tpu.memory_space<vmem>>, vector<1x1x14x1xf32>,
    return
  }
  func.func @transform_0(%arg0: i32) -> (i32, i32) {
    %c0_i32 = arith.constant 0 : i32
    %c0_i32_0 = arith.constant 0 : i32
    return %c0_i32, %arg0 : i32, i32
  }
  func.func @transform_1(%arg0: i32) -> (i32, i32, i32) {
    %c0_i32 = arith.constant 0 : i32
    %c0_i32_0 = arith.constant 0 : i32
    %c0_i32_1 = arith.constant 0 : i32
    %c0_i32_2 = arith.constant 0 : i32
    return %c0_i32, %c0_i32_0, %c0_i32_1 : i32, i32, i32
  }
  func.func @transform_2(%arg0: i32) -> (i32, i32) {
    %c0_i32 = arith.constant 0 : i32
    %c0_i32_0 = arith.constant 0 : i32
    %c0_i32_1 = arith.constant 0 : i32
    return %c0_i32, %c0_i32_0 : i32, i32
  }
  func.func @transform_3(%arg0: i32) -> (i32, i32) {
    %c0_i32 = arith.constant 0 : i32
    %c0_i32_0 = arith.constant 0 : i32
    return %c0_i32, %arg0 : i32, i32
  }
  func.func @transform_4(%arg0: i32) -> (i32, i32, i32, i32) {
    %c0_i32 = arith.constant 0 : i32
    %c0_i32_0 = arith.constant 0 : i32
    %c0_i32_1 = arith.constant 0 : i32
    %c0_i32_2 = arith.constant 0 : i32
    return %arg0, %c0_i32, %c0_i32_0, %c0_i32_1 : i32, i32, i32, i32
  }
}

</mosaic_0001>

<bundles_post_ra>
// kernel: tpu_custom_call.1
= control target key start
LH: loop header
LB: loop body
LE: loop exit
PB: predicated region body
PF: predicated region fallthrough
CT: control target
= control target key end

     0   :  { %10 = vsyncpa [#allocation3], 0  ;;  %s6036_s0 = inlined_call_operand.hbm [shape: bf16[4,7680], index: 0, kind: input, shape index: {}]   ;;  %s6037_s1 = inlined_call_operand.vmem [shape: bf16[9,14,4], index: 1, kind: input, shape index: {}]   ;;  %s6038_s2 = inlined_call_operand.vmem [shape: f32[1,1920], index: 2, kind: input, shape index: {}]   ;;  %s6039_s3 = inlined_call_operand.hbm [shape: bf16[14,7680], index: 3, kind: output, shape index: {0}]   ;;  %s6040_s4 = inlined_call_operand.vmem [shape: f32[4,2,14,1], index: 4, kind: output, shape index: {1}]  }
   0x1   :  { %12 = vsyncpa [#allocation3 + $0x1], 0 }
   0x2   :  { %13 = vsyncpa [#allocation4], 0 }
   0x3   :  { %15 = vsyncpa [#allocation4 + $0x1], 0  ;;  %s4309_s15 = smov 0   ;;  %s4311_s16 = smov 0  }
   0x4   :  { %s4313_s17 = smov 0   ;;  %s4315_s18 = smov 0  }
   0x5 LB: > { %s4330_s19 = sadd.s32 4294967295, %s4271_s18   ;;  %s3904_s20 = sadd.s32 4294967294, %s4271_s18   ;;  %s4271_s18 = sphi %s4315_s18, %s6070_s18   ;;  %s4267_s17 = sphi %s4313_s17, %s6069_s17   ;;  %s4263_s16 = sphi %s4311_s16, %s6068_s16   ;;  %s4259_s15 = sphi %s4309_s15, %s6067_s15  }
   0x6   : > { %s4334_s21 = sadd.s32 1, %s4271_s18   ;;  %s28_s22 = sadd.s32 1, %s4267_s17 }
   0x7   : > { %s25_s23 = ssub.s32 %s4271_s18, %s4334_s21  ;;  %p35_p0 = scmp.ne.s32.totalorder %s4267_s17, %s4263_s16 }
   0x8   : > { %p26_p1 = scmp.eq.s32.totalorder %s25_s23, 0  ;;  %p36_p2 = scmp.eq.s32.totalorder %s4271_s18, 0 }
   0x9   : > { %p41_p3 = scmp.ne.s32.totalorder %s4263_s16, %s4259_s15  ;;  %p42_p4 = scmp.eq.s32.totalorder %s4330_s19, 0 }
   0xa   : > { %s4346_s24 = scalar_select %p26_p1, %s4267_s17, %s28_s22  }
   0xb   : > { %p37_p5 = por %p36_p2, %p35_p0  ;;  %p4348_p6 = por %p42_p4, %p41_p3 }
   0xc   : > { %p107_p7 = scmp.eq.s32.totalorder %s4330_s19, 3  ;;  %p113_p8 = scmp.eq.s32.totalorder %s3904_s20, 3 }
   0xd   : > { %p4130_p9 = scmp.lt.s32.totalorder %s4271_s18, 4  ;;  %s165_s28 = sand.u32 1, %s4267_s17  }
   0xe   : > { %p4354_p10 = por %p107_p7, %p35_p0  ;;  %p4358_p11 = por %p113_p8, %p41_p3 }
   0xf   : > { %s4103_s29 = smul.u32 30, %s4271_s18  ;;  %p4367_p12 = pnand %p4130_p9, %p37_p5 }
  0x10   : > { %s4115_s30 = smul.u32 30, %s165_s28  ;;  %s166_s12 = scalar_lea.sflag [#allocation3], %s165_s28 }
  0x11   : > { %s174_s7 = scalar_lea.hbm %s6036_s0, %s4103_s29  ;;  %p4179_p0 = pneg %p4367_p12 }
  0x12   : > { %s176_s9 = sshll.u32 %s174_s7, 4  ;;  %s169_s10 = scalar_lea.vmem [#allocation2], %s4115_s30  ;;  %s177_s9 = int_to_ptr.hbm [resolvable:$true] %s176_s9 }
  0x13   : > { %s178_s11 = sshll.u32 %s169_s10, 4  ;;  %s4175_s13 = sshra.s32 %s177_s9, 4  ;;  %s179_s11 = int_to_ptr.vmem [resolvable:$true] %s178_s11  ;;  %s4176_s13 = int_to_ptr.hbm [resolvable:$true] %s4175_s13 }
  0x14   : > { %s4177_s14 = scalar_lea.hbm %s4176_s13, 30  ;;  %s4182_s23 = scalar_lea.hbm %s6036_s0, 120 }
  0x15   : > { %p4178_p13 = scmp.ne.s32.totalorder %s4176_s13, %s4177_s14  ;;  %p4183_p3 = scmp.lt.s32.totalorder %s4176_s13, %s6036_s0 }
  0x16   : > { %p4184_p4 = scmp.lt.s32.totalorder %s4182_s23, %s4177_s14 }
  0x17   : > { %p4180_p1 = pnand %p4179_p0, %p4178_p13 }
  0x18   : > { %p4185_p5 = por %p4184_p4, %p4183_p3 }
  0x19   : > { %p4181_p2 = pneg %p4180_p1 }
  0x1b   : > { %p4186_p7 = pnand %p4185_p5, %p4181_p2 }
  0x1d   : > { %4189 = shalt.err (!%p4186_p7)
}
  0x1e   : > { %4125 = dma.hbm_to_vmem [thread:$0]  (!%p4367_p12), %s177_s9, 480, %s179_s11, %s166_s12  }
  0x1f   : > { %p3908_p8 = scmp.ge.s32.totalorder %s4271_s18, 1  ;;  %p183_p9 = scmp.lt.s32.totalorder %s4271_s18, 5 }
  0x21   : > { %p184_p13 = pnand %p3908_p8, %p183_p9 }
  0x23   : > { %187 = sbr.rel (%p184_p13) target bundleno = 977 (0x3d1), region = 32 }
  0x28   : > { %s4384_s28 = sand.u32 1, %s4263_s16  }
  0x29   : > { %s4116_s30 = smul.u32 30, %s4384_s28  ;;  %s190_s6 = scalar_lea.sflag [#allocation3], %s4384_s28 }
  0x2b   : > { %s193_s7 = scalar_lea.vmem [#allocation2], %s4116_s30 }
  0x2c   : > { %4250 = dma.done.wait (%p4348_p6), %s190_s6, 480  }
  0x2d   : > { %4252 = vsyncadd (%p4348_p6), %s190_s6, 4294966816  ;;  %v4392_v0 = vld [vmem:[%s193_s7] sm:$0xff]  ;;  %v4394_v1 = vld [vmem:[%s193_s7 + $0x8] sm:$0xff]  ;;  %s4273_s8 = smov 127   ;;  %s4274_s25 = smov 126   ;;  %vm307_vm0 = vcmask 1039360  }
  0x2e   : > { %239 = vst [vmem:[#allocation1] ss:$4 sm:$0xff] %v4392_v0  ;;  %v4398_v2 = vld [vmem:[%s193_s7 + $0x10] sm:$0xff]  ;;  %v4402_v6 = vld [vmem:[%s193_s7 + $0x18] sm:$0x3f]  ;;  %vm343_vm1 = vcmask 1041408  }
  0x2f   : > { %242 = vst [vmem:[#allocation1 + $0x20] ss:$4 sm:$0xff] %v4394_v1  ;;  %v3915_v49 = vld [vmem:[%s6037_s1 + $0x8] sm:$0xf]  ;;  %v4106_v50 = vld [vmem:[%s6037_s1 + $0x8] sm:$0x70] }
  0x30   : > { %v4474_v53 = vor.u32 %v4106_v50, %v3915_v49  ;;  %vm339_vm2 = vcmask 31744   ;;  %s4275_s13 = smov 110   ;;  %vm931_vm3 = vcmask 1031168   ;;  %s4276_s29 = smov 109   ;;  %vm1315_vm4 = vcmask 900096  }
  0x31   : > { %s4278_s12 = smov 92   ;;  %vm1699_vm5 = vcmask 891904   ;;  %vm2083_vm6 = vcmask 883712   ;;  %s4279_s23 = smov 91   ;;  %vm2467_vm7 = vcmask 752640   ;;  %vm2851_vm8 = vcmask 744448  }
  0x32   : > { %s4280_s7 = smov 90   ;;  %vm3235_vm9 = vcmask 736256   ;;  %s4117_s6 = smul.u32 120, %s4384_s28  ;;  %vm3666_vm10 = vcmask 1045504  }
  0x33   : > { %s4114_s9 = smul.u32 60, %s4330_s19  ;;  %s3783_s20 = scalar_lea.sflag [#allocation4], %s4384_s28 }
  0x34   : > { %s4225_s30 = scalar_lea.hbm %s6039_s3, 480 }
  0x35   : > { %v247_v3 = vld.sshfl [vmem:[#allocation1 + $0x10] sm:$0xff pattern:$0x73625140]  ;;  %v243_v4 = vld.sshfl [vmem:[#allocation1] sm:$0xff pattern:$0x73625140] }
  0x36   : > { %281 = vrot.lane.b32.xlu0 %v247_v3, %s4273_s8  ;;  %277 = vrot.lane.b32.xlu1 %v243_v4, %s4273_s8  ;;  %v249_v5 = vld.sshfl [vmem:[#allocation1 + $0x18] sm:$0xff pattern:$0x73625140]  ;;  %v245_v7 = vld.sshfl [vmem:[#allocation1 + $0x8] sm:$0xff pattern:$0x73625140] }
  0x37   : > { %v257_v8 = vld.sshfl [vmem:[#allocation1 + $0x38] sm:$0xff pattern:$0x73625140]  ;;  %v251_v9 = vld.sshfl [vmem:[#allocation1 + $0x20] sm:$0xff pattern:$0x73625140] }
  0x38   : > { %260 = vst [vmem:[#allocation1] ss:$4 sm:$0xff] %v4398_v2  ;;  %v253_v10 = vld.sshfl [vmem:[#allocation1 + $0x28] sm:$0xff pattern:$0x73625140]  ;;  %285 = vrot.lane.b32.xlu2 %v251_v9, %s4273_s8 }
  0x39   : > { %v255_v11 = vld.sshfl [vmem:[#allocation1 + $0x30] sm:$0xff pattern:$0x73625140] }
  0x3a   : > { %262 = vst [vmem:[#allocation1 + $0x20] ss:$4 sm:$0xff] %v4402_v6 }
  0x3e   : > { %283 = vrot.lane.b32.xlu0 %v249_v5, %s4273_s8  ;;  %279 = vrot.lane.b32.xlu1 %v245_v7, %s4273_s8 }
  0x3f   : > { %v267_v12 = vld.sshfl [vmem:[#allocation1 + $0x10] sm:$0xff pattern:$0x73625140]  ;;  %v269_v13 = vld.sshfl [vmem:[#allocation1 + $0x18] sm:$0xff pattern:$0x73625140] }
  0x40   : > { %v263_v14 = vld.sshfl [vmem:[#allocation1] sm:$0xff pattern:$0x73625140]  ;;  %v265_v15 = vld.sshfl [vmem:[#allocation1 + $0x8] sm:$0xff pattern:$0x73625140]  ;;  %289 = vrot.lane.b32.xlu2 %v255_v11, %s4273_s8 }
  0x41   : > { %v271_v16 = vld.sshfl [vmem:[#allocation1 + $0x20] sm:$0xff pattern:$0x73625140]  ;;  %v273_v17 = vld.sshfl [vmem:[#allocation1 + $0x28] sm:$0xff pattern:$0x73625140] }
  0x42   : > { %v275_v18 = vld.sshfl [vmem:[#allocation1 + $0x30] sm:$0xff pattern:$0x73625140]  ;;  %322 = vst [vmem:[#allocation1] ss:$4 sm:$0xff] %v4392_v0 }
  0x43   : > { %605 = vst [vmem:[#allocation1 + $0x20] ss:$4 sm:$0xff] %v4394_v1 }
  0x46   : > { %291 = vrot.lane.b32.xlu0 %v257_v8, %s4273_s8  ;;  %287 = vrot.lane.b32.xlu1 %v253_v10, %s4273_s8 }
  0x48   : > { %293 = vrot.lane.b32.xlu2 %v263_v14, %s4273_s8 }
  0x49   : > { %v323_v23 = vld.sshfl [vmem:[#allocation1] sm:$0xff pattern:$0x73625140] }
  0x4a   : > { %v4415_v19 = vld.sshfl [vmem:[#allocation1 + $0x20] sm:$0xff pattern:$0x73625140]  ;;  %v4417_v20 = vld.sshfl [vmem:[#allocation1 + $0x28] sm:$0xff pattern:$0x73625140] }
  0x4b   : > { %v4419_v21 = vld.sshfl [vmem:[#allocation1 + $0x30] sm:$0xff pattern:$0x73625140]  ;;  %v4421_v22 = vld.sshfl [vmem:[#allocation1 + $0x38] sm:$0xff pattern:$0x73625140] }
  0x4c   : > { %615 = vst [vmem:[#allocation1 + $0x20] ss:$4 sm:$0xff] %v4402_v6 }
  0x4d   : > { %603 = vst [vmem:[#allocation1] ss:$4 sm:$0xff] %v4392_v0 }
  0x4e   : > { %297 = vrot.lane.b32.xlu0 %v267_v12, %s4273_s8  ;;  %299 = vrot.lane.b32.xlu1 %v269_v13, %s4273_s8 }
  0x50   : > { %295 = vrot.lane.b32.xlu2 %v265_v15, %s4273_s8 }
  0x53   : > { %v4452_v34 = vld.sshfl [vmem:[#allocation1 + $0x20] sm:$0xff pattern:$0x73625140]  ;;  %v4454_v35 = vld.sshfl [vmem:[#allocation1 + $0x28] sm:$0xff pattern:$0x73625140] }
  0x54   : > { %v4428_v24 = vld.sshfl [vmem:[#allocation1] sm:$0xff pattern:$0x73625140]  ;;  %v4430_v25 = vld.sshfl [vmem:[#allocation1 + $0x8] sm:$0xff pattern:$0x73625140] }
  0x55   : > { %v4432_v26 = vld.sshfl [vmem:[#allocation1 + $0x10] sm:$0xff pattern:$0x73625140]  ;;  %v4434_v27 = vld.sshfl [vmem:[#allocation1 + $0x18] sm:$0xff pattern:$0x73625140] }
  0x56   : > { %301 = vrot.lane.b32.xlu0 %v271_v16, %s4273_s8  ;;  %305 = vrot.lane.b32.xlu1 %v275_v18, %s4273_s8  ;;  %614 = vst [vmem:[#allocation1] ss:$4 sm:$0xff] %v4398_v2  ;;  %v4456_v36 = vld.sshfl [vmem:[#allocation1 + $0x30] sm:$0xff pattern:$0x73625140]  ;;  %v626_v50 = vsel %vm343_vm1, %v4428_v24, 0 }
  0x57   : > { %868 = vst [vmem:[#allocation1 + $0x20] ss:$4 sm:$0xff] %v4394_v1 }
  0x58   : > { %325 = vrot.lane.b32.xlu2 %v323_v23, %s4273_s8 }
  0x5d   : > { %v4440_v28 = vld.sshfl [vmem:[#allocation1] sm:$0xff pattern:$0x73625140]  ;;  %v4442_v29 = vld.sshfl [vmem:[#allocation1 + $0x8] sm:$0xff pattern:$0x73625140] }
  0x5e   : > { %303 = vrot.lane.b32.xlu0 %v273_v17, %s4273_s8  ;;  %v4445_v30 = vld.sshfl [vmem:[#allocation1 + $0x10] sm:$0xff pattern:$0x73625140]  ;;  %v4447_v31 = vld.sshfl [vmem:[#allocation1 + $0x18] sm:$0xff pattern:$0x73625140] }
  0x5f   : > { %866 = vst [vmem:[#allocation1] ss:$4 sm:$0xff] %v4392_v0  ;;  %v877_v38 = vld.sshfl [vmem:[#allocation1 + $0x20] sm:$0xff pattern:$0x73625140]  ;;  %s4277_s8 = smov 108  }
  0x60   : > { %v881_v40 = vld.sshfl [vmem:[#allocation1 + $0x30] sm:$0xff pattern:$0x73625140]  ;;  %v883_v43 = vld.sshfl [vmem:[#allocation1 + $0x38] sm:$0xff pattern:$0x73625140] }
  0x61   : > { %v879_v48 = vld.sshfl [vmem:[#allocation1 + $0x28] sm:$0xff pattern:$0x73625140] }
  0x62   : > { %886 = vst [vmem:[#allocation1 + $0x20] ss:$4 sm:$0xff] %v4402_v6 }
  0x66   : > { %v873_v32 = vld.sshfl [vmem:[#allocation1 + $0x10] sm:$0xff pattern:$0x73625140]  ;;  %v869_v33 = vld.sshfl [vmem:[#allocation1] sm:$0xff pattern:$0x73625140] }
  0x67   : > { %905 = vrot.lane.b32.xlu0 %v873_v32, %s4274_s25  ;;  %901 = vrot.lane.b32.xlu1 %v869_v33, %s4274_s25  ;;  %v875_v37 = vld.sshfl [vmem:[#allocation1 + $0x18] sm:$0xff pattern:$0x73625140]  ;;  %v871_v41 = vld.sshfl [vmem:[#allocation1 + $0x8] sm:$0xff pattern:$0x73625140] }
  0x68   : > { %903 = vrot.lane.b32.xlu2 %v871_v41, %s4274_s25  ;;  %885 = vst [vmem:[#allocation1] ss:$4 sm:$0xff] %v4398_v2 }
  0x69   : > { %v895_v4 = vld.sshfl [vmem:[#allocation1 + $0x20] sm:$0xff pattern:$0x73625140]  ;;  %v897_v5 = vld.sshfl [vmem:[#allocation1 + $0x28] sm:$0xff pattern:$0x73625140] }
  0x6a   : > { %v899_v9 = vld.sshfl [vmem:[#allocation1 + $0x30] sm:$0xff pattern:$0x73625140] }
  0x6b   : > { %1252 = vst [vmem:[#allocation1 + $0x20] ss:$4 sm:$0xff] %v4394_v1 }
  0x6f   : > { %907 = vrot.lane.b32.xlu0 %v875_v37, %s4274_s25  ;;  %909 = vrot.lane.b32.xlu1 %v877_v38, %s4274_s25  ;;  %v889_v44 = vld.sshfl [vmem:[#allocation1 + $0x8] sm:$0xff pattern:$0x73625140]  ;;  %v891_v58 = vld.sshfl [vmem:[#allocation1 + $0x10] sm:$0xff pattern:$0x73625140] }
  0x70   : > { %911 = vrot.lane.b32.xlu2 %v879_v48, %s4274_s25  ;;  %v893_v59 = vld.sshfl [vmem:[#allocation1 + $0x18] sm:$0xff pattern:$0x73625140]  ;;  %v887_v7 = vld.sshfl [vmem:[#allocation1] sm:$0xff pattern:$0x73625140] }
  0x71   : > { %946 = vst [vmem:[#allocation1] ss:$4 sm:$0xff] %v4392_v0 }
  0x77   : > { %913 = vrot.lane.b32.xlu1 %v881_v40, %s4274_s25  ;;  %919 = vrot.lane.b32.xlu0 %v889_v44, %s4274_s25 }
  0x78   : > { %917 = vrot.lane.b32.xlu2 %v887_v7, %s4274_s25  ;;  %v947_v33 = vld.sshfl [vmem:[#allocation1] sm:$0xff pattern:$0x73625140] }
  0x79   : > { %1250 = vst [vmem:[#allocation1] ss:$4 sm:$0xff] %v4392_v0 }
  0x7f   : > { %915 = vrot.lane.b32.xlu1 %v883_v43, %s4274_s25  ;;  %925 = vrot.lane.b32.xlu0 %v895_v4, %s4274_s25 }
  0x80   : > { %921 = vrot.lane.b32.xlu2 %v891_v58, %s4274_s25  ;;  %v1255_v43 = vld.sshfl [vmem:[#allocation1 + $0x8] sm:$0xff pattern:$0x73625140]  ;;  %v1253_v49 = vld.sshfl [vmem:[#allocation1] sm:$0xff pattern:$0x73625140] }
  0x87   : > { %927 = vrot.lane.b32.xlu1 %v897_v5, %s4274_s25  ;;  %929 = vrot.lane.b32.xlu0 %v899_v9, %s4274_s25  ;;  %v636_v9 = vsel %vm343_vm1, %v4417_v20, 0 }
  0x88   : > { %923 = vrot.lane.b32.xlu2 %v893_v59, %s4274_s25  ;;  %v632_v59 = vsel %vm343_vm1, %v4434_v27, 0  ;;  %v1267_v27 = vld.sshfl [vmem:[#allocation1 + $0x38] sm:$0xff pattern:$0x73625140] }
  0x8f   : > { %1287 = vrot.lane.b32.xlu1 %v1255_v43, %s4275_s13  ;;  %949 = vrot.lane.b32.xlu0 %v947_v33, %s4274_s25 }
  0x92   : > { %v286_v39 = vpop.permute.xlu2 %285 }
  0x97   : > { %1285 = vrot.lane.b32.xlu1 %v1253_v49, %s4275_s13 }
  0x9a   : > { %v290_v42 = vpop.permute.xlu2 %289 }
  0xa2   : > { %v294_v47 = vpop.permute.xlu2 %293 }
  0xa8   : > { %v282_v45 = vpop.permute.xlu0 %281  ;;  %v278_v46 = vpop.permute.xlu1 %277 }
  0xaa   : > { %v296_v3 = vpop.permute.xlu2 %295 }
  0xab   : > { %v316_v8 = vsel %vm307_vm0, %v294_v47, %v296_v3 }
  0xac   : > { %v369_v12 = vsel %vm343_vm1, %v316_v8, 0  ;;  %v640_v8 = vsel %vm343_vm1, %v4421_v22, 0 }
  0xb0   : > { %v284_v51 = vpop.permute.xlu0 %283  ;;  %v280_v52 = vpop.permute.xlu1 %279 }
  0xb1   : > { %v308_v54 = vsel %vm307_vm0, %v278_v46, %v280_v52  ;;  %v309_v55 = vsel %vm307_vm0, %v280_v52, %v282_v45  ;;  %v310_v56 = vsel %vm307_vm0, %v282_v45, %v284_v51  ;;  %v311_v57 = vsel %vm307_vm0, %v284_v51, %v286_v39 }
  0xb2   : > { %v345_v60 = vsel %vm343_vm1, %v308_v54, 0  ;;  %v348_v61 = vsel %vm343_vm1, %v309_v55, 0  ;;  %v351_v62 = vsel %vm343_vm1, %v310_v56, 0  ;;  %v354_v63 = vsel %vm343_vm1, %v311_v57, 0  ;;  %v326_v44 = vpop.permute.xlu2 %325 }
  0xb3   : > { %395 = vmatpush.bf16.msra.mxu0 %v345_v60  ;;  %409 = vmatpush.bf16.msra.mxu1 %v348_v61  ;;  %v1263_v54 = vld.sshfl [vmem:[#allocation1 + $0x28] sm:$0xff pattern:$0x73625140]  ;;  %v628_v60 = vsel %vm343_vm1, %v4430_v25, 0  ;;  %v630_v61 = vsel %vm343_vm1, %v4432_v26, 0 }
  0xb4   : > { %423 = vmatpush.bf16.msra.mxu2 %v351_v62  ;;  %437 = vmatpush.bf16.msra.mxu3 %v354_v63  ;;  %v634_v62 = vsel %vm343_vm1, %v4415_v19, 0  ;;  %v1257_v25 = vld.sshfl [vmem:[#allocation1 + $0x10] sm:$0xff pattern:$0x73625140]  ;;  %v3934_v19 = vld [vmem:[%s6037_s1] sm:$0xf] }
  0xb5   : > { %1295 = vrot.lane.b32.xlu0 %v1263_v54, %s4275_s13  ;;  %v1265_v63 = vld.sshfl [vmem:[#allocation1 + $0x30] sm:$0xff pattern:$0x73625140]  ;;  %1289 = vrot.lane.b32.xlu2 %v1257_v25, %s4275_s13  ;;  %v4105_v26 = vld [vmem:[%s6037_s1] sm:$0x70] }
  0xb6   : > { %3917 = vmatmul.msk.bf16.vlgmr.msra.gmra.mxu0 %vm339_vm2, %v4474_v53  ;;  %3918 = vmatmul.msk.bf16.vlgmr.msra.gmra.mxu1 %vm339_vm2, %v4474_v53  ;;  %v4565_v7 = vor.u32 %v4105_v26, %v3934_v19 }
  0xb7   : > { %3919 = vmatmul.msk.bf16.vlgmr.msra.gmra.mxu2 %vm339_vm2, %v4474_v53  ;;  %3920 = vmatmul.msk.bf16.vlgmr.msra.gmra.mxu3 %vm339_vm2, %v4474_v53 }
  0xb8   : > { %v292_v10 = vpop.permute.xlu0 %291  ;;  %v288_v11 = vpop.permute.xlu1 %287  ;;  %1297 = vrot.lane.b32.xlu1 %v1265_v63, %s4275_s13 }
  0xb9   : > { %v312_v13 = vsel %vm307_vm0, %v286_v39, %v288_v11  ;;  %v313_v14 = vsel %vm307_vm0, %v288_v11, %v290_v42  ;;  %v314_v15 = vsel %vm307_vm0, %v290_v42, %v292_v10  ;;  %v315_v16 = vsel %vm307_vm0, %v292_v10, %v294_v47 }
  0xba   : > { %v357_v17 = vsel %vm343_vm1, %v312_v13, 0  ;;  %v360_v18 = vsel %vm343_vm1, %v313_v14, 0  ;;  %v363_v23 = vsel %vm343_vm1, %v314_v15, 0  ;;  %v366_v32 = vsel %vm343_vm1, %v315_v16, 0 }
  0xbb   : > { %451 = vmatpush.bf16.msrb.mxu0 %v357_v17  ;;  %465 = vmatpush.bf16.msrb.mxu1 %v360_v18  ;;  %v638_v10 = vsel %vm343_vm1, %v4419_v21, 0  ;;  %v642_v11 = vsel %vm343_vm1, %v4440_v28, 0  ;;  %v644_v13 = vsel %vm343_vm1, %v4442_v29, 0  ;;  %v646_v14 = vsel %vm343_vm1, %v4445_v30, 0 }
  0xbc   : > { %479 = vmatpush.bf16.msrb.mxu2 %v363_v23  ;;  %493 = vmatpush.bf16.msrb.mxu3 %v366_v32  ;;  %v650_v15 = vsel %vm343_vm1, %v4452_v34, 0 }
  0xbd   : > { %1299 = vrot.lane.b32.xlu0 %v1267_v27, %s4275_s13 }
  0xbf   : > { %507 = vmatpush.bf16.msra.mxu0 %v369_v12  ;;  %v1261_v12 = vld.sshfl [vmem:[#allocation1 + $0x20] sm:$0xff pattern:$0x73625140] }
  0xc0   : > { %v298_v37 = vpop.permute.xlu0 %297  ;;  %v300_v38 = vpop.permute.xlu1 %299  ;;  %1270 = vst [vmem:[#allocation1 + $0x20] ss:$4 sm:$0xff] %v4402_v6 }
  0xc1   : > { %v317_v39 = vsel %vm307_vm0, %v296_v3, %v298_v37  ;;  %v318_v40 = vsel %vm307_vm0, %v298_v37, %v300_v38  ;;  %v1259_v3 = vld.sshfl [vmem:[#allocation1 + $0x18] sm:$0xff pattern:$0x73625140]  ;;  %v652_v37 = vsel %vm343_vm1, %v4454_v35, 0 }
  0xc2   : > { %v372_v41 = vsel %vm343_vm1, %v317_v39, 0  ;;  %v375_v42 = vsel %vm343_vm1, %v318_v40, 0  ;;  %1269 = vst [vmem:[#allocation1] ss:$4 sm:$0xff] %v4398_v2  ;;  %1291 = vrot.lane.b32.xlu2 %v1259_v3, %s4275_s13  ;;  %v904_v30 = vpop.permute.xlu2 %903 }
  0xc3   : > { %521 = vmatpush.bf16.msra.mxu1 %v372_v41  ;;  %535 = vmatpush.bf16.msra.mxu2 %v375_v42 }
  0xc6   : > { %3921 = vmatmul.msk.bf16.vlgmr.msrb.gmra.mxu0 %vm339_vm2, %v4474_v53  ;;  %3922 = vmatmul.msk.bf16.vlgmr.msrb.gmra.mxu1 %vm339_vm2, %v4474_v53 }
  0xc7   : > { %3923 = vmatmul.msk.bf16.vlgmr.msrb.gmra.mxu2 %vm339_vm2, %v4474_v53  ;;  %3924 = vmatmul.msk.bf16.vlgmr.msrb.gmra.mxu3 %vm339_vm2, %v4474_v53  ;;  %v1279_v21 = vld.sshfl [vmem:[#allocation1 + $0x20] sm:$0xff pattern:$0x73625140]  ;;  %v1283_v28 = vld.sshfl [vmem:[#allocation1 + $0x30] sm:$0xff pattern:$0x73625140] }
  0xc8   : > { %v302_v45 = vpop.permute.xlu0 %301  ;;  %v306_v46 = vpop.permute.xlu1 %305  ;;  %v1281_v40 = vld.sshfl [vmem:[#allocation1 + $0x28] sm:$0xff pattern:$0x73625140] }
  0xc9   : > { %v319_v47 = vsel %vm307_vm0, %v300_v38, %v302_v45  ;;  %v330_v48 = vsel %vm307_vm0, %v306_v46, %v326_v44  ;;  %v1273_v4 = vld.sshfl [vmem:[#allocation1 + $0x8] sm:$0xff pattern:$0x73625140]  ;;  %v1271_v5 = vld.sshfl [vmem:[#allocation1] sm:$0xff pattern:$0x73625140] }
  0xca   : > { %v378_v51 = vsel %vm343_vm1, %v319_v47, 0  ;;  %v386_v52 = vsel %vm343_vm1, %v330_v48, 0  ;;  %1301 = vrot.lane.b32.xlu0 %v1271_v5, %s4275_s13  ;;  %1303 = vrot.lane.b32.xlu1 %v1273_v4, %s4275_s13  ;;  %v1275_v22 = vld.sshfl [vmem:[#allocation1 + $0x10] sm:$0xff pattern:$0x73625140]  ;;  %v654_v38 = vsel %vm343_vm1, %v4456_v36, 0  ;;  %v912_v35 = vpop.permute.xlu2 %911 }
  0xcb   : > { %549 = vmatpush.bf16.msra.mxu3 %v378_v51  ;;  %591 = vmatpush.bf16.msrb.mxu2 %v386_v52  ;;  %v1277_v20 = vld.sshfl [vmem:[#allocation1 + $0x18] sm:$0xff pattern:$0x73625140]  ;;  %1636 = vst [vmem:[#allocation1 + $0x20] ss:$4 sm:$0xff] %v4394_v1 }
  0xcc   : > { %1330 = vst [vmem:[#allocation1] ss:$4 sm:$0xff] %v4392_v0  ;;  %1293 = vrot.lane.b32.xlu2 %v1261_v12, %s4275_s13 }
  0xcf   : > { %663 = vmatpush.bf16.msrb.mxu3 %v626_v50 }
  0xd0   : > { %v304_v55 = vpop.permute.xlu0 %303 }
  0xd1   : > { %v320_v56 = vsel %vm307_vm0, %v302_v45, %v304_v55  ;;  %v321_v57 = vsel %vm307_vm0, %v304_v55, %v306_v46 }
  0xd2   : > { %v381_v58 = vsel %vm343_vm1, %v320_v56, 0  ;;  %v384_v24 = vsel %vm343_vm1, %v321_v57, 0  ;;  %1307 = vrot.lane.b32.xlu1 %v1277_v20, %s4275_s13  ;;  %1313 = vrot.lane.b32.xlu0 %v1283_v28, %s4275_s13  ;;  %v1645_v36 = vld.sshfl [vmem:[#allocation1 + $0x20] sm:$0xff pattern:$0x73625140]  ;;  %v918_v52 = vpop.permute.xlu2 %917 }
  0xd3   : > { %563 = vmatpush.bf16.msrb.mxu0 %v381_v58  ;;  %577 = vmatpush.bf16.msrb.mxu1 %v384_v24  ;;  %v1647_v54 = vld.sshfl [vmem:[#allocation1 + $0x28] sm:$0xff pattern:$0x73625140]  ;;  %v1651_v55 = vld.sshfl [vmem:[#allocation1 + $0x38] sm:$0xff pattern:$0x73625140] }
  0xd4   : > { %1305 = vrot.lane.b32.xlu2 %v1275_v22, %s4275_s13  ;;  %v3955_v24 = vld [vmem:[%s6037_s1 + $0x10] sm:$0xf] }
  0xd6   : > { %3925 = vmatmul.msk.bf16.vlgmr.msra.gmra.mxu0 %vm339_vm2, %v4474_v53  ;;  %3926 = vmatmul.msk.bf16.vlgmr.msra.gmra.mxu1 %vm339_vm2, %v4474_v53 }
  0xd7   : > { %3927 = vmatmul.msk.bf16.vlgmr.msra.gmra.mxu2 %vm339_vm2, %v4474_v53  ;;  %3928 = vmatmul.msk.bf16.vlgmr.msra.gmra.mxu3 %vm339_vm2, %v4474_v53 }
  0xd8   : > { %705 = vmatpush.bf16.msra.mxu2 %v632_v59  ;;  %677 = vmatpush.bf16.msra.mxu0 %v628_v60  ;;  %v4107_v59 = vld [vmem:[%s6037_s1 + $0x10] sm:$0x70] }
  0xd9   : > { %691 = vmatpush.bf16.msra.mxu1 %v630_v61  ;;  %719 = vmatpush.bf16.msra.mxu3 %v634_v62  ;;  %v902_v29 = vpop.permute.xlu1 %901  ;;  %v906_v16 = vpop.permute.xlu0 %905  ;;  %v4659_v27 = vor.u32 %v4107_v59, %v3955_v24 }
  0xda   : > { %1309 = vrot.lane.b32.xlu1 %v1279_v21, %s4275_s13  ;;  %v933_v34 = vsel %vm931_vm3, %v904_v30, %v906_v16  ;;  %v932_v23 = vsel %vm931_vm3, %v902_v29, %v904_v30  ;;  %v922_v60 = vpop.permute.xlu2 %921 }
  0xdb   : > { %v970_v32 = vsel %vm343_vm1, %v933_v34, 0  ;;  %v967_v33 = vsel %vm343_vm1, %v932_v23, 0 }
  0xdc   : > { %1311 = vrot.lane.b32.xlu2 %v1281_v40, %s4275_s13 }
  0xe1   : > { %v910_v39 = vpop.permute.xlu1 %909  ;;  %v908_v42 = vpop.permute.xlu0 %907 }
  0xe2   : > { %v934_v44 = vsel %vm931_vm3, %v906_v16, %v908_v42  ;;  %v935_v45 = vsel %vm931_vm3, %v908_v42, %v910_v39  ;;  %v936_v46 = vsel %vm931_vm3, %v910_v39, %v912_v35  ;;  %v924_v22 = vpop.permute.xlu2 %923 }
  0xe3   : > { %v973_v48 = vsel %vm343_vm1, %v934_v44, 0  ;;  %v976_v49 = vsel %vm343_vm1, %v935_v45, 0  ;;  %v979_v50 = vsel %vm343_vm1, %v936_v46, 0  ;;  %v942_v28 = vsel %vm931_vm3, %v922_v60, %v924_v22 }
  0xe4   : > { %v997_v29 = vsel %vm343_vm1, %v942_v28, 0 }
  0xe6   : > { %3929 = vmatmul.msk.bf16.vlgmr.msrb.gmra.mxu0 %vm339_vm2, %v4474_v53  ;;  %3930 = vmatmul.msk.bf16.vlgmr.msrb.gmra.mxu1 %vm339_vm2, %v4474_v53 }
  0xe7   : > { %3931 = vmatmul.msk.bf16.vlgmr.msrb.gmra.mxu2 %vm339_vm2, %v4474_v53  ;;  %3936 = vmatmul.msk.bf16.vlgmr.msrb.gmra.mxu3 %vm339_vm2, %v4565_v7  ;;  %v648_v53 = vsel %vm343_vm1, %v4447_v31, 0  ;;  %v1331_v31 = vld.sshfl [vmem:[#allocation1] sm:$0xff pattern:$0x73625140] }
  0xe8   : > { %761 = vmatpush.bf16.msrb.mxu2 %v640_v8  ;;  %733 = vmatpush.bf16.msrb.mxu0 %v636_v9  ;;  %1634 = vst [vmem:[#allocation1] ss:$4 sm:$0xff] %v4392_v0  ;;  %v1649_v8 = vld.sshfl [vmem:[#allocation1 + $0x30] sm:$0xff pattern:$0x73625140] }
  0xe9   : > { %747 = vmatpush.bf16.msrb.mxu1 %v638_v10  ;;  %775 = vmatpush.bf16.msrb.mxu3 %v642_v11  ;;  %v914_v43 = vpop.permute.xlu1 %913  ;;  %v920_v57 = vpop.permute.xlu0 %919  ;;  %1654 = vst [vmem:[#allocation1 + $0x20] ss:$4 sm:$0xff] %v4402_v6 }
  0xea   : > { %1333 = vrot.lane.b32.xlu2 %v1331_v31, %s4275_s13  ;;  %v937_v47 = vsel %vm931_vm3, %v912_v35, %v914_v43  ;;  %v940_v25 = vsel %vm931_vm3, %v918_v52, %v920_v57  ;;  %v941_v63 = vsel %vm931_vm3, %v920_v57, %v922_v60 }
  0xeb   : > { %v982_v51 = vsel %vm343_vm1, %v937_v47, 0  ;;  %v991_v4 = vsel %vm343_vm1, %v940_v25, 0  ;;  %v994_v5 = vsel %vm343_vm1, %v941_v63, 0 }
  0xef   : > { %v1641_v17 = vld.sshfl [vmem:[#allocation1 + $0x10] sm:$0xff pattern:$0x73625140]  ;;  %v1643_v18 = vld.sshfl [vmem:[#allocation1 + $0x18] sm:$0xff pattern:$0x73625140] }
  0xf0   : > { %1673 = vrot.lane.b32.xlu0 %v1641_v17, %s4276_s29  ;;  %1675 = vrot.lane.b32.xlu1 %v1643_v18, %s4276_s29  ;;  %v1639_v41 = vld.sshfl [vmem:[#allocation1 + $0x8] sm:$0xff pattern:$0x73625140]  ;;  %v1637_v56 = vld.sshfl [vmem:[#allocation1] sm:$0xff pattern:$0x73625140] }
  0xf1   : > { %1653 = vst [vmem:[#allocation1] ss:$4 sm:$0xff] %v4398_v2  ;;  %v916_v58 = vpop.permute.xlu1 %915  ;;  %v926_v9 = vpop.permute.xlu0 %925  ;;  %v1663_v20 = vld.sshfl [vmem:[#allocation1 + $0x20] sm:$0xff pattern:$0x73625140] }
  0xf2   : > { %1669 = vrot.lane.b32.xlu2 %v1637_v56, %s4276_s29  ;;  %v938_v61 = vsel %vm931_vm3, %v914_v43, %v916_v58  ;;  %v939_v62 = vsel %vm931_vm3, %v916_v58, %v918_v52  ;;  %v1665_v30 = vld.sshfl [vmem:[#allocation1 + $0x28] sm:$0xff pattern:$0x73625140]  ;;  %v1667_v23 = vld.sshfl [vmem:[#allocation1 + $0x30] sm:$0xff pattern:$0x73625140] }
  0xf3   : > { %v985_v19 = vsel %vm343_vm1, %v938_v61, 0  ;;  %v988_v26 = vsel %vm343_vm1, %v939_v62, 0  ;;  %2020 = vst [vmem:[#allocation1 + $0x20] ss:$4 sm:$0xff] %v4394_v1 }
  0xf6   : > { %3937 = vmatmul.msk.bf16.vlgmr.msra.gmra.mxu0 %vm339_vm2, %v4565_v7  ;;  %3938 = vmatmul.msk.bf16.vlgmr.msra.gmra.mxu1 %vm339_vm2, %v4565_v7 }
  0xf7   : > { %3939 = vmatmul.msk.bf16.vlgmr.msra.gmra.mxu2 %vm339_vm2, %v4565_v7  ;;  %3940 = vmatmul.msk.bf16.vlgmr.msra.gmra.mxu3 %vm339_vm2, %v4565_v7 }
  0xf8   : > { %817 = vmatpush.bf16.msra.mxu2 %v648_v53  ;;  %789 = vmatpush.bf16.msra.mxu0 %v644_v13  ;;  %v1659_v3 = vld.sshfl [vmem:[#allocation1 + $0x10] sm:$0xff pattern:$0x73625140]  ;;  %v1661_v10 = vld.sshfl [vmem:[#allocation1 + $0x18] sm:$0xff pattern:$0x73625140]  ;;  %v943_v53 = vsel %vm931_vm3, %v924_v22, %v926_v9 }
  0xf9   : > { %803 = vmatpush.bf16.msra.mxu1 %v646_v14  ;;  %831 = vmatpush.bf16.msra.mxu3 %v650_v15  ;;  %v1655_v11 = vld.sshfl [vmem:[#allocation1] sm:$0xff pattern:$0x73625140]  ;;  %v1657_v12 = vld.sshfl [vmem:[#allocation1 + $0x8] sm:$0xff pattern:$0x73625140]  ;;  %v930_v21 = vpop.permute.xlu0 %929 }
  0xfa   : > { %1671 = vrot.lane.b32.xlu0 %v1639_v41, %s4276_s29  ;;  %1677 = vrot.lane.b32.xlu1 %v1645_v36, %s4276_s29  ;;  %1714 = vst [vmem:[#allocation1] ss:$4 sm:$0xff] %v4392_v0  ;;  %v1000_v16 = vsel %vm343_vm1, %v943_v53, 0  ;;  %v2031_v58 = vld.sshfl [vmem:[#allocation1 + $0x28] sm:$0xff pattern:$0x73625140] }
  0xfb   : > { %1681 = vrot.lane.b32.xlu2 %v1649_v8, %s4276_s29  ;;  %v2029_v24 = vld.sshfl [vmem:[#allocation1 + $0x20] sm:$0xff pattern:$0x73625140]  ;;  %v2035_v25 = vld.sshfl [vmem:[#allocation1 + $0x38] sm:$0xff pattern:$0x73625140] }
  0xfc   : > { %v2033_v63 = vld.sshfl [vmem:[#allocation1 + $0x30] sm:$0xff pattern:$0x73625140] }
  0xfd   : > { %2038 = vst [vmem:[#allocation1 + $0x20] ss:$4 sm:$0xff] %v4402_v6 }
 0x101   : > { %v950_v41 = vpop.permute.xlu0 %949 }
 0x102   : > { %1679 = vrot.lane.b32.xlu1 %v1647_v54, %s4276_s29  ;;  %1683 = vrot.lane.b32.xlu0 %v1651_v55, %s4276_s29  ;;  %v954_v46 = vsel %vm931_vm3, %v930_v21, %v950_v41 }
 0x103   : > { %1685 = vrot.lane.b32.xlu2 %v1655_v11, %s4276_s29  ;;  %v1008_v52 = vsel %vm343_vm1, %v954_v46, 0 }
 0x106   : > { %3941 = vmatmul.msk.bf16.vlgmr.msrb.gmra.mxu0 %vm339_vm2, %v4565_v7  ;;  %3942 = vmatmul.msk.bf16.vlgmr.msrb.gmra.mxu1 %vm339_vm2, %v4565_v7 }
 0x107   : > { %3943 = vmatmul.msk.bf16.vlgmr.msrb.gmra.mxu2 %vm339_vm2, %v4565_v7  ;;  %3944 = vmatmul.msk.bf16.vlgmr.msrb.gmra.mxu3 %vm339_vm2, %v4565_v7 }
 0x108   : > { %1017 = vmatpush.bf16.msrb.mxu2 %v967_v33  ;;  %1031 = vmatpush.bf16.msrb.mxu3 %v970_v32  ;;  %v1715_v33 = vld.sshfl [vmem:[#allocation1] sm:$0xff pattern:$0x73625140] }
 0x109   : > { %845 = vmatpush.bf16.msrb.mxu0 %v652_v37  ;;  %859 = vmatpush.bf16.msrb.mxu1 %v654_v38  ;;  %2018 = vst [vmem:[#allocation1] ss:$4 sm:$0xff] %v4392_v0 }
 0x10a   : > { %1689 = vrot.lane.b32.xlu0 %v1659_v3, %s4276_s29  ;;  %1691 = vrot.lane.b32.xlu1 %v1661_v10, %s4276_s29 }
 0x10b   : > { %1687 = vrot.lane.b32.xlu2 %v1657_v12, %s4276_s29 }
 0x10f   : > { %v1290_v34 = vpop.permute.xlu2 %1289 }
 0x110   : > { %v2027_v36 = vld.sshfl [vmem:[#allocation1 + $0x18] sm:$0xff pattern:$0x73625140]  ;;  %v2021_v42 = vld.sshfl [vmem:[#allocation1] sm:$0xff pattern:$0x73625140] }
 0x111   : > { %v2023_v3 = vld.sshfl [vmem:[#allocation1 + $0x8] sm:$0xff pattern:$0x73625140] }
 0x112   : > { %1693 = vrot.lane.b32.xlu0 %v1663_v20, %s4276_s29  ;;  %1697 = vrot.lane.b32.xlu1 %v1667_v23, %s4276_s29  ;;  %v3976_v23 = vld [vmem:[%s6037_s1 + $0x18] sm:$0xf] }
 0x113   : > { %1717 = vrot.lane.b32.xlu2 %v1715_v33, %s4276_s29 }
 0x116   : > { %3945 = vmatmul.msk.bf16.vlgmr.msra.gmra.mxu0 %vm339_vm2, %v4565_v7  ;;  %3946 = vmatmul.msk.bf16.vlgmr.msra.gmra.mxu1 %vm339_vm2, %v4565_v7 }
 0x117   : > { %3947 = vmatmul.msk.bf16.vlgmr.msra.gmra.mxu2 %vm339_vm2, %v4565_v7  ;;  %3948 = vmatmul.msk.bf16.vlgmr.msra.gmra.mxu3 %vm339_vm2, %v4565_v7 }
 0x118   : > { %1045 = vmatpush.bf16.msra.mxu0 %v973_v48  ;;  %1059 = vmatpush.bf16.msra.mxu1 %v976_v49 }
 0x119   : > { %1073 = vmatpush.bf16.msra.mxu2 %v979_v50  ;;  %1087 = vmatpush.bf16.msra.mxu3 %v982_v51 }
 0x11a   : > { %1695 = vrot.lane.b32.xlu0 %v1665_v30, %s4276_s29  ;;  %2053 = vrot.lane.b32.xlu1 %v2021_v42, %s4277_s8 }
 0x11b   : > { %2055 = vrot.lane.b32.xlu2 %v2023_v3, %s4277_s8 }
 0x11c   : > { %v1292_v43 = vpop.permute.xlu2 %1291 }
 0x11d   : > { %v1318_v51 = vsel %vm1315_vm4, %v1290_v34, %v1292_v43 }
 0x11e   : > { %v1357_v56 = vsel %vm343_vm1, %v1318_v51, 0 }
 0x122   : > { %2059 = vrot.lane.b32.xlu0 %v2027_v36, %s4277_s8  ;;  %2061 = vrot.lane.b32.xlu1 %v2029_v24, %s4277_s8 }
 0x126   : > { %3949 = vmatmul.msk.bf16.vlgmr.msrb.gmra.mxu0 %vm339_vm2, %v4565_v7  ;;  %3950 = vmatmul.msk.bf16.vlgmr.msrb.gmra.mxu1 %vm339_vm2, %v4565_v7  ;;  %v928_v7 = vpop.permute.xlu1 %927 }
 0x127   : > { %3957 = vmatmul.msk.bf16.vlgmr.msrb.gmra.mxu2 %vm339_vm2, %v4659_v27  ;;  %3958 = vmatmul.msk.bf16.vlgmr.msrb.gmra.mxu3 %vm339_vm2, %v4659_v27  ;;  %v944_v15 = vsel %vm931_vm3, %v926_v9, %v928_v7  ;;  %v945_v31 = vsel %vm931_vm3, %v928_v7, %v930_v21  ;;  %v1296_v57 = vpop.permute.xlu0 %1295 }
 0x128   : > { %1101 = vmatpush.bf16.msrb.mxu0 %v985_v19  ;;  %1115 = vmatpush.bf16.msrb.mxu1 %v988_v26  ;;  %v1003_v17 = vsel %vm343_vm1, %v944_v15, 0  ;;  %v1006_v18 = vsel %vm343_vm1, %v945_v31, 0  ;;  %v1294_v26 = vpop.permute.xlu2 %1293  ;;  %v2025_v31 = vld.sshfl [vmem:[#allocation1 + $0x10] sm:$0xff pattern:$0x73625140] }
 0x129   : > { %1129 = vmatpush.bf16.msrb.mxu2 %v991_v4  ;;  %1143 = vmatpush.bf16.msrb.mxu3 %v994_v5  ;;  %v1319_v9 = vsel %vm1315_vm4, %v1292_v43, %v1294_v26  ;;  %v1320_v10 = vsel %vm1315_vm4, %v1294_v26, %v1296_v57  ;;  %2037 = vst [vmem:[#allocation1] ss:$4 sm:$0xff] %v4398_v2 }
 0x12a   : > { %2063 = vrot.lane.b32.xlu0 %v2031_v58, %s4277_s8  ;;  %2067 = vrot.lane.b32.xlu1 %v2035_v25, %s4277_s8  ;;  %v1360_v12 = vsel %vm343_vm1, %v1319_v9, 0  ;;  %v1363_v21 = vsel %vm343_vm1, %v1320_v10, 0 }
 0x12b   : > { %2057 = vrot.lane.b32.xlu2 %v2025_v31, %s4277_s8 }
 0x12e   : > { %v1288_v32 = vpop.permute.xlu1 %1287 }
 0x12f   : > { %v1317_v50 = vsel %vm1315_vm4, %v1288_v32, %v1290_v34  ;;  %v1300_v4 = vpop.permute.xlu0 %1299 }
 0x130   : > { %v1354_v55 = vsel %vm343_vm1, %v1317_v50, 0  ;;  %v2041_v34 = vld.sshfl [vmem:[#allocation1 + $0x8] sm:$0xff pattern:$0x73625140] }
 0x131   : > { %v2039_v25 = vld.sshfl [vmem:[#allocation1] sm:$0xff pattern:$0x73625140]  ;;  %v2045_v3 = vld.sshfl [vmem:[#allocation1 + $0x18] sm:$0xff pattern:$0x73625140] }
 0x132   : > { %2065 = vrot.lane.b32.xlu0 %v2033_v63, %s4277_s8  ;;  %2071 = vrot.lane.b32.xlu1 %v2041_v34, %s4277_s8  ;;  %v2047_v63 = vld.sshfl [vmem:[#allocation1 + $0x20] sm:$0xff pattern:$0x73625140] }
 0x133   : > { %v4684_v13 = vpop.f32.mrf.mxu0  ;;  %v4686_v14 = vpop.f32.mrf.mxu1  ;;  %2069 = vrot.lane.b32.xlu2 %v2039_v25, %s4277_s8 }
 0x136   : > { %3959 = vmatmul.msk.bf16.vlgmr.msra.gmra.mxu0 %vm339_vm2, %v4659_v27  ;;  %3960 = vmatmul.msk.bf16.vlgmr.msra.gmra.mxu1 %vm339_vm2, %v4659_v27  ;;  %v1286_v35 = vpop.permute.xlu1 %1285 }
 0x137   : > { %3961 = vmatmul.msk.bf16.vlgmr.msra.gmra.mxu2 %vm339_vm2, %v4659_v27  ;;  %3962 = vmatmul.msk.bf16.vlgmr.msra.gmra.mxu3 %vm339_vm2, %v4659_v27  ;;  %v1316_v47 = vsel %vm1315_vm4, %v1286_v35, %v1288_v32  ;;  %v4108_v32 = vld [vmem:[%s6037_s1 + $0x18] sm:$0x70] }
 0x138   : > { %1157 = vmatpush.bf16.msra.mxu0 %v997_v29  ;;  %1171 = vmatpush.bf16.msra.mxu1 %v1000_v16  ;;  %v1351_v54 = vsel %vm343_vm1, %v1316_v47, 0  ;;  %v4801_v42 = vor.u32 %v4108_v32, %v3976_v23 }
 0x139   : > { %1185 = vmatpush.bf16.msra.mxu2 %v1003_v17  ;;  %1199 = vmatpush.bf16.msra.mxu3 %v1006_v18  ;;  %v1306_v18 = vpop.permute.xlu2 %1305 }
 0x13a   : > { %v4704_v37 = vpop.f32.mrf.mxu2  ;;  %v4706_v38 = vpop.f32.mrf.mxu3  ;;  %2077 = vrot.lane.b32.xlu0 %v2047_v63, %s4277_s8 }
 0x13b   : > { %v4710_v39 = vpop.f32.mrf.mxu0  ;;  %v4712_v40 = vpop.f32.mrf.mxu1  ;;  %2075 = vrot.lane.b32.xlu2 %v2045_v3, %s4277_s8 }
 0x13c   : > { %v1302_v33 = vpop.permute.xlu0 %1301 }
 0x13d   : > { %v1323_v43 = vsel %vm1315_vm4, %v1300_v4, %v1302_v33 }
 0x13e   : > { %v1298_v19 = vpop.permute.xlu1 %1297 }
 0x13f   : > { %v1321_v22 = vsel %vm1315_vm4, %v1296_v57, %v1298_v19  ;;  %v1322_v20 = vsel %vm1315_vm4, %v1298_v19, %v1300_v4 }
 0x140   : > { %v1366_v28 = vsel %vm343_vm1, %v1321_v22, 0  ;;  %v1369_v53 = vsel %vm343_vm1, %v1322_v20, 0 }
 0x141   : > { %v1312_v24 = vpop.permute.xlu2 %1311 }
 0x142   : > { %v4715_v44 = vpop.f32.mrf.mxu2  ;;  %v4717_v45 = vpop.f32.mrf.mxu3 }
 0x143   : > { %v4723_v48 = vpop.f32.mrf.mxu0  ;;  %v4725_v49 = vpop.f32.mrf.mxu1 }
 0x146   : > { %3963 = vmatmul.msk.bf16.vlgmr.msrb.gmra.mxu0 %vm339_vm2, %v4659_v27  ;;  %3964 = vmatmul.msk.bf16.vlgmr.msrb.gmra.mxu1 %vm339_vm2, %v4659_v27  ;;  %v1304_v15 = vpop.permute.xlu1 %1303 }
 0x147   : > { %3965 = vmatmul.msk.bf16.vlgmr.msrb.gmra.mxu2 %vm339_vm2, %v4659_v27  ;;  %3966 = vmatmul.msk.bf16.vlgmr.msrb.gmra.mxu3 %vm339_vm2, %v4659_v27  ;;  %v1324_v46 = vsel %vm1315_vm4, %v1302_v33, %v1304_v15  ;;  %v1325_v51 = vsel %vm1315_vm4, %v1304_v15, %v1306_v18 }
 0x148   : > { %1213 = vmatpush.bf16.msrb.mxu0 %v1008_v52  ;;  %1401 = vmatpush.bf16.msrb.mxu1 %v1351_v54  ;;  %v1372_v54 = vsel %vm343_vm1, %v1323_v43, 0  ;;  %v1378_v57 = vsel %vm343_vm1, %v1325_v51, 0 }
 0x149   : > { %1415 = vmatpush.bf16.msrb.mxu2 %v1354_v55  ;;  %1429 = vmatpush.bf16.msrb.mxu3 %v1357_v56  ;;  %v1375_v55 = vsel %vm343_vm1, %v1324_v46, 0  ;;  %v2043_v56 = vld.sshfl [vmem:[#allocation1 + $0x10] sm:$0xff pattern:$0x73625140]  ;;  %v1334_v20 = vpop.permute.xlu2 %1333 }
 0x14a   : > { %v4742_v59 = vpop.f32.mrf.mxu2  ;;  %v4744_v60 = vpop.f32.mrf.mxu3  ;;  %2098 = vst [vmem:[#allocation1] ss:$4 sm:$0xff] %v4392_v0  ;;  %2073 = vrot.lane.b32.xlu1 %v2043_v56, %s4277_s8 }
 0x14b   : > { %v4748_v61 = vpop.f32.mrf.mxu0  ;;  %v4750_v62 = vpop.f32.mrf.mxu1 }
 0x14e   : > { %v1308_v41 = vpop.permute.xlu1 %1307 }
 0x14f   : > { %v1326_v52 = vsel %vm1315_vm4, %v1306_v18, %v1308_v41 }
 0x150   : > { %v1381_v58 = vsel %vm343_vm1, %v1326_v52, 0 }
 0x152   : > { %v4754_v5 = vpop.f32.mrf.mxu2  ;;  %v4756_v8 = vpop.f32.mrf.mxu3 }
 0x153   : > { %v4762_v7 = vpop.f32.mrf.mxu0  ;;  %v4764_v11 = vpop.f32.mrf.mxu1 }
 0x156   : > { %3967 = vmatmul.msk.bf16.vlgmr.msra.gmra.mxu0 %vm339_vm2, %v4659_v27  ;;  %3968 = vmatmul.msk.bf16.vlgmr.msra.gmra.mxu1 %vm339_vm2, %v4659_v27  ;;  %v1310_v22 = vpop.permute.xlu1 %1309 }
 0x157   : > { %3969 = vmatmul.msk.bf16.vlgmr.msra.gmra.mxu2 %vm339_vm2, %v4659_v27  ;;  %3970 = vmatmul.msk.bf16.vlgmr.msra.gmra.mxu3 %vm339_vm2, %v4659_v27  ;;  %v1328_v15 = vsel %vm1315_vm4, %v1310_v22, %v1312_v24 }
 0x158   : > { %1443 = vmatpush.bf16.msra.mxu0 %v1360_v12  ;;  %1457 = vmatpush.bf16.msra.mxu1 %v1363_v21  ;;  %v2099_v12 = vld.sshfl [vmem:[#allocation1] sm:$0xff pattern:$0x73625140]  ;;  %v1387_v43 = vsel %vm343_vm1, %v1328_v15, 0 }
 0x159   : > { %1471 = vmatpush.bf16.msra.mxu2 %v1366_v28  ;;  %1485 = vmatpush.bf16.msra.mxu3 %v1369_v53  ;;  %2402 = vst [vmem:[#allocation1] ss:$4 sm:$0xff] %v4392_v0  ;;  %v1327_v53 = vsel %vm1315_vm4, %v1308_v41, %v1310_v22 }
 0x15a   : > { %v4781_v29 = vpop.f32.mrf.mxu2  ;;  %v4783_v16 = vpop.f32.mrf.mxu3  ;;  %v1384_v41 = vsel %vm343_vm1, %v1327_v53, 0 }
 0x15b   : > { %v4786_v30 = vpop.f32.mrf.mxu0  ;;  %v4788_v17 = vpop.f32.mrf.mxu1 }
 0x160   : > { %v2405_v52 = vld.sshfl [vmem:[#allocation1] sm:$0xff pattern:$0x73625140]  ;;  %v2409_v25 = vld.sshfl [vmem:[#allocation1 + $0x10] sm:$0xff pattern:$0x73625140] }
 0x161   : > { %2437 = vrot.lane.b32.xlu0 %v2405_v52, %s4278_s12  ;;  %v2411_v22 = vld.sshfl [vmem:[#allocation1 + $0x18] sm:$0xff pattern:$0x73625140] }
 0x162   : > { %v4797_v35 = vpop.f32.mrf.mxu2  ;;  %v4799_v36 = vpop.f32.mrf.mxu3 }
 0x163   : > { %v4805_v47 = vpop.f32.mrf.mxu0  ;;  %v4807_v50 = vpop.f32.mrf.mxu1 }
 0x166   : > { %3971 = vmatmul.msk.bf16.vlgmr.msrb.gmra.mxu0 %vm339_vm2, %v4659_v27  ;;  %3978 = vmatmul.msk.bf16.vlgmr.msrb.gmra.mxu1 %vm339_vm2, %v4801_v42  ;;  %v1314_v27 = vpop.permute.xlu0 %1313 }
 0x167   : > { %3979 = vmatmul.msk.bf16.vlgmr.msrb.gmra.mxu2 %vm339_vm2, %v4801_v42  ;;  %3980 = vmatmul.msk.bf16.vlgmr.msrb.gmra.mxu3 %vm339_vm2, %v4801_v42  ;;  %v1329_v34 = vsel %vm1315_vm4, %v1312_v24, %v1314_v27  ;;  %v1338_v23 = vsel %vm1315_vm4, %v1314_v27, %v1334_v20  ;;  %v1670_v27 = vpop.permute.xlu2 %1669 }
 0x168   : > { %1499 = vmatpush.bf16.msrb.mxu0 %v1372_v54  ;;  %1513 = vmatpush.bf16.msrb.mxu1 %v1375_v55  ;;  %v1390_v46 = vsel %vm343_vm1, %v1329_v34, 0  ;;  %v1392_v51 = vsel %vm343_vm1, %v1338_v23, 0 }
 0x169   : > { %1527 = vmatpush.bf16.msrb.mxu2 %v1378_v57  ;;  %1541 = vmatpush.bf16.msrb.mxu3 %v1381_v58 }
 0x16a   : > { %v4824_v19 = vpop.f32.mrf.mxu2  ;;  %v665_v26 = vpop.f32.mrf.mxu3  ;;  %2101 = vrot.lane.b32.xlu0 %v2099_v12, %s4277_s8 }
 0x16b   : > { %v4829_v4 = vadd.f32 %v665_v26, %v4684_v13  ;;  %v4831_v9 = vpop.f32.mrf.mxu0  ;;  %v4833_v10 = vpop.f32.mrf.mxu1  ;;  %v2049_v26 = vld.sshfl [vmem:[#allocation1 + $0x28] sm:$0xff pattern:$0x73625140] }
 0x16c   : > { %2079 = vrot.lane.b32.xlu2 %v2049_v26, %s4277_s8 }
 0x172   : > { %v4837_v21 = vpop.f32.mrf.mxu2  ;;  %v667_v28 = vpop.f32.mrf.mxu3 }
 0x173   : > { %v4842_v13 = vadd.f32 %v667_v28, %v4710_v39  ;;  %v679_v31 = vpop.f32.mrf.mxu0  ;;  %v693_v18 = vpop.f32.mrf.mxu1 }
 0x174   : > { %v4848_v32 = vadd.f32 %v679_v31, %v4686_v14  ;;  %v4851_v33 = vadd.f32 %v693_v18, %v4704_v37  ;;  %v1674_v39 = vpop.permute.xlu0 %1673  ;;  %v1676_v14 = vpop.permute.xlu1 %1675  ;;  %v2407_v37 = vld.sshfl [vmem:[#allocation1 + $0x8] sm:$0xff pattern:$0x73625140] }
 0x175   : > { %2439 = vrot.lane.b32.xlu1 %v2407_v37, %s4278_s12  ;;  %2421 = vst [vmem:[#allocation1] ss:$4 sm:$0xff] %v4398_v2  ;;  %v1702_v53 = vsel %vm1699_vm5, %v1674_v39, %v1676_v14 }
 0x176   : > { %3981 = vmatmul.msk.bf16.vlgmr.msra.gmra.mxu0 %vm339_vm2, %v4801_v42  ;;  %3982 = vmatmul.msk.bf16.vlgmr.msra.gmra.mxu1 %vm339_vm2, %v4801_v42  ;;  %v1741_v12 = vsel %vm343_vm1, %v1702_v53, 0 }
 0x177   : > { %3983 = vmatmul.msk.bf16.vlgmr.msra.gmra.mxu2 %vm339_vm2, %v4801_v42  ;;  %3984 = vmatmul.msk.bf16.vlgmr.msra.gmra.mxu3 %vm339_vm2, %v4801_v42 }
 0x178   : > { %1555 = vmatpush.bf16.msra.mxu0 %v1384_v41  ;;  %1569 = vmatpush.bf16.msra.mxu1 %v1387_v43 }
 0x179   : > { %1583 = vmatpush.bf16.msra.mxu2 %v1390_v46  ;;  %1597 = vmatpush.bf16.msra.mxu3 %v1392_v51  ;;  %v1682_v46 = vpop.permute.xlu2 %1681 }
 0x17a   : > { %v707_v54 = vpop.f32.mrf.mxu2  ;;  %v721_v55 = vpop.f32.mrf.mxu3 }
 0x17b   : > { %v4868_v56 = vadd.f32 %v707_v54, %v4706_v38  ;;  %v4871_v57 = vadd.f32 %v721_v55, %v4723_v48  ;;  %v681_v58 = vpop.f32.mrf.mxu0  ;;  %v695_v24 = vpop.f32.mrf.mxu1 }
 0x17c   : > { %v4874_v63 = vadd.f32 %v681_v58, %v4712_v40  ;;  %v4877_v3 = vadd.f32 %v695_v24, %v4715_v44  ;;  %v1672_v38 = vpop.permute.xlu0 %1671  ;;  %v1678_v48 = vpop.permute.xlu1 %1677 }
 0x17d   : > { %v1701_v40 = vsel %vm1699_vm5, %v1672_v38, %v1674_v39  ;;  %2441 = vrot.lane.b32.xlu1 %v2409_v25, %s4278_s12  ;;  %v1703_v34 = vsel %vm1699_vm5, %v1676_v14, %v1678_v48  ;;  %v1700_v23 = vsel %vm1699_vm5, %v1670_v27, %v1672_v38 }
 0x17e   : > { %v1735_v39 = vsel %vm343_vm1, %v1700_v23, 0 }
 0x181   : > { %v1686_v26 = vpop.permute.xlu2 %1685 }
 0x182   : > { %v709_v20 = vpop.f32.mrf.mxu2  ;;  %v723_v28 = vpop.f32.mrf.mxu3 }
 0x183   : > { %v4886_v44 = vadd.f32 %v709_v20, %v4717_v45  ;;  %v4889_v15 = vadd.f32 %v723_v28, %v4748_v61  ;;  %v735_v31 = vpop.f32.mrf.mxu0  ;;  %v749_v18 = vpop.f32.mrf.mxu1  ;;  %v1738_v45 = vsel %vm343_vm1, %v1701_v40, 0  ;;  %v1744_v61 = vsel %vm343_vm1, %v1703_v34, 0 }
 0x184   : > { %v4894_v41 = vadd.f32 %v735_v31, %v4725_v49  ;;  %v4897_v43 = vadd.f32 %v749_v18, %v4742_v59  ;;  %v2051_v49 = vld.sshfl [vmem:[#allocation1 + $0x30] sm:$0xff pattern:$0x73625140]  ;;  %v1684_v24 = vpop.permute.xlu0 %1683  ;;  %v1680_v27 = vpop.permute.xlu1 %1679 }
 0x185   : > { %2404 = vst [vmem:[#allocation1 + $0x20] ss:$4 sm:$0xff] %v4394_v1  ;;  %2443 = vrot.lane.b32.xlu1 %v2411_v22, %s4278_s12  ;;  %2081 = vrot.lane.b32.xlu2 %v2051_v49, %s4277_s8  ;;  %v1704_v38 = vsel %vm1699_vm5, %v1678_v48, %v1680_v27  ;;  %v1706_v53 = vsel %vm1699_vm5, %v1682_v46, %v1684_v24 }
 0x186   : > { %3985 = vmatmul.msk.bf16.vlgmr.msrb.gmra.mxu0 %vm339_vm2, %v4801_v42  ;;  %3986 = vmatmul.msk.bf16.vlgmr.msrb.gmra.mxu1 %vm339_vm2, %v4801_v42  ;;  %v1707_v40 = vsel %vm1699_vm5, %v1684_v24, %v1686_v26  ;;  %v1747_v48 = vsel %vm343_vm1, %v1704_v38, 0 }
 0x187   : > { %3987 = vmatmul.msk.bf16.vlgmr.msrb.gmra.mxu2 %vm339_vm2, %v4801_v42  ;;  %3988 = vmatmul.msk.bf16.vlgmr.msrb.gmra.mxu3 %vm339_vm2, %v4801_v42  ;;  %v1756_v34 = vsel %vm343_vm1, %v1707_v40, 0 }
 0x188   : > { %1799 = vmatpush.bf16.msrb.mxu1 %v1738_v45  ;;  %1813 = vmatpush.bf16.msrb.mxu2 %v1741_v12  ;;  %v2425_v12 = vld.sshfl [vmem:[#allocation1 + $0x8] sm:$0xff pattern:$0x73625140] }
 0x189   : > { %1827 = vmatpush.bf16.msrb.mxu3 %v1744_v61  ;;  %1785 = vmatpush.bf16.msrb.mxu0 %v1735_v39 }
 0x18a   : > { %v763_v59 = vpop.f32.mrf.mxu2  ;;  %v777_v51 = vpop.f32.mrf.mxu3 }
 0x18b   : > { %v4915_v14 = vadd.f32 %v763_v59, %v4744_v60  ;;  %v4918_v37 = vadd.f32 %v777_v51, %v4762_v7  ;;  %v737_v52 = vpop.f32.mrf.mxu0  ;;  %v751_v54 = vpop.f32.mrf.mxu1  ;;  %v1705_v7 = vsel %vm1699_vm5, %v1680_v27, %v1682_v46  ;;  %v2427_v59 = vld.sshfl [vmem:[#allocation1 + $0x10] sm:$0xff pattern:$0x73625140] }
 0x18c   : > { %v4921_v55 = vadd.f32 %v737_v52, %v4750_v62  ;;  %v4924_v58 = vadd.f32 %v751_v54, %v4754_v5  ;;  %v2415_v25 = vld.sshfl [vmem:[#allocation1 + $0x28] sm:$0xff pattern:$0x73625140]  ;;  %v2413_v23 = vld.sshfl [vmem:[#allocation1 + $0x20] sm:$0xff pattern:$0x73625140]  ;;  %v1692_v27 = vpop.permute.xlu1 %1691 }
 0x18d   : > { %2447 = vrot.lane.b32.xlu0 %v2415_v25, %s4278_s12  ;;  %2445 = vrot.lane.b32.xlu2 %v2413_v23, %s4278_s12  ;;  %v2417_v54 = vld.sshfl [vmem:[#allocation1 + $0x30] sm:$0xff pattern:$0x73625140]  ;;  %v2419_v24 = vld.sshfl [vmem:[#allocation1 + $0x38] sm:$0xff pattern:$0x73625140] }
 0x18e   : > { %2455 = vrot.lane.b32.xlu1 %v2425_v12, %s4278_s12  ;;  %2422 = vst [vmem:[#allocation1 + $0x20] ss:$4 sm:$0xff] %v4402_v6  ;;  %v4109_v25 = vld [vmem:[%s6037_s1 + $0x20] sm:$0x70] }
 0x192   : > { %v765_v22 = vpop.f32.mrf.mxu2  ;;  %v779_v60 = vpop.f32.mrf.mxu3 }
 0x193   : > { %v4930_v20 = vadd.f32 %v765_v22, %v4756_v8  ;;  %v4933_v62 = vadd.f32 %v779_v60, %v4786_v30  ;;  %v791_v5 = vpop.f32.mrf.mxu0  ;;  %v805_v28 = vpop.f32.mrf.mxu1  ;;  %v1750_v8 = vsel %vm343_vm1, %v1705_v7, 0  ;;  %v1753_v30 = vsel %vm343_vm1, %v1706_v53, 0 }
 0x194   : > { %v4938_v31 = vadd.f32 %v791_v5, %v4764_v11  ;;  %v4941_v18 = vadd.f32 %v805_v28, %v4781_v29  ;;  %v2423_v11 = vld.sshfl [vmem:[#allocation1] sm:$0xff pattern:$0x73625140]  ;;  %v1690_v29 = vpop.permute.xlu0 %1689 }
 0x195   : > { %2453 = vrot.lane.b32.xlu0 %v2423_v11, %s4278_s12  ;;  %2449 = vrot.lane.b32.xlu2 %v2417_v54, %s4278_s12  ;;  %v2431_v11 = vld.sshfl [vmem:[#allocation1 + $0x20] sm:$0xff pattern:$0x73625140] }
 0x196   : > { %3989 = vmatmul.msk.bf16.vlgmr.msra.gmra.mxu0 %vm339_vm2, %v4801_v42  ;;  %3990 = vmatmul.msk.bf16.vlgmr.msra.gmra.mxu1 %vm339_vm2, %v4801_v42 }
 0x197   : > { %3991 = vmatmul.msk.bf16.vlgmr.msra.gmra.mxu2 %vm339_vm2, %v4801_v42  ;;  %3992 = vmatmul.msk.bf16.vlgmr.msra.gmra.mxu3 %vm339_vm2, %v4801_v42 }
 0x198   : > { %1841 = vmatpush.bf16.msra.mxu0 %v1747_v48  ;;  %1855 = vmatpush.bf16.msra.mxu1 %v1750_v8  ;;  %v1710_v8 = vsel %vm1699_vm5, %v1690_v29, %v1692_v27 }
 0x199   : > { %1869 = vmatpush.bf16.msra.mxu2 %v1753_v30  ;;  %1883 = vmatpush.bf16.msra.mxu3 %v1756_v34 }
 0x19a   : > { %v819_v45 = vpop.f32.mrf.mxu2  ;;  %v833_v61 = vpop.f32.mrf.mxu3  ;;  %2461 = vrot.lane.b32.xlu1 %v2431_v11, %s4278_s12 }
 0x19b   : > { %v4958_v39 = vadd.f32 %v819_v45, %v4783_v16  ;;  %v4961_v46 = vadd.f32 %v833_v61, %v4805_v47  ;;  %v793_v42 = vpop.f32.mrf.mxu0  ;;  %v807_v49 = vpop.f32.mrf.mxu1  ;;  %v2429_v16 = vld.sshfl [vmem:[#allocation1 + $0x18] sm:$0xff pattern:$0x73625140]  ;;  %v3997_v47 = vld [vmem:[%s6037_s1 + $0x20] sm:$0xf] }
 0x19c   : > { %v4965_v51 = vadd.f32 %v793_v42, %v4788_v17  ;;  %v4968_v52 = vadd.f32 %v807_v49, %v4797_v35  ;;  %2482 = vst [vmem:[#allocation1] ss:$4 sm:$0xff] %v4392_v0  ;;  %v1688_v17 = vpop.permute.xlu2 %1687  ;;  %v1694_v22 = vpop.permute.xlu0 %1693  ;;  %v4978_v38 = vor.u32 %v4109_v25, %v3997_v47  ;;  %v2435_v45 = vld.sshfl [vmem:[#allocation1 + $0x30] sm:$0xff pattern:$0x73625140] }
 0x19d   : > { %v1708_v7 = vsel %vm1699_vm5, %v1686_v26, %v1688_v17  ;;  %v1709_v5 = vsel %vm1699_vm5, %v1688_v17, %v1690_v29  ;;  %2457 = vrot.lane.b32.xlu0 %v2427_v59, %s4278_s12  ;;  %v1711_v30 = vsel %vm1699_vm5, %v1692_v27, %v1694_v22  ;;  %2451 = vrot.lane.b32.xlu2 %v2419_v24, %s4278_s12  ;;  %v1698_v25 = vpop.permute.xlu1 %1697 }
 0x19e   : > { %v1759_v23 = vsel %vm343_vm1, %v1708_v7, 0 }
 0x1a2   : > { %v821_v35 = vpop.f32.mrf.mxu2  ;;  %v835_v60 = vpop.f32.mrf.mxu3  ;;  %2465 = vrot.lane.b32.xlu1 %v2435_v45, %s4278_s12  ;;  %v2433_v45 = vld.sshfl [vmem:[#allocation1 + $0x28] sm:$0xff pattern:$0x73625140] }
 0x1a3   : > { %v4985_v28 = vadd.f32 %v821_v35, %v4799_v36  ;;  %v4988_v53 = vadd.f32 %v835_v60, %v4831_v9  ;;  %v847_v40 = vpop.f32.mrf.mxu0  ;;  %v861_v48 = vpop.f32.mrf.mxu1  ;;  %v1762_v36 = vsel %vm343_vm1, %v1709_v5, 0  ;;  %v1765_v9 = vsel %vm343_vm1, %v1710_v8, 0  ;;  %v2483_v17 = vld.sshfl [vmem:[#allocation1] sm:$0xff pattern:$0x73625140] }
 0x1a4   : > { %v4993_v26 = vadd.f32 %v847_v40, %v4807_v50  ;;  %v4996_v34 = vadd.f32 %v861_v48, %v4824_v19  ;;  %v1768_v50 = vsel %vm343_vm1, %v1711_v30, 0  ;;  %v1718_v19 = vpop.permute.xlu2 %1717  ;;  %2786 = vst [vmem:[#allocation1] ss:$4 sm:$0xff] %v4392_v0  ;;  %v1696_v24 = vpop.permute.xlu0 %1695 }
 0x1a5   : > { %2459 = vrot.lane.b32.xlu0 %v2429_v16, %s4278_s12  ;;  %v1713_v35 = vsel %vm1699_vm5, %v1696_v24, %v1698_v25  ;;  %v1722_v5 = vsel %vm1699_vm5, %v1698_v25, %v1718_v19  ;;  %v2054_v8 = vpop.permute.xlu1 %2053  ;;  %2463 = vrot.lane.b32.xlu2 %v2433_v45, %s4278_s12  ;;  %2788 = vst [vmem:[#allocation1 + $0x20] ss:$4 sm:$0xff] %v4394_v1 }
 0x1a6   : > { %3999 = vmatmul.msk.bf16.vlgmr.msrb.gmra.mxu0 %vm339_vm2, %v4978_v38  ;;  %4000 = vmatmul.msk.bf16.vlgmr.msrb.gmra.mxu1 %vm339_vm2, %v4978_v38 }
 0x1a7   : > { %4001 = vmatmul.msk.bf16.vlgmr.msrb.gmra.mxu2 %vm339_vm2, %v4978_v38  ;;  %4002 = vmatmul.msk.bf16.vlgmr.msrb.gmra.mxu3 %vm339_vm2, %v4978_v38 }
 0x1a8   : > { %1897 = vmatpush.bf16.msrb.mxu0 %v1759_v23  ;;  %1911 = vmatpush.bf16.msrb.mxu1 %v1762_v36 }
 0x1a9   : > { %1925 = vmatpush.bf16.msrb.mxu2 %v1765_v9  ;;  %1939 = vmatpush.bf16.msrb.mxu3 %v1768_v50 }
 0x1aa   : > { %v1019_v29 = vpop.f32.mrf.mxu2  ;;  %v1033_v12 = vpop.f32.mrf.mxu3  ;;  %2485 = vrot.lane.b32.xlu1 %v2483_v17, %s4278_s12  ;;  %s3799_s12 = scalar_lea.hbm %s6039_s3, %s4114_s9 }
 0x1ab   : > { %v5014_v61 = vadd.f32 %v1019_v29, %v4829_v4  ;;  %v5017_v42 = vadd.f32 %v1033_v12, %v4848_v32  ;;  %v849_v49 = vpop.f32.mrf.mxu0  ;;  %v863_v59 = vpop.f32.mrf.mxu1  ;;  %v1712_v32 = vsel %vm1699_vm5, %v1694_v22, %v1696_v24  ;;  %v2793_v22 = vld.sshfl [vmem:[#allocation1 + $0x10] sm:$0xff pattern:$0x73625140]  ;;  %v2795_v9 = vld.sshfl [vmem:[#allocation1 + $0x18] sm:$0xff pattern:$0x73625140] }
 0x1ac   : > { %v5020_v54 = vadd.f32 %v849_v49, %v4833_v10  ;;  %v5023_v47 = vadd.f32 %v863_v59, %v4837_v21  ;;  %v2056_v4 = vpop.permute.xlu2 %2055  ;;  %v1771_v30 = vsel %vm343_vm1, %v1712_v32, 0  ;;  %s3802_s14 = sshll.u32 %s3799_s12, 4  ;;  %s5995_s14 = int_to_ptr.hbm [resolvable:$true] %s3802_s14 }
 0x1ad   : > { %2825 = vrot.lane.b32.xlu0 %v2793_v22, %s4279_s23  ;;  %v2797_v22 = vld.sshfl [vmem:[#allocation1 + $0x20] sm:$0xff pattern:$0x73625140]  ;;  %s4219_s22 = sshra.s32 %s5995_s14, 4  ;;  %s4220_s22 = int_to_ptr.hbm [resolvable:$true] %s4219_s22 }
 0x1ae   : > { %p4226_p1 = scmp.lt.s32.totalorder %s4220_s22, %s6039_s3 }
 0x1b2   : > { %v1021_v16 = vpop.f32.mrf.mxu2  ;;  %v1035_v27 = vpop.f32.mrf.mxu3 }
 0x1b3   : > { %v5030_v10 = vadd.f32 %v1021_v16, %v4842_v13  ;;  %v5033_v21 = vadd.f32 %v1035_v27, %v4874_v63  ;;  %v1047_v60 = vpop.f32.mrf.mxu0  ;;  %v1061_v7 = vpop.f32.mrf.mxu1  ;;  %v1774_v13 = vsel %vm343_vm1, %v1713_v35, 0  ;;  %v2084_v63 = vsel %vm2083_vm6, %v2054_v8, %v2056_v4 }
 0x1b4   : > { %v5037_v40 = vadd.f32 %v1047_v60, %v4851_v33  ;;  %v5040_v48 = vadd.f32 %v1061_v7, %v4868_v56  ;;  %v1776_v33 = vsel %vm343_vm1, %v1722_v5, 0  ;;  %v2060_v56 = vpop.permute.xlu0 %2059  ;;  %v2119_v11 = vsel %vm343_vm1, %v2084_v63, 0  ;;  %v2058_v25 = vpop.permute.xlu2 %2057  ;;  %v2799_v5 = vld.sshfl [vmem:[#allocation1 + $0x28] sm:$0xff pattern:$0x73625140] }
 0x1b5   : > { %2827 = vrot.lane.b32.xlu0 %v2795_v9, %s4279_s23  ;;  %v2085_v16 = vsel %vm2083_vm6, %v2056_v4, %v2058_v25  ;;  %v2086_v27 = vsel %vm2083_vm6, %v2058_v25, %v2060_v56  ;;  %2831 = vrot.lane.b32.xlu1 %v2799_v5, %s4279_s23  ;;  %v2803_v63 = vld.sshfl [vmem:[#allocation1 + $0x38] sm:$0xff pattern:$0x73625140] }
 0x1b6   : > { %4003 = vmatmul.msk.bf16.vlgmr.msra.gmra.mxu0 %vm339_vm2, %v4978_v38  ;;  %4004 = vmatmul.msk.bf16.vlgmr.msra.gmra.mxu1 %vm339_vm2, %v4978_v38 }
 0x1b7   : > { %4005 = vmatmul.msk.bf16.vlgmr.msra.gmra.mxu2 %vm339_vm2, %v4978_v38  ;;  %4006 = vmatmul.msk.bf16.vlgmr.msra.gmra.mxu3 %vm339_vm2, %v4978_v38 }
 0x1b8   : > { %1953 = vmatpush.bf16.msra.mxu0 %v1771_v30  ;;  %1967 = vmatpush.bf16.msra.mxu1 %v1774_v13  ;;  %v2125_v30 = vsel %vm343_vm1, %v2086_v27, 0 }
 0x1b9   : > { %1981 = vmatpush.bf16.msra.mxu2 %v1776_v33  ;;  %2169 = vmatpush.bf16.msra.mxu3 %v2119_v11 }
 0x1ba   : > { %v1075_v23 = vpop.f32.mrf.mxu2  ;;  %v1089_v36 = vpop.f32.mrf.mxu3 }
 0x1bb   : > { %v5058_v50 = vadd.f32 %v1075_v23, %v4871_v57  ;;  %v5061_v19 = vadd.f32 %v1089_v36, %v4894_v41  ;;  %v1049_v29 = vpop.f32.mrf.mxu0  ;;  %v1063_v12 = vpop.f32.mrf.mxu1 }
 0x1bc   : > { %v5064_v49 = vadd.f32 %v1049_v29, %v4877_v3  ;;  %v5067_v59 = vadd.f32 %v1063_v12, %v4886_v44  ;;  %v2062_v57 = vpop.permute.xlu1 %2061  ;;  %v2064_v17 = vpop.permute.xlu0 %2063  ;;  %v2789_v29 = vld.sshfl [vmem:[#allocation1] sm:$0xff pattern:$0x73625140] }
 0x1bd   : > { %v2087_v60 = vsel %vm2083_vm6, %v2060_v56, %v2062_v57  ;;  %v2088_v7 = vsel %vm2083_vm6, %v2062_v57, %v2064_v17  ;;  %2829 = vrot.lane.b32.xlu0 %v2797_v22, %s4279_s23  ;;  %2835 = vrot.lane.b32.xlu1 %v2803_v63, %s4279_s23  ;;  %v2070_v57 = vpop.permute.xlu2 %2069 }
 0x1c2   : > { %v1077_v41 = vpop.f32.mrf.mxu2  ;;  %v1091_v24 = vpop.f32.mrf.mxu3 }
 0x1c3   : > { %v5075_v3 = vadd.f32 %v1077_v41, %v4889_v15  ;;  %v5078_v44 = vadd.f32 %v1091_v24, %v4921_v55  ;;  %v1103_v32 = vpop.f32.mrf.mxu0  ;;  %v1117_v35 = vpop.f32.mrf.mxu1  ;;  %v2791_v15 = vld.sshfl [vmem:[#allocation1 + $0x8] sm:$0xff pattern:$0x73625140]  ;;  %v2122_v55 = vsel %vm343_vm1, %v2085_v16, 0 }
 0x1c4   : > { %v5083_v8 = vadd.f32 %v1103_v32, %v4897_v43  ;;  %v5086_v4 = vadd.f32 %v1117_v35, %v4915_v14  ;;  %2823 = vrot.lane.b32.xlu2 %v2791_v15, %s4279_s23  ;;  %v2128_v43 = vsel %vm343_vm1, %v2087_v60, 0  ;;  %v2131_v14 = vsel %vm343_vm1, %v2088_v7, 0  ;;  %v2068_v13 = vpop.permute.xlu1 %2067  ;;  %2805 = vst [vmem:[#allocation1] ss:$4 sm:$0xff] %v4398_v2 }
 0x1c5   : > { %v2091_v5 = vsel %vm2083_vm6, %v2068_v13, %v2070_v57 }
 0x1c6   : > { %4007 = vmatmul.msk.bf16.vlgmr.msrb.gmra.mxu0 %vm339_vm2, %v4978_v38  ;;  %4008 = vmatmul.msk.bf16.vlgmr.msrb.gmra.mxu1 %vm339_vm2, %v4978_v38 }
 0x1c7   : > { %4009 = vmatmul.msk.bf16.vlgmr.msrb.gmra.mxu2 %vm339_vm2, %v4978_v38  ;;  %4010 = vmatmul.msk.bf16.vlgmr.msrb.gmra.mxu3 %vm339_vm2, %v4978_v38 }
 0x1c8   : > { %2183 = vmatpush.bf16.msrb.mxu0 %v2122_v55  ;;  %2197 = vmatpush.bf16.msrb.mxu1 %v2125_v30  ;;  %v2140_v30 = vsel %vm343_vm1, %v2091_v5, 0 }
 0x1c9   : > { %2211 = vmatpush.bf16.msrb.mxu2 %v2128_v43  ;;  %2225 = vmatpush.bf16.msrb.mxu3 %v2131_v14  ;;  %v2076_v43 = vpop.permute.xlu2 %2075 }
 0x1ca   : > { %v1131_v33 = vpop.f32.mrf.mxu2  ;;  %v1145_v56 = vpop.f32.mrf.mxu3 }
 0x1cb   : > { %v5104_v11 = vadd.f32 %v1131_v33, %v4918_v37  ;;  %v5107_v23 = vadd.f32 %v1145_v56, %v4938_v31  ;;  %v1105_v36 = vpop.f32.mrf.mxu0  ;;  %v1119_v9 = vpop.f32.mrf.mxu1  ;;  %v4018_v37 = vld [vmem:[%s6037_s1 + $0x28] sm:$0xf]  ;;  %v4110_v31 = vld [vmem:[%s6037_s1 + $0x28] sm:$0x70] }
 0x1cc   : > { %v5110_v12 = vadd.f32 %v1105_v36, %v4924_v58  ;;  %v5113_v45 = vadd.f32 %v1119_v9, %v4930_v20  ;;  %2821 = vrot.lane.b32.xlu2 %v2789_v29, %s4279_s23  ;;  %v2066_v58 = vpop.permute.xlu0 %2065  ;;  %v2072_v25 = vpop.permute.xlu1 %2071  ;;  %v5124_v24 = vor.u32 %v4110_v31, %v4018_v37  ;;  %v2807_v15 = vld.sshfl [vmem:[#allocation1] sm:$0xff pattern:$0x73625140]  ;;  %v2801_v29 = vld.sshfl [vmem:[#allocation1 + $0x30] sm:$0xff pattern:$0x73625140] }
 0x1cd   : > { %v2089_v16 = vsel %vm2083_vm6, %v2064_v17, %v2066_v58  ;;  %v2090_v27 = vsel %vm2083_vm6, %v2066_v58, %v2068_v13  ;;  %v2092_v22 = vsel %vm2083_vm6, %v2070_v57, %v2072_v25  ;;  %2837 = vrot.lane.b32.xlu1 %v2807_v15, %s4279_s23  ;;  %2806 = vst [vmem:[#allocation1 + $0x20] ss:$4 sm:$0xff] %v4402_v6  ;;  %v2809_v31 = vld.sshfl [vmem:[#allocation1 + $0x8] sm:$0xff pattern:$0x73625140] }
 0x1ce   : > { %v2813_v58 = vld.sshfl [vmem:[#allocation1 + $0x18] sm:$0xff pattern:$0x73625140] }
 0x1d2   : > { %v1133_v41 = vpop.f32.mrf.mxu2  ;;  %v1147_v20 = vpop.f32.mrf.mxu3 }
 0x1d3   : > { %v5129_v32 = vadd.f32 %v1133_v41, %v4933_v62  ;;  %v5132_v35 = vadd.f32 %v1147_v20, %v4965_v51  ;;  %v1159_v60 = vpop.f32.mrf.mxu0  ;;  %v1173_v7 = vpop.f32.mrf.mxu1  ;;  %v2134_v62 = vsel %vm343_vm1, %v2089_v16, 0  ;;  %v2137_v51 = vsel %vm343_vm1, %v2090_v27, 0 }
 0x1d4   : > { %v5137_v55 = vadd.f32 %v1159_v60, %v4941_v18  ;;  %v5140_v17 = vadd.f32 %v1173_v7, %v4958_v39  ;;  %v2143_v18 = vsel %vm343_vm1, %v2092_v22, 0  ;;  %v2811_v39 = vld.sshfl [vmem:[#allocation1 + $0x10] sm:$0xff pattern:$0x73625140]  ;;  %2833 = vrot.lane.b32.xlu2 %v2801_v29, %s4279_s23  ;;  %v2074_v57 = vpop.permute.xlu1 %2073  ;;  %v2078_v37 = vpop.permute.xlu0 %2077 }
 0x1d5   : > { %2841 = vrot.lane.b32.xlu0 %v2811_v39, %s4279_s23  ;;  %2866 = vst [vmem:[#allocation1] ss:$4 sm:$0xff] %v4392_v0  ;;  %v2094_v20 = vsel %vm2083_vm6, %v2074_v57, %v2076_v43  ;;  %v2095_v7 = vsel %vm2083_vm6, %v2076_v43, %v2078_v37 }
 0x1d6   : > { %4011 = vmatmul.msk.bf16.vlgmr.msra.gmra.mxu0 %vm339_vm2, %v4978_v38  ;;  %4012 = vmatmul.msk.bf16.vlgmr.msra.gmra.mxu1 %vm339_vm2, %v4978_v38 }
 0x1d7   : > { %4013 = vmatmul.msk.bf16.vlgmr.msra.gmra.mxu2 %vm339_vm2, %v4978_v38  ;;  %4020 = vmatmul.msk.bf16.vlgmr.msra.gmra.mxu3 %vm339_vm2, %v5124_v24 }
 0x1d8   : > { %2239 = vmatpush.bf16.msra.mxu0 %v2134_v62  ;;  %2253 = vmatpush.bf16.msra.mxu1 %v2137_v51  ;;  %v2819_v62 = vld.sshfl [vmem:[#allocation1 + $0x30] sm:$0xff pattern:$0x73625140] }
 0x1d9   : > { %2267 = vmatpush.bf16.msra.mxu2 %v2140_v30  ;;  %2281 = vmatpush.bf16.msra.mxu3 %v2143_v18 }
 0x1da   : > { %v1187_v14 = vpop.f32.mrf.mxu2  ;;  %v1201_v13 = vpop.f32.mrf.mxu3  ;;  %2849 = vrot.lane.b32.xlu1 %v2819_v62, %s4279_s23 }
 0x1db   : > { %v5157_v63 = vadd.f32 %v1187_v14, %v4961_v46  ;;  %v5160_v33 = vadd.f32 %v1201_v13, %v4993_v26  ;;  %v1161_v56 = vpop.f32.mrf.mxu0  ;;  %v1175_v38 = vpop.f32.mrf.mxu1 }
 0x1dc   : > { %v5163_v36 = vadd.f32 %v1161_v56, %v4968_v52  ;;  %v5166_v9 = vadd.f32 %v1175_v38, %v4985_v28  ;;  %v2080_v46 = vpop.permute.xlu2 %2079  ;;  %v2093_v52 = vsel %vm2083_vm6, %v2072_v25, %v2074_v57  ;;  %2839 = vrot.lane.b32.xlu2 %v2809_v31, %s4279_s23  ;;  %v2867_v51 = vld.sshfl [vmem:[#allocation1] sm:$0xff pattern:$0x73625140]  ;;  %v2438_v57 = vpop.permute.xlu0 %2437 }
 0x1dd   : > { %v2096_v5 = vsel %vm2083_vm6, %v2078_v37, %v2080_v46  ;;  %v2146_v25 = vsel %vm343_vm1, %v2093_v52, 0  ;;  %3170 = vst [vmem:[#allocation1] ss:$4 sm:$0xff] %v4392_v0 }
 0x1e2   : > { %v1189_v26 = vpop.f32.mrf.mxu2  ;;  %v1203_v41 = vpop.f32.mrf.mxu3 }
 0x1e3   : > { %v5174_v28 = vadd.f32 %v1189_v26, %v4988_v53  ;;  %v5177_v16 = vadd.f32 %v1203_v41, %v5020_v54  ;;  %v1215_v27 = vpop.f32.mrf.mxu0  ;;  %v1403_v60 = vpop.f32.mrf.mxu1  ;;  %v2149_v53 = vsel %vm343_vm1, %v2094_v20, 0  ;;  %v2152_v54 = vsel %vm343_vm1, %v2095_v7, 0 }
 0x1e4   : > { %v5182_v22 = vadd.f32 %v1215_v27, %v4996_v34  ;;  %v5185_v15 = vadd.f32 %v1403_v60, %v5014_v61  ;;  %v2155_v34 = vsel %vm343_vm1, %v2096_v5, 0  ;;  %v2817_v61 = vld.sshfl [vmem:[#allocation1 + $0x28] sm:$0xff pattern:$0x73625140]  ;;  %2843 = vrot.lane.b32.xlu2 %v2813_v58, %s4279_s23  ;;  %v2082_v37 = vpop.permute.xlu2 %2081  ;;  %v2102_v60 = vpop.permute.xlu0 %2101 }
 0x1e5   : > { %2847 = vrot.lane.b32.xlu0 %v2817_v61, %s4279_s23  ;;  %v3177_v31 = vld.sshfl [vmem:[#allocation1 + $0x10] sm:$0xff pattern:$0x73625140] }
 0x1e6   : > { %4021 = vmatmul.msk.bf16.vlgmr.msrb.gmra.mxu0 %vm339_vm2, %v5124_v24  ;;  %4022 = vmatmul.msk.bf16.vlgmr.msrb.gmra.mxu1 %vm339_vm2, %v5124_v24 }
 0x1e7   : > { %4023 = vmatmul.msk.bf16.vlgmr.msrb.gmra.mxu2 %vm339_vm2, %v5124_v24  ;;  %4024 = vmatmul.msk.bf16.vlgmr.msrb.gmra.mxu3 %vm339_vm2, %v5124_v24  ;;  %v2440_v29 = vpop.permute.xlu1 %2439 }
 0x1e8   : > { %2295 = vmatpush.bf16.msrb.mxu0 %v2146_v25  ;;  %2309 = vmatpush.bf16.msrb.mxu1 %v2149_v53  ;;  %v2468_v41 = vsel %vm2467_vm7, %v2438_v57, %v2440_v29  ;;  %v2106_v25 = vsel %vm2083_vm6, %v2082_v37, %v2102_v60  ;;  %v3175_v53 = vld.sshfl [vmem:[#allocation1 + $0x8] sm:$0xff pattern:$0x73625140] }
 0x1e9   : > { %2323 = vmatpush.bf16.msrb.mxu2 %v2152_v54  ;;  %2337 = vmatpush.bf16.msrb.mxu3 %v2155_v34  ;;  %v2503_v5 = vsel %vm343_vm1, %v2468_v41, 0  ;;  %v3173_v54 = vld.sshfl [vmem:[#allocation1] sm:$0xff pattern:$0x73625140] }
 0x1ea   : > { %v1417_v30 = vpop.f32.mrf.mxu2  ;;  %v1431_v18 = vpop.f32.mrf.mxu3  ;;  %3209 = vrot.lane.b32.xlu1 %v3177_v31, %s4280_s7  ;;  %v2815_v34 = vld.sshfl [vmem:[#allocation1 + $0x20] sm:$0xff pattern:$0x73625140] }
 0x1eb   : > { %v5204_v43 = vadd.f32 %v1417_v30, %v5017_v42  ;;  %v5207_v39 = vadd.f32 %v1431_v18, %v5037_v40  ;;  %v1217_v14 = vpop.f32.mrf.mxu0  ;;  %v1405_v13 = vpop.f32.mrf.mxu1  ;;  %v2097_v40 = vsel %vm2083_vm6, %v2080_v46, %v2082_v37  ;;  %3172 = vst [vmem:[#allocation1 + $0x20] ss:$4 sm:$0xff] %v4394_v1 }
 0x1ec   : > { %v5210_v56 = vadd.f32 %v1217_v14, %v5023_v47  ;;  %v5213_v38 = vadd.f32 %v1405_v13, %v5030_v10  ;;  %v2158_v7 = vsel %vm343_vm1, %v2097_v40, 0  ;;  %2845 = vrot.lane.b32.xlu2 %v2815_v34, %s4279_s23 }
 0x1ed   : > { %2869 = vrot.lane.b32.xlu0 %v2867_v51, %s4279_s23  ;;  %s4221_s23 = scalar_lea.hbm %s4220_s22, 120 }
 0x1ee   : > { %p4222_p6 = scmp.ne.s32.totalorder %s4220_s22, %s4221_s23  ;;  %p4227_p2 = scmp.lt.s32.totalorder %s4225_s30, %s4221_s23 }
 0x1ef   : > { %v2442_v27 = vpop.permute.xlu1 %2441 }
 0x1f0   : > { %p4223_p12 = pnand %p4222_p6, %p4354_p10  ;;  %p4228_p3 = por %p4227_p2, %p4226_p1 }
 0x1f2   : > { %v1419_v42 = vpop.f32.mrf.mxu2  ;;  %v1433_v26 = vpop.f32.mrf.mxu3  ;;  %3207 = vrot.lane.b32.xlu1 %v3175_v53, %s4280_s7  ;;  %v3185_v57 = vld.sshfl [vmem:[#allocation1 + $0x30] sm:$0xff pattern:$0x73625140]  ;;  %p4224_p0 = pneg %p4223_p12 }
 0x1f3   : > { %v5221_v47 = vadd.f32 %v1419_v42, %v5033_v21  ;;  %v5224_v10 = vadd.f32 %v1433_v26, %v5064_v49  ;;  %v1445_v58 = vpop.f32.mrf.mxu0  ;;  %v1459_v52 = vpop.f32.mrf.mxu1  ;;  %v2469_v21 = vsel %vm2467_vm7, %v2440_v29, %v2442_v27 }
 0x1f4   : > { %v5227_v20 = vadd.f32 %v1445_v58, %v5040_v48  ;;  %v5230_v46 = vadd.f32 %v1459_v52, %v5058_v50  ;;  %v2506_v48 = vsel %vm343_vm1, %v2469_v21, 0  ;;  %v2160_v50 = vsel %vm343_vm1, %v2106_v25, 0  ;;  %v2446_v49 = vpop.permute.xlu2 %2445  ;;  %v3179_v21 = vld.sshfl [vmem:[#allocation1 + $0x18] sm:$0xff pattern:$0x73625140]  ;;  %p4229_p4 = pnand %p4228_p3, %p4224_p0 }
 0x1f5   : > { %3205 = vrot.lane.b32.xlu0 %v3173_v54, %s4280_s7  ;;  %3189 = vst [vmem:[#allocation1] ss:$4 sm:$0xff] %v4398_v2  ;;  %3211 = vrot.lane.b32.xlu2 %v3179_v21, %s4280_s7 }
 0x1f6   : > { %4025 = vmatmul.msk.bf16.vlgmr.msra.gmra.mxu0 %vm339_vm2, %v5124_v24  ;;  %4026 = vmatmul.msk.bf16.vlgmr.msra.gmra.mxu1 %vm339_vm2, %v5124_v24 }
 0x1f7   : > { %4027 = vmatmul.msk.bf16.vlgmr.msra.gmra.mxu2 %vm339_vm2, %v5124_v24  ;;  %4028 = vmatmul.msk.bf16.vlgmr.msra.gmra.mxu3 %vm339_vm2, %v5124_v24  ;;  %v2444_v29 = vpop.permute.xlu1 %2443 }
 0x1f8   : > { %2351 = vmatpush.bf16.msra.mxu0 %v2158_v7  ;;  %2553 = vmatpush.bf16.msra.mxu2 %v2503_v5  ;;  %v2470_v26 = vsel %vm2467_vm7, %v2442_v27, %v2444_v29 }
 0x1f9   : > { %2567 = vmatpush.bf16.msra.mxu3 %v2506_v48  ;;  %2365 = vmatpush.bf16.msra.mxu1 %v2160_v50  ;;  %v2509_v7 = vsel %vm343_vm1, %v2470_v26, 0 }
 0x1fa   : > { %v1473_v61 = vpop.f32.mrf.mxu2  ;;  %v1487_v62 = vpop.f32.mrf.mxu3 }
 0x1fb   : > { %v5250_v51 = vadd.f32 %v1473_v61, %v5061_v19  ;;  %v5253_v30 = vadd.f32 %v1487_v62, %v5083_v8  ;;  %v1447_v18 = vpop.f32.mrf.mxu0  ;;  %v1461_v14 = vpop.f32.mrf.mxu1  ;;  %v2471_v8 = vsel %vm2467_vm7, %v2444_v29, %v2446_v49 }
 0x1fc   : > { %v5257_v1 = vadd.f32 %v1447_v18, %v5067_v59  ;;  %v5260_v13 = vadd.f32 %v1461_v14, %v5075_v3  ;;  %v2450_v37 = vpop.permute.xlu2 %2449  ;;  %v3191_v62 = vld.sshfl [vmem:[#allocation1] sm:$0xff pattern:$0x73625140] }
 0x1fd   : > { %3217 = vrot.lane.b32.xlu0 %v3185_v57, %s4280_s7  ;;  %v3181_v14 = vld.sshfl [vmem:[#allocation1 + $0x20] sm:$0xff pattern:$0x73625140] }
 0x1fe   : > { %3213 = vrot.lane.b32.xlu2 %v3181_v14, %s4280_s7 }
 0x1ff   : > { %v2448_v31 = vpop.permute.xlu0 %2447 }
 0x200   : > { %v2472_v58 = vsel %vm2467_vm7, %v2446_v49, %v2448_v31  ;;  %v2473_v52 = vsel %vm2467_vm7, %v2448_v31, %v2450_v37  ;;  %v2456_v61 = vpop.permute.xlu1 %2455 }
 0x201   : > { %v2518_v5 = vsel %vm343_vm1, %v2473_v52, 0 }
 0x202   : > { %v1475_v42 = vpop.f32.mrf.mxu2  ;;  %v1489_v19 = vpop.f32.mrf.mxu3 }
 0x203   : > { %v5266_v40 = vadd.f32 %v1475_v42, %v5078_v44  ;;  %v5269_v59 = vadd.f32 %v1489_v19, %v5110_v12  ;;  %v1501_v3 = vpop.f32.mrf.mxu0  ;;  %v1515_v41 = vpop.f32.mrf.mxu1  ;;  %v2512_v44 = vsel %vm343_vm1, %v2471_v8, 0  ;;  %v2515_v12 = vsel %vm343_vm1, %v2472_v58, 0 }
 0x204   : > { %v5274_v60 = vadd.f32 %v1501_v3, %v5086_v4  ;;  %v5277_v27 = vadd.f32 %v1515_v41, %v5104_v11  ;;  %v3187_v4 = vld.sshfl [vmem:[#allocation1 + $0x38] sm:$0xff pattern:$0x73625140]  ;;  %v2452_v18 = vpop.permute.xlu2 %2451 }
 0x205   : > { %3219 = vrot.lane.b32.xlu1 %v3187_v4, %s4280_s7  ;;  %3221 = vrot.lane.b32.xlu0 %v3191_v62, %s4280_s7 }
 0x206   : > { %4029 = vmatmul.msk.bf16.vlgmr.msrb.gmra.mxu0 %vm339_vm2, %v5124_v24  ;;  %4030 = vmatmul.msk.bf16.vlgmr.msrb.gmra.mxu1 %vm339_vm2, %v5124_v24 }
 0x207   : > { %4031 = vmatmul.msk.bf16.vlgmr.msrb.gmra.mxu2 %vm339_vm2, %v5124_v24  ;;  %4032 = vmatmul.msk.bf16.vlgmr.msrb.gmra.mxu3 %vm339_vm2, %v5124_v24  ;;  %v2454_v34 = vpop.permute.xlu0 %2453 }
 0x208   : > { %2581 = vmatpush.bf16.msrb.mxu0 %v2509_v7  ;;  %2595 = vmatpush.bf16.msrb.mxu1 %v2512_v44  ;;  %v2475_v31 = vsel %vm2467_vm7, %v2452_v18, %v2454_v34  ;;  %v2476_v41 = vsel %vm2467_vm7, %v2454_v34, %v2456_v61 }
 0x209   : > { %2609 = vmatpush.bf16.msrb.mxu2 %v2515_v12  ;;  %2623 = vmatpush.bf16.msrb.mxu3 %v2518_v5  ;;  %v2527_v44 = vsel %vm343_vm1, %v2476_v41, 0  ;;  %v3183_v12 = vld.sshfl [vmem:[#allocation1 + $0x28] sm:$0xff pattern:$0x73625140] }
 0x20a   : > { %v1529_v11 = vpop.f32.mrf.mxu2  ;;  %v1543_v25 = vpop.f32.mrf.mxu3  ;;  %v3193_v5 = vld.sshfl [vmem:[#allocation1 + $0x8] sm:$0xff pattern:$0x73625140]  ;;  %3190 = vst [vmem:[#allocation1 + $0x20] ss:$4 sm:$0xff] %v4402_v6  ;;  %3215 = vrot.lane.b32.xlu2 %v3183_v12, %s4280_s7 }
 0x20b   : > { %v5295_v48 = vadd.f32 %v1529_v11, %v5107_v23  ;;  %v5298_v50 = vadd.f32 %v1543_v25, %v5137_v55  ;;  %v1503_v49 = vpop.f32.mrf.mxu0  ;;  %v1517_v53 = vpop.f32.mrf.mxu1  ;;  %v3195_v23 = vld.sshfl [vmem:[#allocation1 + $0x10] sm:$0xff pattern:$0x73625140] }
 0x20c   : > { %v5301_v2 = vadd.f32 %v1503_v49, %v5113_v45  ;;  %v5304_v54 = vadd.f32 %v1517_v53, %v5129_v32  ;;  %v4039_v55 = vld [vmem:[%s6037_s1 + $0x30] sm:$0xf]  ;;  %v4111_v45 = vld [vmem:[%s6037_s1 + $0x30] sm:$0x70]  ;;  %v2474_v32 = vsel %vm2467_vm7, %v2450_v37, %v2452_v18 }
 0x20d   : > { %3225 = vrot.lane.b32.xlu1 %v3195_v23, %s4280_s7  ;;  %v5323_v3 = vor.u32 %v4111_v45, %v4039_v55  ;;  %v2521_v7 = vsel %vm343_vm1, %v2474_v32, 0  ;;  %3223 = vrot.lane.b32.xlu0 %v3193_v5, %s4280_s7 }
 0x20f   : > { %v2458_v52 = vpop.permute.xlu0 %2457 }
 0x212   : > { %v1531_v29 = vpop.f32.mrf.mxu2  ;;  %v1545_v57 = vpop.f32.mrf.mxu3 }
 0x213   : > { %v5318_v42 = vadd.f32 %v1531_v29, %v5132_v35  ;;  %v5321_v19 = vadd.f32 %v1545_v57, %v5163_v36  ;;  %v1557_v26 = vpop.f32.mrf.mxu0  ;;  %v1571_v8 = vpop.f32.mrf.mxu1  ;;  %v2524_v35 = vsel %vm343_vm1, %v2475_v31, 0  ;;  %v2477_v36 = vsel %vm2467_vm7, %v2456_v61, %v2458_v52  ;;  %v3199_v61 = vld.sshfl [vmem:[#allocation1 + $0x20] sm:$0xff pattern:$0x73625140] }
 0x214   : > { %v5327_v37 = vadd.f32 %v1557_v26, %v5140_v17  ;;  %v5330_v58 = vadd.f32 %v1571_v8, %v5157_v63  ;;  %v2530_v17 = vsel %vm343_vm1, %v2477_v36, 0  ;;  %v2462_v63 = vpop.permute.xlu1 %2461 }
 0x215   : > { %3229 = vrot.lane.b32.xlu1 %v3199_v61, %s4280_s7 }
 0x216   : > { %4033 = vmatmul.msk.bf16.vlgmr.msra.gmra.mxu0 %vm339_vm2, %v5124_v24  ;;  %4034 = vmatmul.msk.bf16.vlgmr.msra.gmra.mxu1 %vm339_vm2, %v5124_v24  ;;  %v2464_v24 = vpop.permute.xlu2 %2463 }
 0x217   : > { %4041 = vmatmul.msk.bf16.vlgmr.msra.gmra.mxu2 %vm339_vm2, %v5323_v3  ;;  %4042 = vmatmul.msk.bf16.vlgmr.msra.gmra.mxu3 %vm339_vm2, %v5323_v3  ;;  %v2460_v62 = vpop.permute.xlu0 %2459  ;;  %v2480_v29 = vsel %vm2467_vm7, %v2462_v63, %v2464_v24 }
 0x218   : > { %2637 = vmatpush.bf16.msra.mxu0 %v2521_v7  ;;  %2651 = vmatpush.bf16.msra.mxu1 %v2524_v35 }
 0x219   : > { %2665 = vmatpush.bf16.msra.mxu2 %v2527_v44  ;;  %2679 = vmatpush.bf16.msra.mxu3 %v2530_v17 }
 0x21a   : > { %v1585_v21 = vpop.f32.mrf.mxu2  ;;  %v1599_v4 = vpop.f32.mrf.mxu3 }
 0x21b   : > { %v5349_v11 = vadd.f32 %v1585_v21, %v5160_v33  ;;  %v5352_v25 = vadd.f32 %v1599_v4, %v5182_v22  ;;  %v1559_v49 = vpop.f32.mrf.mxu0  ;;  %v1573_v53 = vpop.f32.mrf.mxu1  ;;  %v2478_v33 = vsel %vm2467_vm7, %v2458_v52, %v2460_v62  ;;  %v2479_v22 = vsel %vm2467_vm7, %v2460_v62, %v2462_v63  ;;  %v3201_v52 = vld.sshfl [vmem:[#allocation1 + $0x28] sm:$0xff pattern:$0x73625140] }
 0x21c   : > { %v5355_v6 = vadd.f32 %v1559_v49, %v5166_v9  ;;  %v5358_v34 = vadd.f32 %v1573_v53, %v5174_v28  ;;  %v2466_v18 = vpop.permute.xlu1 %2465  ;;  %v2533_v26 = vsel %vm343_vm1, %v2478_v33, 0 }
 0x21d   : > { %v2481_v57 = vsel %vm2467_vm7, %v2464_v24, %v2466_v18  ;;  %3231 = vrot.lane.b32.xlu1 %v3201_v52, %s4280_s7 }
 0x21e   : > { %v2824_v8 = vpop.permute.xlu2 %2823  ;;  %v2542_v41 = vsel %vm343_vm1, %v2481_v57, 0 }
 0x222   : > { %v1587_v14 = vpop.f32.mrf.mxu2  ;;  %v1601_v23 = vpop.f32.mrf.mxu3 }
 0x223   : > { %v5364_v55 = vadd.f32 %v1587_v14, %v5177_v16  ;;  %v5367_v9 = vadd.f32 %v1601_v23, %v5210_v56  ;;  %v1787_v45 = vpop.f32.mrf.mxu0  ;;  %v1801_v28 = vpop.f32.mrf.mxu1  ;;  %v2536_v16 = vsel %vm343_vm1, %v2479_v22, 0  ;;  %v2539_v56 = vsel %vm343_vm1, %v2480_v29, 0 }
 0x224   : > { %v5372_v32 = vadd.f32 %v1787_v45, %v5185_v15  ;;  %v5375_v31 = vadd.f32 %v1801_v28, %v5204_v43  ;;  %v3197_v15 = vld.sshfl [vmem:[#allocation1 + $0x18] sm:$0xff pattern:$0x73625140]  ;;  %v2826_v43 = vpop.permute.xlu0 %2825  ;;  %v2486_v5 = vpop.permute.xlu1 %2485 }
 0x225   : > { %3250 = vst [vmem:[#allocation1] ss:$4 sm:$0xff] %v4392_v0  ;;  %3227 = vrot.lane.b32.xlu2 %v3197_v15, %s4280_s7  ;;  %v2853_v14 = vsel %vm2851_vm8, %v2824_v8, %v2826_v43  ;;  %v3203_v15 = vld.sshfl [vmem:[#allocation1 + $0x30] sm:$0xff pattern:$0x73625140] }
 0x226   : > { %4043 = vmatmul.msk.bf16.vlgmr.msrb.gmra.mxu0 %vm339_vm2, %v5323_v3  ;;  %4044 = vmatmul.msk.bf16.vlgmr.msrb.gmra.mxu1 %vm339_vm2, %v5323_v3  ;;  %v2822_v21 = vpop.permute.xlu2 %2821 }
 0x227   : > { %4045 = vmatmul.msk.bf16.vlgmr.msrb.gmra.mxu2 %vm339_vm2, %v5323_v3  ;;  %4046 = vmatmul.msk.bf16.vlgmr.msrb.gmra.mxu3 %vm339_vm2, %v5323_v3  ;;  %v2852_v53 = vsel %vm2851_vm8, %v2822_v21, %v2824_v8 }
 0x228   : > { %2693 = vmatpush.bf16.msrb.mxu0 %v2533_v26  ;;  %2707 = vmatpush.bf16.msrb.mxu1 %v2536_v16 }
 0x229   : > { %2721 = vmatpush.bf16.msrb.mxu2 %v2539_v56  ;;  %2735 = vmatpush.bf16.msrb.mxu3 %v2542_v41 }
 0x22a   : > { %v1815_v7 = vpop.f32.mrf.mxu2  ;;  %v1829_v35 = vpop.f32.mrf.mxu3 }
 0x22b   : > { %v5393_v36 = vadd.f32 %v1815_v7, %v5207_v39  ;;  %v5396_v44 = vadd.f32 %v1829_v35, %v5227_v20  ;;  %v1789_v17 = vpop.f32.mrf.mxu0  ;;  %v1803_v12 = vpop.f32.mrf.mxu1  ;;  %v2490_v20 = vsel %vm2467_vm7, %v2466_v18, %v2486_v5 }
 0x22c   : > { %v5399_v0 = vadd.f32 %v1789_v17, %v5213_v38  ;;  %v5402_v63 = vadd.f32 %v1803_v12, %v5221_v47  ;;  %v3251_v24 = vld.sshfl [vmem:[#allocation1] sm:$0xff pattern:$0x73625140]  ;;  %v2828_v4 = vpop.permute.xlu0 %2827  ;;  %v2544_v18 = vsel %vm343_vm1, %v2490_v20, 0  ;;  %v2832_v28 = vpop.permute.xlu1 %2831 }
 0x22d   : > { %3253 = vrot.lane.b32.xlu0 %v3251_v24, %s4280_s7  ;;  %v2854_v23 = vsel %vm2851_vm8, %v2826_v43, %v2828_v4  ;;  %3233 = vrot.lane.b32.xlu2 %v3203_v15, %s4280_s7  ;;  %s5868_s7 = scalar_lea.vmem [#allocation5], %s4117_s6 }
 0x22e   : > { %v2893_v45 = vsel %vm343_vm1, %v2854_v23, 0  ;;  %v2834_v41 = vpop.permute.xlu2 %2833  ;;  %s3800_s13 = sshll.u32 %s5868_s7, 4  ;;  %s5993_s13 = int_to_ptr.vmem [resolvable:$true] %s3800_s13 }
 0x22f   : > { %v2857_v5 = vsel %vm2851_vm8, %v2832_v28, %v2834_v41 }
 0x232   : > { %v1817_v39 = vpop.f32.mrf.mxu2  ;;  %v1831_v49 = vpop.f32.mrf.mxu3 }
 0x233   : > { %v5408_v61 = vadd.f32 %v1817_v39, %v5224_v10  ;;  %v5411_v38 = vadd.f32 %v1831_v49, %v5257_v1  ;;  %v1843_v47 = vpop.f32.mrf.mxu0  ;;  %v1857_v62 = vpop.f32.mrf.mxu1  ;;  %v2887_v10 = vsel %vm343_vm1, %v2852_v53, 0  ;;  %v2890_v1 = vsel %vm343_vm1, %v2853_v14, 0 }
 0x234   : > { %v5416_v33 = vadd.f32 %v1843_v47, %v5230_v46  ;;  %v5419_v22 = vadd.f32 %v1857_v62, %v5250_v51  ;;  %v2830_v43 = vpop.permute.xlu0 %2829  ;;  %v2836_v52 = vpop.permute.xlu1 %2835 }
 0x235   : > { %v2855_v35 = vsel %vm2851_vm8, %v2828_v4, %v2830_v43  ;;  %v2858_v24 = vsel %vm2851_vm8, %v2834_v41, %v2836_v52 }
 0x236   : > { %4047 = vmatmul.msk.bf16.vlgmr.msra.gmra.mxu0 %vm339_vm2, %v5323_v3  ;;  %4048 = vmatmul.msk.bf16.vlgmr.msra.gmra.mxu1 %vm339_vm2, %v5323_v3  ;;  %v2896_v4 = vsel %vm343_vm1, %v2855_v35, 0  ;;  %v2905_v49 = vsel %vm343_vm1, %v2858_v24, 0  ;;  %v2840_v20 = vpop.permute.xlu2 %2839 }
 0x237   : > { %4049 = vmatmul.msk.bf16.vlgmr.msra.gmra.mxu2 %vm339_vm2, %v5323_v3  ;;  %4050 = vmatmul.msk.bf16.vlgmr.msra.gmra.mxu3 %vm339_vm2, %v5323_v3 }
 0x238   : > { %2749 = vmatpush.bf16.msra.mxu0 %v2544_v18  ;;  %2937 = vmatpush.bf16.msra.mxu1 %v2887_v10  ;;  %v4060_v10 = vld [vmem:[%s6037_s1 + $0x38] sm:$0xf] }
 0x239   : > { %2951 = vmatpush.bf16.msra.mxu2 %v2890_v1  ;;  %2965 = vmatpush.bf16.msra.mxu3 %v2893_v45 }
 0x23a   : > { %v1871_v46 = vpop.f32.mrf.mxu2  ;;  %v1885_v51 = vpop.f32.mrf.mxu3 }
 0x23b   : > { %v5434_v29 = vadd.f32 %v1871_v46, %v5253_v30  ;;  %v5437_v57 = vadd.f32 %v1885_v51, %v5274_v60  ;;  %v1845_v26 = vpop.f32.mrf.mxu0  ;;  %v1859_v16 = vpop.f32.mrf.mxu1  ;;  %v2856_v60 = vsel %vm2851_vm8, %v2830_v43, %v2832_v28 }
 0x23c   : > { %v5440_v8 = vadd.f32 %v1845_v26, %v5260_v13  ;;  %v5443_v56 = vadd.f32 %v1859_v16, %v5266_v40 }
 0x23f   : > { %v2838_v1 = vpop.permute.xlu1 %2837 }
 0x242   : > { %v1873_v7 = vpop.f32.mrf.mxu2  ;;  %v1887_v30 = vpop.f32.mrf.mxu3 }
 0x243   : > { %v5449_v17 = vadd.f32 %v1873_v7, %v5269_v59  ;;  %v5452_v13 = vadd.f32 %v1887_v30, %v5301_v2  ;;  %v1899_v40 = vpop.f32.mrf.mxu0  ;;  %v1913_v12 = vpop.f32.mrf.mxu1  ;;  %v2899_v59 = vsel %vm343_vm1, %v2856_v60, 0  ;;  %v2902_v2 = vsel %vm343_vm1, %v2857_v5, 0 }
 0x244   : > { %v5457_v21 = vadd.f32 %v1899_v40, %v5277_v27  ;;  %v5460_v39 = vadd.f32 %v1913_v12, %v5295_v48 }
 0x246   : > { %4051 = vmatmul.msk.bf16.vlgmr.msrb.gmra.mxu0 %vm339_vm2, %v5323_v3  ;;  %4052 = vmatmul.msk.bf16.vlgmr.msrb.gmra.mxu1 %vm339_vm2, %v5323_v3 }
 0x247   : > { %4053 = vmatmul.msk.bf16.vlgmr.msrb.gmra.mxu2 %vm339_vm2, %v5323_v3  ;;  %4054 = vmatmul.msk.bf16.vlgmr.msrb.gmra.mxu3 %vm339_vm2, %v5323_v3  ;;  %v2842_v45 = vpop.permute.xlu0 %2841 }
 0x248   : > { %2979 = vmatpush.bf16.msrb.mxu0 %v2896_v4  ;;  %2993 = vmatpush.bf16.msrb.mxu1 %v2899_v59  ;;  %v2861_v43 = vsel %vm2851_vm8, %v2840_v20, %v2842_v45 }
 0x249   : > { %3007 = vmatpush.bf16.msrb.mxu2 %v2902_v2  ;;  %3021 = vmatpush.bf16.msrb.mxu3 %v2905_v49 }
 0x24a   : > { %v1927_v27 = vpop.f32.mrf.mxu2  ;;  %v1941_v48 = vpop.f32.mrf.mxu3 }
 0x24b   : > { %v5475_v53 = vadd.f32 %v1927_v27, %v5298_v50  ;;  %v5478_v47 = vadd.f32 %v1941_v48, %v5327_v37  ;;  %v1901_v62 = vpop.f32.mrf.mxu0  ;;  %v1915_v14 = vpop.f32.mrf.mxu1  ;;  %v4112_v50 = vld [vmem:[%s6037_s1 + $0x38] sm:$0x70] }
 0x24c   : > { %v5481_v23 = vadd.f32 %v1901_v62, %v5304_v54  ;;  %v5484_v18 = vadd.f32 %v1915_v14, %v5318_v42  ;;  %v2844_v37 = vpop.permute.xlu2 %2843  ;;  %v5492_v51 = vor.u32 %v4112_v50, %v4060_v10  ;;  %v2859_v54 = vsel %vm2851_vm8, %v2836_v52, %v2838_v1  ;;  %v2850_v2 = vpop.permute.xlu1 %2849 }
 0x24d   : > { %v2860_v42 = vsel %vm2851_vm8, %v2838_v1, %v2840_v20  ;;  %v2862_v7 = vsel %vm2851_vm8, %v2842_v45, %v2844_v37  ;;  %v2908_v52 = vsel %vm343_vm1, %v2859_v54, 0 }
 0x24e   : > { %v2917_v60 = vsel %vm343_vm1, %v2862_v7, 0 }
 0x252   : > { %v1929_v28 = vpop.f32.mrf.mxu2  ;;  %v1943_v46 = vpop.f32.mrf.mxu3 }
 0x253   : > { %v5497_v26 = vadd.f32 %v1929_v28, %v5321_v19  ;;  %v5500_v16 = vadd.f32 %v1943_v46, %v5355_v6  ;;  %v1955_v41 = vpop.f32.mrf.mxu0  ;;  %v1969_v15 = vpop.f32.mrf.mxu1  ;;  %v2911_v19 = vsel %vm343_vm1, %v2860_v42, 0  ;;  %v2914_v6 = vsel %vm343_vm1, %v2861_v43, 0 }
 0x254   : > { %v5505_v30 = vadd.f32 %v1955_v41, %v5330_v58  ;;  %v5508_v35 = vadd.f32 %v1969_v15, %v5349_v11  ;;  %v2846_v49 = vpop.permute.xlu2 %2845 }
 0x255   : > { %v2863_v48 = vsel %vm2851_vm8, %v2844_v37, %v2846_v49 }
 0x256   : > { %4055 = vmatmul.msk.bf16.vlgmr.msra.gmra.mxu0 %vm339_vm2, %v5323_v3  ;;  %4062 = vmatmul.msk.bf16.vlgmr.msra.gmra.mxu1 %vm339_vm2, %v5492_v51  ;;  %v2920_v45 = vsel %vm343_vm1, %v2863_v48, 0 }
 0x257   : > { %4063 = vmatmul.msk.bf16.vlgmr.msra.gmra.mxu2 %vm339_vm2, %v5492_v51  ;;  %4064 = vmatmul.msk.bf16.vlgmr.msra.gmra.mxu3 %vm339_vm2, %v5492_v51  ;;  %v2848_v59 = vpop.permute.xlu0 %2847 }
 0x258   : > { %3035 = vmatpush.bf16.msra.mxu0 %v2908_v52  ;;  %3049 = vmatpush.bf16.msra.mxu1 %v2911_v19 }
 0x259   : > { %3063 = vmatpush.bf16.msra.mxu2 %v2914_v6  ;;  %3077 = vmatpush.bf16.msra.mxu3 %v2917_v60 }
 0x25a   : > { %v1983_v58 = vpop.f32.mrf.mxu2  ;;  %v2171_v11 = vpop.f32.mrf.mxu3 }
 0x25b   : > { %v5523_v3 = vadd.f32 %v1983_v58, %v5352_v25  ;;  %v5526_v40 = vadd.f32 %v2171_v11, %v5372_v32  ;;  %v1957_v12 = vpop.f32.mrf.mxu0  ;;  %v1971_v5 = vpop.f32.mrf.mxu1  ;;  %v2864_v25 = vsel %vm2851_vm8, %v2846_v49, %v2848_v59 }
 0x25c   : > { %v5529_v24 = vadd.f32 %v1957_v12, %v5358_v34  ;;  %v5532_v4 = vadd.f32 %v1971_v5, %v5364_v55  ;;  %v2865_v55 = vsel %vm2851_vm8, %v2848_v59, %v2850_v2  ;;  %v2923_v37 = vsel %vm343_vm1, %v2864_v25, 0  ;;  %v3210_v28 = vpop.permute.xlu1 %3209 }
 0x25f   : > { %v2870_v1 = vpop.permute.xlu0 %2869 }
 0x262   : > { %v1985_v20 = vpop.f32.mrf.mxu2  ;;  %v2173_v27 = vpop.f32.mrf.mxu3 }
 0x263   : > { %v5537_v32 = vadd.f32 %v1985_v20, %v5367_v9  ;;  %v5540_v62 = vadd.f32 %v2173_v27, %v5399_v0  ;;  %v2185_v34 = vpop.f32.mrf.mxu0  ;;  %v2199_v14 = vpop.f32.mrf.mxu1  ;;  %v2874_v9 = vsel %vm2851_vm8, %v2850_v2, %v2870_v1 }
 0x264   : > { %v5544_v10 = vadd.f32 %v2185_v34, %v5375_v31  ;;  %v5547_v50 = vadd.f32 %v2199_v14, %v5393_v36  ;;  %v2926_v31 = vsel %vm343_vm1, %v2865_v55, 0  ;;  %v2928_v0 = vsel %vm343_vm1, %v2874_v9, 0  ;;  %v3212_v36 = vpop.permute.xlu2 %3211  ;;  %v3208_v6 = vpop.permute.xlu1 %3207 }
 0x265   : > { %v3237_v12 = vsel %vm3235_vm9, %v3208_v6, %v3210_v28 }
 0x266   : > { %4065 = vmatmul.msk.bf16.vlgmr.msrb.gmra.mxu0 %vm339_vm2, %v5492_v51  ;;  %4066 = vmatmul.msk.bf16.vlgmr.msrb.gmra.mxu1 %vm339_vm2, %v5492_v51 }
 0x267   : > { %4067 = vmatmul.msk.bf16.vlgmr.msrb.gmra.mxu2 %vm339_vm2, %v5492_v51  ;;  %4068 = vmatmul.msk.bf16.vlgmr.msrb.gmra.mxu3 %vm339_vm2, %v5492_v51  ;;  %v3206_v19 = vpop.permute.xlu0 %3205 }
 0x268   : > { %3091 = vmatpush.bf16.msrb.mxu0 %v2920_v45  ;;  %3105 = vmatpush.bf16.msrb.mxu1 %v2923_v37  ;;  %v3236_v2 = vsel %vm3235_vm9, %v3206_v19, %v3208_v6 }
 0x269   : > { %3119 = vmatpush.bf16.msrb.mxu2 %v2926_v31  ;;  %3133 = vmatpush.bf16.msrb.mxu3 %v2928_v0  ;;  %v3271_v48 = vsel %vm343_vm1, %v3236_v2, 0  ;;  %v4081_v2 = vld [vmem:[%s6037_s1 + $0x40] sm:$0xf] }
 0x26a   : > { %v2213_v46 = vpop.f32.mrf.mxu2  ;;  %v2227_v54 = vpop.f32.mrf.mxu3 }
 0x26b   : > { %v5563_v42 = vadd.f32 %v2213_v46, %v5396_v44  ;;  %v5566_v41 = vadd.f32 %v2227_v54, %v5416_v33  ;;  %v2187_v15 = vpop.f32.mrf.mxu0  ;;  %v2201_v43 = vpop.f32.mrf.mxu1  ;;  %v3238_v44 = vsel %vm3235_vm9, %v3210_v28, %v3212_v36 }
 0x26c   : > { %v5569_v7 = vadd.f32 %v2187_v15, %v5402_v63  ;;  %v5572_v52 = vadd.f32 %v2201_v43, %v5408_v61  ;;  %v3214_v60 = vpop.permute.xlu2 %3213  ;;  %v3277_v27 = vsel %vm343_vm1, %v3238_v44, 0 }
 0x26d   : > { %v3239_v61 = vsel %vm3235_vm9, %v3212_v36, %v3214_v60 }
 0x272   : > { %v2215_v58 = vpop.f32.mrf.mxu2  ;;  %v2229_v11 = vpop.f32.mrf.mxu3 }
 0x273   : > { %v5577_v33 = vadd.f32 %v2215_v58, %v5411_v38  ;;  %v5580_v5 = vadd.f32 %v2229_v11, %v5440_v8  ;;  %v2241_v63 = vpop.f32.mrf.mxu0  ;;  %v2255_v59 = vpop.f32.mrf.mxu1  ;;  %v3274_v38 = vsel %vm343_vm1, %v3237_v12, 0  ;;  %v3280_v8 = vsel %vm343_vm1, %v3239_v61, 0 }
 0x274   : > { %v5585_v49 = vadd.f32 %v2241_v63, %v5419_v22  ;;  %v5588_v20 = vadd.f32 %v2255_v59, %v5434_v29  ;;  %v3218_v22 = vpop.permute.xlu0 %3217  ;;  %v3216_v28 = vpop.permute.xlu2 %3215 }
 0x275   : > { %v3240_v46 = vsel %vm3235_vm9, %v3214_v60, %v3216_v28 }
 0x276   : > { %4069 = vmatmul.msk.bf16.vlgmr.msra.gmra.mxu0 %vm339_vm2, %v5492_v51  ;;  %4070 = vmatmul.msk.bf16.vlgmr.msra.gmra.mxu1 %vm339_vm2, %v5492_v51  ;;  %v3283_v60 = vsel %vm343_vm1, %v3240_v46, 0 }
 0x277   : > { %4071 = vmatmul.msk.bf16.vlgmr.msra.gmra.mxu2 %vm339_vm2, %v5492_v51  ;;  %4072 = vmatmul.msk.bf16.vlgmr.msra.gmra.mxu3 %vm339_vm2, %v5492_v51  ;;  %v3220_v9 = vpop.permute.xlu1 %3219 }
 0x278   : > { %3335 = vmatpush.bf16.msra.mxu1 %v3274_v38  ;;  %3349 = vmatpush.bf16.msra.mxu2 %v3277_v27 }
 0x279   : > { %3363 = vmatpush.bf16.msra.mxu3 %v3280_v8  ;;  %3321 = vmatpush.bf16.msra.mxu0 %v3271_v48 }
 0x27a   : > { %v2269_v29 = vpop.f32.mrf.mxu2  ;;  %v2283_v25 = vpop.f32.mrf.mxu3 }
 0x27b   : > { %v5603_v34 = vadd.f32 %v2269_v29, %v5437_v57  ;;  %v5606_v14 = vadd.f32 %v2283_v25, %v5457_v21  ;;  %v2243_v55 = vpop.f32.mrf.mxu0  ;;  %v2257_v1 = vpop.f32.mrf.mxu1  ;;  %v3241_v57 = vsel %vm3235_vm9, %v3216_v28, %v3218_v22 }
 0x27c   : > { %v5609_v45 = vadd.f32 %v2243_v55, %v5443_v56  ;;  %v5612_v37 = vadd.f32 %v2257_v1, %v5449_v17  ;;  %v3222_v31 = vpop.permute.xlu0 %3221  ;;  %v3242_v17 = vsel %vm3235_vm9, %v3218_v22, %v3220_v9 }
 0x27d   : > { %v3243_v43 = vsel %vm3235_vm9, %v3220_v9, %v3222_v31 }
 0x27e   : > { %v3292_v58 = vsel %vm343_vm1, %v3243_v43, 0 }
 0x27f   : > { %v3228_v38 = vpop.permute.xlu2 %3227 }
 0x282   : > { %v2271_v0 = vpop.f32.mrf.mxu2  ;;  %v2285_v36 = vpop.f32.mrf.mxu3 }
 0x283   : > { %v5617_v21 = vadd.f32 %v2271_v0, %v5452_v13  ;;  %v5620_v54 = vadd.f32 %v2285_v36, %v5481_v23  ;;  %v2297_v56 = vpop.f32.mrf.mxu0  ;;  %v2311_v15 = vpop.f32.mrf.mxu1  ;;  %v3286_v13 = vsel %vm343_vm1, %v3241_v57, 0  ;;  %v3289_v23 = vsel %vm343_vm1, %v3242_v17, 0 }
 0x284   : > { %v5625_v19 = vadd.f32 %v2297_v56, %v5460_v39  ;;  %v5628_v6 = vadd.f32 %v2311_v15, %v5475_v53  ;;  %v3226_v39 = vpop.permute.xlu1 %3225  ;;  %v3224_v27 = vpop.permute.xlu0 %3223 }
 0x285   : > { %v3246_v9 = vsel %vm3235_vm9, %v3226_v39, %v3228_v38 }
 0x286   : > { %4073 = vmatmul.msk.bf16.vlgmr.msrb.gmra.mxu0 %vm339_vm2, %v5492_v51  ;;  %4074 = vmatmul.msk.bf16.vlgmr.msrb.gmra.mxu1 %vm339_vm2, %v5492_v51 }
 0x287   : > { %4075 = vmatmul.msk.bf16.vlgmr.msrb.gmra.mxu2 %vm339_vm2, %v5492_v51  ;;  %4076 = vmatmul.msk.bf16.vlgmr.msrb.gmra.mxu3 %vm339_vm2, %v5492_v51 }
 0x288   : > { %3377 = vmatpush.bf16.msrb.mxu0 %v3283_v60  ;;  %3391 = vmatpush.bf16.msrb.mxu1 %v3286_v13 }
 0x289   : > { %3405 = vmatpush.bf16.msrb.mxu2 %v3289_v23  ;;  %3419 = vmatpush.bf16.msrb.mxu3 %v3292_v58  ;;  %v3234_v23 = vpop.permute.xlu2 %3233 }
 0x28a   : > { %v2325_v53 = vpop.f32.mrf.mxu2  ;;  %v2339_v11 = vpop.f32.mrf.mxu3 }
 0x28b   : > { %v5643_v44 = vadd.f32 %v2325_v53, %v5478_v47  ;;  %v5646_v12 = vadd.f32 %v2339_v11, %v5505_v30  ;;  %v2299_v63 = vpop.f32.mrf.mxu0  ;;  %v2313_v59 = vpop.f32.mrf.mxu1  ;;  %v4113_v47 = vld [vmem:[%s6037_s1 + $0x40] sm:$0x70] }
 0x28c   : > { %v5649_v61 = vadd.f32 %v2299_v63, %v5484_v18  ;;  %v5652_v51 = vadd.f32 %v2313_v59, %v5497_v26  ;;  %v3230_v30 = vpop.permute.xlu1 %3229  ;;  %v5660_v22 = vor.u32 %v4113_v47, %v4081_v2  ;;  %v3244_v18 = vsel %vm3235_vm9, %v3222_v31, %v3224_v27 }
 0x28d   : > { %v3245_v26 = vsel %vm3235_vm9, %v3224_v27, %v3226_v39  ;;  %v3247_v28 = vsel %vm3235_vm9, %v3228_v38, %v3230_v30  ;;  %v3295_v31 = vsel %vm343_vm1, %v3244_v18, 0 }
 0x28e   : > { %v3304_v46 = vsel %vm343_vm1, %v3247_v28, 0 }
 0x292   : > { %v2327_v8 = vpop.f32.mrf.mxu2  ;;  %v2341_v48 = vpop.f32.mrf.mxu3 }
 0x293   : > { %v5665_v29 = vadd.f32 %v2327_v8, %v5500_v16  ;;  %v5668_v25 = vadd.f32 %v2341_v48, %v5529_v24  ;;  %v2353_v55 = vpop.f32.mrf.mxu0  ;;  %v2367_v1 = vpop.f32.mrf.mxu1  ;;  %v3298_v16 = vsel %vm343_vm1, %v3245_v26, 0  ;;  %v3301_v24 = vsel %vm343_vm1, %v3246_v9, 0 }
 0x294   : > { %v5673_v0 = vadd.f32 %v2353_v55, %v5508_v35  ;;  %v5676_v36 = vadd.f32 %v2367_v1, %v5523_v3  ;;  %v3232_v13 = vpop.permute.xlu1 %3231 }
 0x295   : > { %v3248_v11 = vsel %vm3235_vm9, %v3230_v30, %v3232_v13 }
 0x296   : > { %4083 = vmatmul.msk.bf16.vlgmr.msra.gmra.mxu0 %vm339_vm2, %v5660_v22  ;;  %4084 = vmatmul.msk.bf16.vlgmr.msra.gmra.mxu1 %vm339_vm2, %v5660_v22  ;;  %v3307_v27 = vsel %vm343_vm1, %v3248_v11, 0 }
 0x297   : > { %4085 = vmatmul.msk.bf16.vlgmr.msra.gmra.mxu2 %vm339_vm2, %v5660_v22  ;;  %4086 = vmatmul.msk.bf16.vlgmr.msra.gmra.mxu3 %vm339_vm2, %v5660_v22 }
 0x298   : > { %3433 = vmatpush.bf16.msra.mxu0 %v3295_v31  ;;  %3447 = vmatpush.bf16.msra.mxu1 %v3298_v16 }
 0x299   : > { %3461 = vmatpush.bf16.msra.mxu2 %v3301_v24  ;;  %3475 = vmatpush.bf16.msra.mxu3 %v3304_v46 }
 0x29a   : > { %v2555_v35 = vpop.f32.mrf.mxu2  ;;  %v2569_v3 = vpop.f32.mrf.mxu3 }
 0x29b   : > { %v5691_v57 = vadd.f32 %v2555_v35, %v5526_v40  ;;  %v5694_v56 = vadd.f32 %v2569_v3, %v5544_v10  ;;  %v2355_v15 = vpop.f32.mrf.mxu0  ;;  %v2369_v17 = vpop.f32.mrf.mxu1  ;;  %v3249_v40 = vsel %vm3235_vm9, %v3232_v13, %v3234_v23 }
 0x29c   : > { %v5697_v43 = vadd.f32 %v2355_v15, %v5532_v4  ;;  %v5700_v60 = vadd.f32 %v2369_v17, %v5537_v32  ;;  %v3310_v38 = vsel %vm343_vm1, %v3249_v40, 0 }
 0x29f   : > { %v3254_v58 = vpop.permute.xlu0 %3253 }
 0x2a0   : > { %v3258_v32 = vsel %vm3235_vm9, %v3234_v23, %v3254_v58 }
 0x2a2   : > { %v2557_v39 = vpop.f32.mrf.mxu2  ;;  %v2571_v53 = vpop.f32.mrf.mxu3 }
 0x2a3   : > { %v5705_v10 = vadd.f32 %v2557_v39, %v5540_v62  ;;  %v5708_v63 = vadd.f32 %v2571_v53, %v5569_v7  ;;  %v2583_v4 = vpop.f32.mrf.mxu0  ;;  %v2597_v59 = vpop.f32.mrf.mxu1  ;;  %v3312_v62 = vsel %vm343_vm1, %v3258_v32, 0 }
 0x2a4   : > { %v5712_v2 = vadd.f32 %v2583_v4, %v5547_v50  ;;  %v5715_v47 = vadd.f32 %v2597_v59, %v5563_v42 }
 0x2a6   : > { %4087 = vmatmul.msk.bf16.vlgmr.msrb.gmra.mxu0 %vm339_vm2, %v5660_v22  ;;  %4088 = vmatmul.msk.bf16.vlgmr.msrb.gmra.mxu1 %vm339_vm2, %v5660_v22 }
 0x2a7   : > { %4089 = vmatmul.msk.bf16.vlgmr.msrb.gmra.mxu2 %vm339_vm2, %v5660_v22  ;;  %4090 = vmatmul.msk.bf16.vlgmr.msrb.gmra.mxu3 %vm339_vm2, %v5660_v22 }
 0x2a8   : > { %3489 = vmatpush.bf16.msrb.mxu0 %v3307_v27  ;;  %3503 = vmatpush.bf16.msrb.mxu1 %v3310_v38 }
 0x2a9   : > { %3517 = vmatpush.bf16.msrb.mxu2 %v3312_v62 }
 0x2aa   : > { %v2611_v50 = vpop.f32.mrf.mxu2  ;;  %v2625_v42 = vpop.f32.mrf.mxu3 }
 0x2ab   : > { %v5729_v7 = vadd.f32 %v2611_v50, %v5566_v41  ;;  %v5732_v30 = vadd.f32 %v2625_v42, %v5585_v49  ;;  %v2585_v8 = vpop.f32.mrf.mxu0  ;;  %v2599_v48 = vpop.f32.mrf.mxu1 }
 0x2ac   : > { %v5735_v18 = vadd.f32 %v2585_v8, %v5572_v52  ;;  %v5738_v26 = vadd.f32 %v2599_v48, %v5577_v33 }
 0x2b2   : > { %v2613_v55 = vpop.f32.mrf.mxu2  ;;  %v2627_v1 = vpop.f32.mrf.mxu3 }
 0x2b3   : > { %v5741_v9 = vadd.f32 %v2613_v55, %v5580_v5  ;;  %v5744_v28 = vadd.f32 %v2627_v1, %v5609_v45  ;;  %v2639_v41 = vpop.f32.mrf.mxu0  ;;  %v2653_v31 = vpop.f32.mrf.mxu1 }
 0x2b4   : > { %v5747_v49 = vadd.f32 %v2639_v41, %v5588_v20  ;;  %v5750_v16 = vadd.f32 %v2653_v31, %v5603_v34 }
 0x2b6   : > { %4091 = vmatmul.msk.bf16.vlgmr.msra.gmra.mxu0 %vm339_vm2, %v5660_v22  ;;  %4092 = vmatmul.msk.bf16.vlgmr.msra.gmra.mxu1 %vm339_vm2, %v5660_v22 }
 0x2b7   : > { %4093 = vmatmul.msk.bf16.vlgmr.msra.gmra.mxu2 %vm339_vm2, %v5660_v22  ;;  %4094 = vmatmul.msk.bf16.vlgmr.msra.gmra.mxu3 %vm339_vm2, %v5660_v22 }
 0x2ba   : > { %v2667_v52 = vpop.f32.mrf.mxu2  ;;  %v2681_v33 = vpop.f32.mrf.mxu3 }
 0x2bb   : > { %v2764_v5 = vadd.f32 %v2667_v52, %v5606_v14  ;;  %v5762_v20 = vadd.f32 %v2681_v33, %v5625_v19  ;;  %v2641_v34 = vpop.f32.mrf.mxu0  ;;  %v2655_v45 = vpop.f32.mrf.mxu1 }
 0x2bc   : > { %v5765_v24 = vadd.f32 %v2641_v34, %v5612_v37  ;;  %v5768_v46 = vadd.f32 %v2655_v45, %v5617_v21 }
 0x2c2   : > { %v2669_v35 = vpop.f32.mrf.mxu2  ;;  %v2683_v3 = vpop.f32.mrf.mxu3 }
 0x2c3   : > { %v5771_v15 = vadd.f32 %v2669_v35, %v5620_v54  ;;  %v5774_v17 = vadd.f32 %v2683_v3, %v5649_v61  ;;  %v2695_v14 = vpop.f32.mrf.mxu0  ;;  %v2709_v13 = vpop.f32.mrf.mxu1 }
 0x2c4   : > { %v5777_v19 = vadd.f32 %v2695_v14, %v5628_v6  ;;  %v5780_v23 = vadd.f32 %v2709_v13, %v5643_v44 }
 0x2c6   : > { %4095 = vmatmul.msk.bf16.vlgmr.msrb.gmra.mxu0 %vm339_vm2, %v5660_v22  ;;  %4096 = vmatmul.msk.bf16.vlgmr.msrb.gmra.mxu1 %vm339_vm2, %v5660_v22 }
 0x2c7   : > { %4097 = vmatmul.msk.bf16.vlgmr.msrb.gmra.mxu2 %vm339_vm2, %v5660_v22 }
 0x2ca   : > { %v2723_v37 = vpop.f32.mrf.mxu2  ;;  %v2737_v21 = vpop.f32.mrf.mxu3 }
 0x2cb   : > { %v2768_v54 = vadd.f32 %v2723_v37, %v5646_v12  ;;  %v5790_v61 = vadd.f32 %v2737_v21, %v5673_v0  ;;  %v2697_v6 = vpop.f32.mrf.mxu0  ;;  %v2711_v58 = vpop.f32.mrf.mxu1 }
 0x2cc   : > { %v5793_v44 = vadd.f32 %v2697_v6, %v5652_v51  ;;  %v5796_v39 = vadd.f32 %v2711_v58, %v5665_v29  ;;  %v5851_v58 = vld [vmem:[%s6038_s2] sm:$0xff] }
 0x2ce   : > { %6045 = vst [vmem:[#allocation8_spill] sm:$0xff] %v5796_v39 }
 0x2d2   : > { %v2725_v53 = vpop.f32.mrf.mxu2  ;;  %v2739_v11 = vpop.f32.mrf.mxu3 }
 0x2d3   : > { %v5799_v40 = vadd.f32 %v2725_v53, %v5668_v25  ;;  %v5802_v22 = vadd.f32 %v2739_v11, %v5697_v43  ;;  %v2751_v12 = vpop.f32.mrf.mxu0  ;;  %v2939_v4 = vpop.f32.mrf.mxu1 }
 0x2d4   : > { %v5805_v0 = vadd.f32 %v2751_v12, %v5676_v36  ;;  %v3140_v53 = vadd.f32 %v2939_v4, %v5691_v57 }
 0x2d5   : > { %6046 = vst [vmem:[#allocation9_spill] sm:$0xff] %v5799_v40 }
 0x2d6   : > { %6047 = vst [vmem:[#allocation10_spill] sm:$0xff] %v5802_v22 }
 0x2d7   : > { %6048 = vst [vmem:[#allocation11_spill] sm:$0xff] %v5805_v0 }
 0x2da   : > { %v2953_v59 = vpop.f32.mrf.mxu2  ;;  %v2967_v32 = vpop.f32.mrf.mxu3 }
 0x2db   : > { %v2753_v51 = vpop.f32.mrf.mxu0  ;;  %v2941_v27 = vpop.f32.mrf.mxu1  ;;  %v3141_v11 = vadd.f32 %v2953_v59, %v5694_v56  ;;  %v3142_v56 = vadd.f32 %v2967_v32, %v5712_v2 }
 0x2dc   : > { %v5808_v29 = vadd.f32 %v2753_v51, %v5700_v60  ;;  %v3558_v51 = vperm.slane %v5851_v58, 0 }
 0x2de   : > { %6049 = vst [vmem:[#allocation12_spill] sm:$0xff] %v5808_v29 }
 0x2e2   : > { %v2955_v38 = vpop.f32.mrf.mxu2  ;;  %v2969_v62 = vpop.f32.mrf.mxu3 }
 0x2e3   : > { %v2981_v50 = vpop.f32.mrf.mxu0  ;;  %v2995_v25 = vpop.f32.mrf.mxu1  ;;  %v3156_v39 = vadd.f32 %v2955_v38, %v5708_v63 }
 0x2e4   : > { %v3143_v59 = vadd.f32 %v2981_v50, %v5715_v47  ;;  %v3144_v63 = vadd.f32 %v2995_v25, %v5729_v7 }
 0x2ea   : > { %v5810_v42 = vpop.f32.mrf.mxu2  ;;  %v5812_v43 = vpop.f32.mrf.mxu3 }
 0x2eb   : > { %v2983_v8 = vpop.f32.mrf.mxu0  ;;  %v5814_v48 = vpop.f32.mrf.mxu1 }
 0x2f2   : > { %v5816_v36 = vpop.f32.mrf.mxu2  ;;  %v5818_v55 = vpop.f32.mrf.mxu3 }
 0x2f3   : > { %v5820_v1 = vpop.f32.mrf.mxu0  ;;  %v3051_v41 = vpop.f32.mrf.mxu1 }
 0x2f4   : > { %v5822_v60 = vadd.f32 %v3051_v41, %v2764_v5  ;;  %v3559_v41 = vperm.slane %v5851_v58, 1 }
 0x2fa   : > { %v5824_v31 = vpop.f32.mrf.mxu2  ;;  %v5826_v52 = vpop.f32.mrf.mxu3 }
 0x2fb   : > { %v5828_v33 = vpop.f32.mrf.mxu0  ;;  %v5830_v34 = vpop.f32.mrf.mxu1 }
 0x302   : > { %v5832_v45 = vpop.f32.mrf.mxu2  ;;  %v5834_v35 = vpop.f32.mrf.mxu3 }
 0x303   : > { %v5836_v3 = vpop.f32.mrf.mxu0  ;;  %v3107_v14 = vpop.f32.mrf.mxu1 }
 0x304   : > { %v5838_v13 = vadd.f32 %v3107_v14, %v2768_v54 }
 0x306   : > { %6050 = vst [vmem:[#allocation13_spill] sm:$0xff] %v5838_v13 }
 0x30a   : > { %v5840_v5 = vpop.f32.mrf.mxu2  ;;  %v5842_v37 = vpop.f32.mrf.mxu3 }
 0x30b   : > { %6051 = vst [vmem:[#allocation14_spill] sm:$0xff] %v5842_v37  ;;  %v5844_v21 = vpop.f32.mrf.mxu0  ;;  %v5846_v6 = vpop.f32.mrf.mxu1 }
 0x30c   : > { %6052 = vst [vmem:[#allocation15_spill] sm:$0xff] %v5844_v21  ;;  %v3155_v21 = vadd.f32 %v2941_v27, %v5705_v10  ;;  %v3158_v27 = vadd.f32 %v2983_v8, %v5738_v26  ;;  %v3145_v26 = vadd.f32 %v5810_v42, %v5732_v30  ;;  %v3146_v30 = vadd.f32 %v5812_v43, %v5747_v49 }
 0x30d   : > { %6053 = vst [vmem:[#allocation16_spill] sm:$0xff] %v5846_v6  ;;  %v3159_v42 = vadd.f32 %v5814_v48, %v5741_v9  ;;  %v3564_v49 = vperm.slane %v5851_v58, 6 }
 0x312   : > { %v5855_v12 = vpop.f32.mrf.mxu2  ;;  %v5857_v54 = vpop.f32.mrf.mxu3 }
 0x313   : > { %6054 = vst [vmem:[#allocation17_spill] sm:$0xff] %v5855_v12  ;;  %v3323_v14 = vpop.f32.mrf.mxu0  ;;  %v3337_v29 = vpop.f32.mrf.mxu1  ;;  %v3561_v12 = vperm.slane %v5851_v58, 3 }
 0x314   : > { %6055 = vst [vmem:[#allocation18_spill] sm:$0xff] %v5857_v54  ;;  %v3524_v22 = vadd.f32 %v3323_v14, %v3140_v53  ;;  %v3525_v6 = vadd.f32 %v3337_v29, %v3141_v11  ;;  %v3560_v54 = vperm.slane %v5851_v58, 2  ;;  %v3157_v53 = vadd.f32 %v2969_v62, %v5735_v18 }
 0x316   : > { %v3588_v40 = vmul.f32 %v3558_v51, %v3524_v22  ;;  %v3589_v37 = vmul.f32 %v3559_v41, %v3525_v6 }
 0x318   : > { %v3702_v0 = vmul.f32 %v3588_v40, %v3588_v40  ;;  %v3618_v13 = vpack.c.bf16 %v3589_v37, %v3588_v40  ;;  %v3650_v57 = vadd.f32 %v3589_v37, %v3588_v40  ;;  %v3703_v4 = vmul.f32 %v3589_v37, %v3589_v37 }
 0x31a   : > { %3634 = vst [vmem:[%s5868_s7] sm:$0xff] %v3618_v13  ;;  %v3732_v22 = vadd.f32 %v3703_v4, %v3702_v0  ;;  %v3351_v29 = vpop.f32.mrf.mxu2  ;;  %v3365_v40 = vpop.f32.mrf.mxu3 }
 0x31b   : > { %v3526_v37 = vadd.f32 %v3351_v29, %v3142_v56  ;;  %v3527_v6 = vadd.f32 %v3365_v40, %v3143_v59  ;;  %v3325_v2 = vpop.f32.mrf.mxu0  ;;  %v3339_v32 = vpop.f32.mrf.mxu1 }
 0x31c   : > { %v3539_v47 = vadd.f32 %v3325_v2, %v3155_v21  ;;  %v3540_v50 = vadd.f32 %v3339_v32, %v3156_v39 }
 0x31d   : > { %v3590_v11 = vmul.f32 %v3560_v54, %v3526_v37  ;;  %v3591_v10 = vmul.f32 %v3561_v12, %v3527_v6 }
 0x31e   : > { %v3603_v38 = vmul.f32 %v3558_v51, %v3539_v47  ;;  %v3604_v0 = vmul.f32 %v3559_v41, %v3540_v50  ;;  %v3562_v41 = vperm.slane %v5851_v58, 4 }
 0x31f   : > { %v3651_v13 = vadd.f32 %v3650_v57, %v3590_v11  ;;  %v3704_v14 = vmul.f32 %v3590_v11, %v3590_v11  ;;  %v3619_v4 = vpack.c.bf16 %v3591_v10, %v3590_v11  ;;  %v3705_v56 = vmul.f32 %v3591_v10, %v3591_v10 }
 0x320   : > { %v3667_v21 = vsel %vm3666_vm10, %v3603_v38, 0.0  ;;  %v3717_v39 = vmul.f32 %v3603_v38, %v3603_v38  ;;  %v3626_v59 = vpack.c.bf16 %v3604_v0, %v3603_v38  ;;  %v3668_v18 = vsel %vm3666_vm10, %v3604_v0, 0.0 }
 0x321   : > { %v3733_v62 = vadd.f32 %v3732_v22, %v3704_v14  ;;  %3635 = vst [vmem:[%s5868_s7 + $0x8] sm:$0xff] %v3619_v4  ;;  %v3652_v29 = vadd.f32 %v3651_v13, %v3591_v10  ;;  %v3669_v40 = vadd.f32 %v3668_v18, %v3667_v21  ;;  %v3718_v7 = vmul.f32 %v3604_v0, %v3604_v0 }
 0x322   : > { %v3748_v25 = vsel %vm3666_vm10, %v3717_v39, 0.0  ;;  %3642 = vst [vmem:[%s5868_s7 + $0x3c] sm:$0x77] %v3626_v59  ;;  %v3353_v8 = vpop.f32.mrf.mxu2  ;;  %v3367_v51 = vpop.f32.mrf.mxu3  ;;  %v3563_v57 = vperm.slane %v5851_v58, 5  ;;  %v3160_v13 = vadd.f32 %v5816_v36, %v5744_v28 }
 0x323   : > { %v3734_v37 = vadd.f32 %v3733_v62, %v3705_v56  ;;  %v3749_v6 = vsel %vm3666_vm10, %v3718_v7, 0.0  ;;  %v3541_v22 = vadd.f32 %v3353_v8, %v3157_v53  ;;  %v3542_v2 = vadd.f32 %v3367_v51, %v3158_v27  ;;  %v3379_v32 = vpop.f32.mrf.mxu0  ;;  %v3393_v47 = vpop.f32.mrf.mxu1 }
 0x324   : > { %v3750_v50 = vadd.f32 %v3749_v6, %v3748_v25  ;;  %v3528_v11 = vadd.f32 %v3379_v32, %v3144_v63  ;;  %v3529_v10 = vadd.f32 %v3393_v47, %v3145_v26  ;;  %v3147_v53 = vadd.f32 %v5820_v1, %v5750_v16 }
 0x325   : > { %v3605_v38 = vmul.f32 %v3560_v54, %v3541_v22  ;;  %v3606_v0 = vmul.f32 %v3561_v12, %v3542_v2  ;;  %v3565_v16 = vperm.slane %v5851_v58, 7  ;;  %v3161_v47 = vadd.f32 %v5818_v55, %v5765_v24 }
 0x326   : > { %v3592_v27 = vmul.f32 %v3562_v41, %v3528_v11  ;;  %v3593_v14 = vmul.f32 %v3563_v57, %v3529_v10 }
 0x327   : > { %v3670_v63 = vsel %vm3666_vm10, %v3605_v38, 0.0  ;;  %v3719_v4 = vmul.f32 %v3605_v38, %v3605_v38  ;;  %v3627_v56 = vpack.c.bf16 %v3606_v0, %v3605_v38  ;;  %v3720_v9 = vmul.f32 %v3606_v0, %v3606_v0 }
 0x328   : > { %v3671_v43 = vadd.f32 %v3670_v63, %v3669_v40  ;;  %v3653_v48 = vadd.f32 %v3652_v29, %v3592_v27  ;;  %v3706_v54 = vmul.f32 %v3592_v27, %v3592_v27  ;;  %v3672_v28 = vsel %vm3666_vm10, %v3606_v0, 0.0 }
 0x329   : > { %v3751_v12 = vsel %vm3666_vm10, %v3719_v4, 0.0  ;;  %3643 = vst [vmem:[%s5868_s7 + $0x44] sm:$0x77] %v3627_v56  ;;  %v3620_v36 = vpack.c.bf16 %v3593_v14, %v3592_v27  ;;  %v3707_v59 = vmul.f32 %v3593_v14, %v3593_v14  ;;  %v3753_v40 = vsel %vm3666_vm10, %v3720_v9, 0.0 }
 0x32a   : > { %v3752_v1 = vadd.f32 %v3751_v12, %v3750_v50  ;;  %v3673_v21 = vadd.f32 %v3672_v28, %v3671_v43  ;;  %v3735_v39 = vadd.f32 %v3734_v37, %v3706_v54  ;;  %v3407_v18 = vpop.f32.mrf.mxu2  ;;  %v3421_v62 = vpop.f32.mrf.mxu3  ;;  %v3654_v7 = vadd.f32 %v3653_v48, %v3593_v14 }
 0x32b   : > { %3636 = vst [vmem:[%s5868_s7 + $0x10] sm:$0xff] %v3620_v36  ;;  %v3530_v29 = vadd.f32 %v3407_v18, %v3146_v30  ;;  %v3531_v26 = vadd.f32 %v3421_v62, %v3147_v53  ;;  %v3381_v25 = vpop.f32.mrf.mxu0  ;;  %v3395_v8 = vpop.f32.mrf.mxu1  ;;  %v3149_v50 = vadd.f32 %v5824_v31, %v5762_v20  ;;  %v3162_v30 = vadd.f32 %v5828_v33, %v5768_v46 }
 0x32c   : > { %v3754_v51 = vadd.f32 %v3753_v40, %v3752_v1  ;;  %v3736_v6 = vadd.f32 %v3735_v39, %v3707_v59  ;;  %v3543_v22 = vadd.f32 %v3381_v25, %v3159_v42  ;;  %v3544_v2 = vadd.f32 %v3395_v8, %v3160_v13  ;;  %v5911_v13 = vld [vmem:[%s6038_s2 + $0x8] sm:$0xff] }
 0x32d   : > { %v3594_v32 = vmul.f32 %v3564_v49, %v3530_v29  ;;  %v3595_v37 = vmul.f32 %v3565_v16, %v3531_v26  ;;  %v3566_v4 = vperm.slane %v5911_v13, 0  ;;  %v3567_v56 = vperm.slane %v5911_v13, 1 }
 0x32e   : > { %v3607_v11 = vmul.f32 %v3562_v41, %v3543_v22  ;;  %v3608_v10 = vmul.f32 %v3563_v57, %v3544_v2  ;;  %v3150_v59 = vadd.f32 %v5826_v52, %v5777_v19  ;;  %v3163_v26 = vadd.f32 %v5830_v34, %v5771_v15 }
 0x32f   : > { %v3655_v38 = vadd.f32 %v3654_v7, %v3594_v32  ;;  %v3708_v42 = vmul.f32 %v3594_v32, %v3594_v32  ;;  %v3621_v0 = vpack.c.bf16 %v3595_v37, %v3594_v32  ;;  %v3709_v53 = vmul.f32 %v3595_v37, %v3595_v37 }
 0x330   : > { %v3674_v24 = vsel %vm3666_vm10, %v3607_v11, 0.0  ;;  %v3721_v55 = vmul.f32 %v3607_v11, %v3607_v11  ;;  %v3628_v27 = vpack.c.bf16 %v3608_v10, %v3607_v11  ;;  %v3722_v57 = vmul.f32 %v3608_v10, %v3608_v10 }
 0x331   : > { %v3737_v20 = vadd.f32 %v3736_v6, %v3708_v42  ;;  %3637 = vst [vmem:[%s5868_s7 + $0x18] sm:$0xff] %v3621_v0  ;;  %v3656_v31 = vadd.f32 %v3655_v38, %v3595_v37  ;;  %v3675_v41 = vadd.f32 %v3674_v24, %v3673_v21  ;;  %v3676_v33 = vsel %vm3666_vm10, %v3608_v10, 0.0 }
 0x332   : > { %v3755_v46 = vsel %vm3666_vm10, %v3721_v55, 0.0  ;;  %3644 = vst [vmem:[%s5868_s7 + $0x4c] sm:$0x77] %v3628_v27  ;;  %v3409_v14 = vpop.f32.mrf.mxu2  ;;  %v3423_v63 = vpop.f32.mrf.mxu3  ;;  %v3757_v54 = vsel %vm3666_vm10, %v3722_v57, 0.0  ;;  %v3164_v25 = vadd.f32 %v5832_v45, %v5774_v17  ;;  %v3568_v8 = vperm.slane %v5911_v13, 2  ;;  %v6056_v57 = vld [vmem:[#allocation8_spill] sm:$0xff] }
 0x333   : > { %v3738_v43 = vadd.f32 %v3737_v20, %v3709_v53  ;;  %v3756_v9 = vadd.f32 %v3755_v46, %v3754_v51  ;;  %v3677_v48 = vadd.f32 %v3676_v33, %v3675_v41  ;;  %v3435_v12 = vpop.f32.mrf.mxu0  ;;  %v3449_v28 = vpop.f32.mrf.mxu1  ;;  %v3545_v36 = vadd.f32 %v3409_v14, %v3161_v47  ;;  %v6057_v46 = vld [vmem:[#allocation15_spill] sm:$0xff] }
 0x334   : > { %v3546_v1 = vadd.f32 %v3423_v63, %v3162_v30  ;;  %v3532_v21 = vadd.f32 %v3435_v12, %v5822_v60  ;;  %v3533_v39 = vadd.f32 %v3449_v28, %v3149_v50  ;;  %v3151_v60 = vadd.f32 %v5836_v3, %v5780_v23 }
 0x335   : > { %v3758_v18 = vadd.f32 %v3757_v54, %v3756_v9  ;;  %v3609_v62 = vmul.f32 %v3564_v49, %v3545_v36  ;;  %v3569_v49 = vperm.slane %v5911_v13, 3  ;;  %v3165_v55 = vadd.f32 %v5834_v35, %v5793_v44 }
 0x336   : > { %v3610_v40 = vmul.f32 %v3565_v16, %v3546_v1  ;;  %v3596_v7 = vmul.f32 %v3566_v4, %v3532_v21  ;;  %v3597_v29 = vmul.f32 %v3567_v56, %v3533_v39  ;;  %v3153_v41 = vadd.f32 %v5840_v5, %v5790_v61 }
 0x337   : > { %v3678_v19 = vsel %vm3666_vm10, %v3609_v62, 0.0  ;;  %v3723_v52 = vmul.f32 %v3609_v62, %v3609_v62  ;;  %v3166_v33 = vadd.f32 %v6057_v46, %v6056_v57  ;;  %v3570_v63 = vperm.slane %v5911_v13, 4 }
 0x338   : > { %v3629_v58 = vpack.c.bf16 %v3610_v40, %v3609_v62  ;;  %v3679_v16 = vadd.f32 %v3678_v19, %v3677_v48  ;;  %v3724_v51 = vmul.f32 %v3610_v40, %v3610_v40  ;;  %v3657_v6 = vadd.f32 %v3656_v31, %v3596_v7 }
 0x339   : > { %v3710_v22 = vmul.f32 %v3596_v7, %v3596_v7  ;;  %v3759_v15 = vsel %vm3666_vm10, %v3723_v52, 0.0  ;;  %v3680_v17 = vsel %vm3666_vm10, %v3610_v40, 0.0  ;;  %v3622_v34 = vpack.c.bf16 %v3597_v29, %v3596_v7 }
 0x33a   : > { %3645 = vst [vmem:[%s5868_s7 + $0x54] sm:$0x77] %v3629_v58  ;;  %v3711_v23 = vmul.f32 %v3597_v29, %v3597_v29  ;;  %v3463_v45 = vpop.f32.mrf.mxu2  ;;  %v3477_v3 = vpop.f32.mrf.mxu3  ;;  %v3760_v2 = vadd.f32 %v3759_v15, %v3758_v18  ;;  %v3681_v32 = vadd.f32 %v3680_v17, %v3679_v16  ;;  %v3761_v37 = vsel %vm3666_vm10, %v3724_v51, 0.0  ;;  %v6059_v51 = vld [vmem:[#allocation11_spill] sm:$0xff]  ;;  %v6061_v15 = vld [vmem:[#allocation9_spill] sm:$0xff]  ;;  %v6062_v17 = vld [vmem:[#allocation16_spill] sm:$0xff] }
 0x33b   : > { %v3739_v47 = vadd.f32 %v3738_v43, %v3710_v22  ;;  %v3437_v50 = vpop.f32.mrf.mxu0  ;;  %v3451_v11 = vpop.f32.mrf.mxu1  ;;  %3638 = vst [vmem:[%s5868_s7 + $0x20] sm:$0xff] %v3622_v34  ;;  %v3658_v10 = vadd.f32 %v3657_v6, %v3597_v29  ;;  %v3534_v30 = vadd.f32 %v3463_v45, %v3150_v59  ;;  %v3535_v38 = vadd.f32 %v3477_v3, %v3151_v60  ;;  %v6060_v6 = vld [vmem:[#allocation14_spill] sm:$0xff] }
 0x33c   : > { %v3547_v42 = vadd.f32 %v3437_v50, %v3163_v26  ;;  %v3762_v0 = vadd.f32 %v3761_v37, %v3760_v2  ;;  %v3548_v24 = vadd.f32 %v3451_v11, %v3164_v25  ;;  %v3571_v44 = vperm.slane %v5911_v13, 5  ;;  %v6058_v25 = vld [vmem:[#allocation13_spill] sm:$0xff]  ;;  %v6063_v3 = vld [vmem:[#allocation10_spill] sm:$0xff] }
 0x33d   : > { %v3740_v53 = vadd.f32 %v3739_v47, %v3711_v23  ;;  %v3598_v27 = vmul.f32 %v3568_v8, %v3534_v30  ;;  %v3599_v20 = vmul.f32 %v3569_v49, %v3535_v38  ;;  %v3154_v22 = vadd.f32 %v6060_v6, %v6059_v51  ;;  %v6064_v2 = vld [vmem:[#allocation17_spill] sm:$0xff] }
 0x33e   : > { %v3611_v31 = vmul.f32 %v3566_v4, %v3547_v42  ;;  %v3612_v14 = vmul.f32 %v3567_v56, %v3548_v24  ;;  %v3167_v34 = vadd.f32 %v6062_v17, %v6061_v15  ;;  %v3572_v42 = vperm.slane %v5911_v13, 6 }
 0x33f   : > { %v3659_v43 = vadd.f32 %v3658_v10, %v3598_v27  ;;  %v3712_v9 = vmul.f32 %v3598_v27, %v3598_v27  ;;  %v3623_v48 = vpack.c.bf16 %v3599_v20, %v3598_v27  ;;  %v3713_v35 = vmul.f32 %v3599_v20, %v3599_v20 }
 0x340   : > { %v3682_v54 = vsel %vm3666_vm10, %v3611_v31, 0.0  ;;  %v3725_v12 = vmul.f32 %v3611_v31, %v3611_v31  ;;  %v3630_v4 = vpack.c.bf16 %v3612_v14, %v3611_v31  ;;  %v3726_v36 = vmul.f32 %v3612_v14, %v3612_v14 }
 0x341   : > { %v3741_v28 = vadd.f32 %v3740_v53, %v3712_v9  ;;  %3639 = vst [vmem:[%s5868_s7 + $0x28] sm:$0xff] %v3623_v48  ;;  %v3660_v61 = vadd.f32 %v3659_v43, %v3599_v20  ;;  %v3683_v5 = vadd.f32 %v3682_v54, %v3681_v32  ;;  %v3684_v39 = vsel %vm3666_vm10, %v3612_v14, 0.0 }
 0x342   : > { %v3465_v1 = vpop.f32.mrf.mxu2  ;;  %v3479_v56 = vpop.f32.mrf.mxu3  ;;  %v3763_v21 = vsel %vm3666_vm10, %v3725_v12, 0.0  ;;  %3646 = vst [vmem:[%s5868_s7 + $0x5c] sm:$0x77] %v3630_v4  ;;  %v3765_v26 = vsel %vm3666_vm10, %v3726_v36, 0.0  ;;  %v3168_v32 = vadd.f32 %v6064_v2, %v6063_v3  ;;  %v6065_v36 = vld [vmem:[#allocation12_spill] sm:$0xff] }
 0x343   : > { %v3549_v59 = vadd.f32 %v3465_v1, %v3165_v55  ;;  %v3550_v18 = vadd.f32 %v3479_v56, %v3166_v33  ;;  %v3491_v62 = vpop.f32.mrf.mxu0  ;;  %v3505_v40 = vpop.f32.mrf.mxu1  ;;  %v3764_v7 = vadd.f32 %v3763_v21, %v3762_v0  ;;  %v3685_v29 = vadd.f32 %v3684_v39, %v3683_v5  ;;  %v6066_v1 = vld [vmem:[#allocation18_spill] sm:$0xff] }
 0x344   : > { %v3536_v60 = vadd.f32 %v3491_v62, %v6058_v25  ;;  %v3537_v58 = vadd.f32 %v3505_v40, %v3153_v41  ;;  %v3742_v16 = vadd.f32 %v3741_v28, %v3713_v35  ;;  %v3169_v56 = vadd.f32 %v6066_v1, %v6065_v36 }
 0x345   : > { %v3613_v19 = vmul.f32 %v3568_v8, %v3549_v59  ;;  %v3614_v52 = vmul.f32 %v3569_v49, %v3550_v18  ;;  %v3766_v23 = vadd.f32 %v3765_v26, %v3764_v7 }
 0x346   : > { %v3600_v45 = vmul.f32 %v3570_v63, %v3536_v60  ;;  %v3601_v10 = vmul.f32 %v3571_v44, %v3537_v58 }
 0x347   : > { %v3686_v37 = vsel %vm3666_vm10, %v3613_v19, 0.0  ;;  %v3727_v8 = vmul.f32 %v3613_v19, %v3613_v19  ;;  %v3631_v49 = vpack.c.bf16 %v3614_v52, %v3613_v19  ;;  %v3728_v50 = vmul.f32 %v3614_v52, %v3614_v52 }
 0x348   : > { %v3687_v47 = vadd.f32 %v3686_v37, %v3685_v29  ;;  %v3714_v11 = vmul.f32 %v3600_v45, %v3600_v45  ;;  %v3688_v38 = vsel %vm3666_vm10, %v3614_v52, 0.0  ;;  %v3661_v0 = vadd.f32 %v3660_v61, %v3600_v45 }
 0x349   : > { %v3767_v30 = vsel %vm3666_vm10, %v3727_v8, 0.0  ;;  %3647 = vst [vmem:[%s5868_s7 + $0x64] sm:$0x77] %v3631_v49  ;;  %v3624_v53 = vpack.c.bf16 %v3601_v10, %v3600_v45  ;;  %v3715_v55 = vmul.f32 %v3601_v10, %v3601_v10  ;;  %v3769_v48 = vsel %vm3666_vm10, %v3728_v50, 0.0 }
 0x34a   : > { %v3519_v24 = vpop.f32.mrf.mxu2  ;;  %v3743_v27 = vadd.f32 %v3742_v16, %v3714_v11  ;;  %v3689_v20 = vadd.f32 %v3688_v38, %v3687_v47  ;;  %v3662_v46 = vadd.f32 %v3661_v0, %v3601_v10  ;;  %v3768_v33 = vadd.f32 %v3767_v30, %v3766_v23 }
 0x34b   : > { %v3538_v31 = vadd.f32 %v3519_v24, %v3154_v22  ;;  %v3493_v41 = vpop.f32.mrf.mxu0  ;;  %v3507_v57 = vpop.f32.mrf.mxu1  ;;  %3640 = vst [vmem:[%s5868_s7 + $0x30] sm:$0xff] %v3624_v53 }
 0x34c   : > { %v3551_v14 = vadd.f32 %v3493_v41, %v3167_v34  ;;  %v3552_v43 = vadd.f32 %v3507_v57, %v3168_v32  ;;  %v3744_v9 = vadd.f32 %v3743_v27, %v3715_v55  ;;  %v3770_v54 = vadd.f32 %v3769_v48, %v3768_v33 }
 0x34d   : > { %v3602_v35 = vmul.f32 %v3572_v42, %v3538_v31 }
 0x34e   : > { %v3615_v12 = vmul.f32 %v3570_v63, %v3551_v14  ;;  %v3616_v4 = vmul.f32 %v3571_v44, %v3552_v43 }
 0x34f   : > { %v3625_v28 = vpack.c.bf16 %v3602_v35, %v3602_v35  ;;  %v3663_v61 = vadd.f32 %v3662_v46, %v3602_v35  ;;  %v3716_v5 = vmul.f32 %v3602_v35, %v3602_v35 }
 0x350   : > { %v3729_v21 = vmul.f32 %v3615_v12, %v3615_v12  ;;  %v3632_v39 = vpack.c.bf16 %v3616_v4, %v3615_v12  ;;  %v3690_v59 = vsel %vm3666_vm10, %v3615_v12, 0.0  ;;  %v3730_v44 = vmul.f32 %v3616_v4, %v3616_v4 }
 0x351   : > { %3641 = vst [vmem:[%s5868_s7 + $0x38] sm:$0xf] %v3625_v28  ;;  %3664 = vadd.xlane.f32.xlu2 %v3663_v61  ;;  %v3745_v63 = vadd.f32 %v3744_v9, %v3716_v5  ;;  %v3691_v13 = vadd.f32 %v3690_v59, %v3689_v20  ;;  %v3692_v62 = vsel %vm3666_vm10, %v3616_v4, 0.0 }
 0x352   : > { %3648 = vst [vmem:[%s5868_s7 + $0x6c] sm:$0x77] %v3632_v39  ;;  %v3521_v18 = vpop.f32.mrf.mxu2  ;;  %v3771_v40 = vsel %vm3666_vm10, %v3729_v21, 0.0  ;;  %v3773_v25 = vsel %vm3666_vm10, %v3730_v44, 0.0 }
 0x353   : > { %v3553_v7 = vadd.f32 %v3521_v18, %v3169_v56  ;;  %3746 = vadd.xlane.f32.xlu1 %v3745_v63  ;;  %v3693_v29 = vadd.f32 %v3692_v62, %v3691_v13  ;;  %v3772_v26 = vadd.f32 %v3771_v40, %v3770_v54 }
 0x355   : > { %v3617_v60 = vmul.f32 %v3572_v42, %v3553_v7  ;;  %v3774_v19 = vadd.f32 %v3773_v25, %v3772_v26 }
 0x357   : > { %v3633_v52 = vpack.c.bf16 %v3617_v60, %v3617_v60  ;;  %v3694_v58 = vsel %vm3666_vm10, %v3617_v60, 0.0  ;;  %v3731_v16 = vmul.f32 %v3617_v60, %v3617_v60 }
 0x358   : > { %v3695_v51 = vadd.f32 %v3694_v58, %v3693_v29 }
 0x359   : > { %3649 = vst [vmem:[%s5868_s7 + $0x74] sm:$0x7] %v3633_v52  ;;  %v3775_v6 = vsel %vm3666_vm10, %v3731_v16, 0.0 }
 0x35a   : > { %3696 = vadd.xlane.f32.xlu0 %v3695_v51  ;;  %v3776_v22 = vadd.f32 %v3775_v6, %v3774_v19 }
 0x35b   : > { %4232 = shalt.err (!%p4229_p4)
}
 0x35c   : > { %s4281_s28 = smov 960   ;;  %s4282_s7 = smov 3840   ;;  %3777 = vadd.xlane.f32.xlu2 %v3776_v22  ;;  %vm3698_vm11 = vcmask 7168   ;;  %vm3700_vm12 = vcmask 5120  }
 0x35d   : > { %s4283_s25 = smov 60   ;;  %p226_p5 = scmp.lt.s32.totalorder %s4330_s19, 3 }
 0x35e   : > { %4120 = dma.vmem_to_hbm [thread:$0]  (%p4354_p10), %s5993_s13, 1920, %s5995_s14, %s3783_s20, %s4281_s28, %s4282_s7, %s4283_s25  }
 0x35f   : > { %s6072_s19 = smov (!%p226_p5, %s4330_s19), 3 }
 0x360   : > { %s4104_s9 = sshll.u32 %s6072_s19, 5 }
 0x361   : > { %s230_s12 = scalar_lea.vmem %s6040_s4, %s4104_s9 }
 0x3c4   : > { %v3665_v15 = vpop.xlane.xlu2 %3664 }
 0x3c5   : > { %3699 = vst.msk [vmem:[%s230_s12] sm:$0xff] %vm3698_vm11, %v3665_v15 }
 0x3c6   : > { %v3747_v17 = vpop.xlane.xlu1 %3746 }
 0x3c7   : > { %4098 = vst.msk [vmem:[%s230_s12 + $0x10] sm:$0xff] %vm3698_vm11, %v3747_v17 }
 0x3cd   : > { %v3697_v34 = vpop.xlane.xlu0 %3696 }
 0x3ce   : > { %3701 = vst.msk [vmem:[%s230_s12 + $0x8] sm:$0x3f] %vm3700_vm12, %v3697_v34 }
 0x3cf   : > { %v3778_v23 = vpop.xlane.xlu2 %3777 }
 0x3d0   : > { %4099 = vst.msk [vmem:[%s230_s12 + $0x18] sm:$0x3f] %vm3700_vm12, %v3778_v23 }
 0x3d1 PF: > { %p4131_p10 = scmp.ge.s32.totalorder %s4271_s18, 2  ;;  %s3820_s19 = sand.u32 1, %s4259_s15  }
 0x3d2   : > { %s3821_s26 = scalar_lea.sflag [#allocation4], %s3820_s19 }
 0x3d3   : > { %p4127_p7 = pnand %p4131_p10, %p4358_p11 }
 0x3d5   : > { %p4128_p8 = pneg %p4127_p7 }
 0x3d7   : > { %4254 = dma.done.wait (%p4128_p8), %s3821_s26, 1920  }
 0x3d8   : > { %4256 = vsyncadd (%p4128_p8), %s3821_s26, 4294965376  ;;  %p18_p9 = scmp.ge.s32.totalorder %s4334_s21, 6   ;;  %s6067_s15 = smov %s4263_s16 }
 0x3d9   : > { %s6068_s16 = smov %s4267_s17  ;;  %s6069_s17 = smov %s4346_s24 }
 0x3da   : > { %s6070_s18 = smov %s4334_s21  ;;  %20 = sbr.rel (!%p18_p9) target bundleno = 5 (0x5), region = 107 }
 0x3df   :  { %3835 = vsyncpa [#allocation3], 1 }
 0x3e0   :  { %3837 = vsyncpa [#allocation3 + $0x1], 1 }
 0x3e1   :  { %3838 = vsyncpa [#allocation4], 1 }
 0x3e2   :  { %3840 = vsyncpa [#allocation4 + $0x1], 1 }

</bundles_post_ra>
